<compile_context>
chip_gen: v5e
topology: v5e:2x2
jax: 0.10.0
libtpu: 0.0.40
codegen_flags: <defaults>
</compile_context>

<pallas_src>
import functools

import numpy as np
import jax
import jax.numpy as jnp
from jax import lax
from jax.experimental import pallas as pl
from jax.experimental.pallas import tpu as pltpu

EPS = 1e-5      # nn.GroupNorm default eps
GROUPS = 32     # nn.GroupNorm(32, ...)


# --------------------------------- kernel ------------------------------------

def _resblock_kernel(use_proj, cpg, H, W, Cin, Cout, TH, *refs):
    """Per sample: gn1 -> SiLU -> conv1(3x3, pad=1) + residual, fused.

    Ref order (kept in lockstep with the wrapper):
      x, gn_gamma, gn_beta, [gmap if cpg > 1], w_conv1 (bf16), bias,
      [w_res (bf16) if use_proj], out, xp_scratch (bf16)
    """
    it = iter(refs)
    x_ref = next(it)                              # (1, H, W, Cin)  f32
    g_ref = next(it)                              # (1, Cin)        f32
    b_ref = next(it)                              # (1, Cin)        f32
    gmap_ref = next(it) if cpg > 1 else None      # (Cin, GROUPS)   f32 one-hot
    w_ref = next(it)                              # (9*Cin, Cout)   bf16
    bias_ref = next(it)                           # (1, Cout)       f32
    wres_ref = next(it) if use_proj else None     # (Cin, Cout)     bf16
    out_ref = next(it)                            # (1, H, W, Cout) f32
    xp_ref = next(it)                             # (H+2, W+2, Cin) bf16 scratch

    HW = H * W
    xf = x_ref[...].reshape(HW, Cin).astype(jnp.float32)

    # -------------- GroupNorm(32): two-pass stats + SiLU (f32) ---------------
    s1 = jnp.sum(xf, axis=0, keepdims=True)                       # (1, Cin)
    if cpg == 1:
        mean_c = s1 * (1.0 / HW)
    else:
        gmap = gmap_ref[...]                                      # (Cin, G)
        dims_cg = (((1,), (0,)), ((), ()))                        # reduce C -> G
        dims_gc = (((1,), (1,)), ((), ()))                        # broadcast G -> C
        mean_g = lax.dot_general(s1, gmap, dims_cg,
                                 preferred_element_type=jnp.float32) * (1.0 / (HW * cpg))
        mean_c = lax.dot_general(mean_g, gmap, dims_gc,
                                 preferred_element_type=jnp.float32)
    xc = xf - mean_c
    s2 = jnp.sum(xc * xc, axis=0, keepdims=True)                  # centered: no cancellation
    if cpg == 1:
        var_c = s2 * (1.0 / HW)
    else:
        var_g = lax.dot_general(s2, gmap, dims_cg,
                                preferred_element_type=jnp.float32) * (1.0 / (HW * cpg))
        var_c = lax.dot_general(var_g, gmap, dims_gc,
                                preferred_element_type=jnp.float32)
    inv_c = lax.rsqrt(var_c + EPS)
    xn = xc * (inv_c * g_ref[...]) + b_ref[...]
    h = xn * jax.nn.sigmoid(xn)                                   # SiLU, (HW, Cin) f32
    # TODO(synk): for Cin < 128, lane-densify this block (fold rows into lanes +
    # pltpu.roll reduction) instead of running at Cin/128 lane occupancy.

    # ------- stage SiLU output in a zero-halo bf16 scratch (conv source) -----
    # Halo border is re-zeroed every grid step so the sample axis can be
    # "parallel" (no persistent-scratch dependency between grid steps / cores).
    zrow = jnp.zeros((1, W + 2, Cin), jnp.bfloat16)
    zcol = jnp.zeros((H + 2, 1, Cin), jnp.bfloat16)
    xp_ref[0:1, :, :] = zrow
    xp_ref[H + 1:H + 2, :, :] = zrow
    xp_ref[:, 0:1, :] = zcol
    xp_ref[:, W + 1:W + 2, :] = zcol
    xp_ref[1:H + 1, 1:W + 1, :] = h.reshape(H, W, Cin).astype(jnp.bfloat16)

    # ------- conv1 (+ residual), row-tiled: 3 accumulated K=3*Cin matmuls ----
    bias = bias_ref[...]
    wres = wres_ref[...] if use_proj else None
    n_tiles = H // TH

    @pl.loop(0, n_tiles)
    def _tile(t):
        r0 = pl.multiple_of(t * TH, TH)
        acc = jnp.zeros((TH * W, Cout), jnp.float32)
        for ky in range(3):                                       # unrolled
            rows = pl.ds(r0 + ky, TH)
            patch = jnp.concatenate(
                [xp_ref[rows, kx:kx + W, :] for kx in range(3)],
                axis=-1).reshape(TH * W, 3 * Cin)                 # bf16
            acc = acc + jnp.dot(
                patch, w_ref[ky * 3 * Cin:(ky + 1) * 3 * Cin, :],
                preferred_element_type=jnp.float32)
        acc = acc + bias
        xt = x_ref[:, pl.ds(r0, TH), :, :].reshape(TH * W, Cin)
        if use_proj:
            # 1x1-conv residual (bf16 MXU, f32 accumulation; res bias folded
            # into `bias` by the wrapper).
            acc = acc + jnp.dot(xt.astype(jnp.bfloat16), wres,
                                preferred_element_type=jnp.float32)
        else:
            acc = acc + xt                                        # identity residual, f32
        out_ref[:, pl.ds(r0, TH), :, :] = (
            acc.reshape(1, TH, W, Cout).astype(out_ref.dtype))


# -------------------------------- wrapper ------------------------------------

def _group_map(C):
    cpg = C // GROUPS
    return jnp.asarray(np.kron(np.eye(GROUPS), np.ones((cpg, 1))),
                       dtype=jnp.float32)                         # (C, GROUPS) one-hot


def _row_tile(H, W, target_m=128):
    """Largest divisor of H whose row-tile yields ~target_m output rows (MXU M)."""
    th = max(1, min(H, max(1, target_m // max(W, 1))))
    while H % th:
        th -= 1
    return th


def _vmem_limit_bytes():
    """Generation-aware scoped-VMEM budget (~56 MiB v7x, ~100 MiB v5e/v6e)."""
    try:
        cap = int(pltpu.get_tpu_info().vmem_capacity_bytes)
    except Exception:
        return 64 * 1024 * 1024
    return int(min(cap - 8 * 1024 * 1024, 100 * 1024 * 1024))


def unet_residual_block_pallas(x, time, params, *, channels_last=False):
    """Forward pass of Unet_residualBlock: conv1(silu(gn1(x))) + residual(x).

    `time` is accepted for API fidelity; the module's return value
    (`x + residue`) does not depend on it (the merge branch is unused).
    """
    del time
    if channels_last:
        x_nhwc = x
        N, H, W, Cin = x.shape
    else:
        N, Cin, H, W = x.shape
        x_nhwc = jnp.transpose(x, (0, 2, 3, 1))
    x_nhwc = x_nhwc.astype(jnp.float32)

    Cout = params["conv1_w"].shape[-1]
    use_proj = (Cin != Cout)
    assert Cin % GROUPS == 0, "GroupNorm(32) requires Cin % 32 == 0"
    cpg = Cin // GROUPS
    TH = _row_tile(H, W)
    f32, bf16 = jnp.float32, jnp.bfloat16

    g1 = params["gn1_g"].reshape(1, Cin).astype(f32)
    b1 = params["gn1_b"].reshape(1, Cin).astype(f32)

    # conv1 weight HWIO (3,3,Cin,Cout) -> im2col rows ordered (ky, kx, ci).
    w1 = params["conv1_w"].astype(bf16).reshape(9 * Cin, Cout)
    bias = params["conv1_b"].reshape(1, Cout).astype(f32)
    if use_proj:
        wres = params["res_w"].astype(bf16).reshape(Cin, Cout)
        bias = bias + params["res_b"].reshape(1, Cout).astype(f32)

    const1 = dict(pipeline_mode=pl.Buffered(1))   # grid-invariant -> single buffer

    operands = [x_nhwc, g1, b1]
    in_specs = [
        pl.BlockSpec((1, H, W, Cin), lambda n: (n, 0, 0, 0)),
        pl.BlockSpec((1, Cin), lambda n: (0, 0), **const1),
        pl.BlockSpec((1, Cin), lambda n: (0, 0), **const1),
    ]
    if cpg > 1:
        operands.append(_group_map(Cin))
        in_specs.append(pl.BlockSpec((Cin, GROUPS), lambda n: (0, 0), **const1))
    operands += [w1, bias]
    in_specs += [
        pl.BlockSpec((9 * Cin, Cout), lambda n: (0, 0), **const1),
        pl.BlockSpec((1, Cout), lambda n: (0, 0), **const1),
    ]
    if use_proj:
        operands.append(wres)
        in_specs.append(pl.BlockSpec((Cin, Cout), lambda n: (0, 0), **const1))

    out_nhwc = pl.pallas_call(
        functools.partial(_resblock_kernel, use_proj, cpg, H, W, Cin, Cout, TH),
        grid=(N,),
        in_specs=in_specs,
        out_specs=pl.BlockSpec((1, H, W, Cout), lambda n: (n, 0, 0, 0)),
        out_shape=jax.ShapeDtypeStruct((N, H, W, Cout), f32),
        scratch_shapes=[pltpu.VMEM((H + 2, W + 2, Cin), bf16)],
        compiler_params=pltpu.CompilerParams(
            dimension_semantics=("parallel",),     # per-sample; dual-TC safe
            vmem_limit_bytes=_vmem_limit_bytes(),
        ),
    )(*operands)

    if channels_last:
        return out_nhwc
    return jnp.transpose(out_nhwc, (0, 3, 1, 2))


# ----------------------- pure-JAX reference (full forward) -------------------

def _reference_forward(x, time, params):
    """Verbatim JAX transcription of Unet_residualBlock.forward (NCHW)."""
    def group_norm(v, gamma, beta):
        n, c, h, w = v.shape
        vg = v.reshape(n, GROUPS, -1)
        m = vg.mean(axis=-1, keepdims=True)
        var = vg.var(axis=-1, keepdims=True)
        vn = ((vg - m) * lax.rsqrt(var + EPS)).reshape(n, c, h, w)
        return vn * gamma[None, :, None, None] + beta[None, :, None, None]

    silu = lambda a: a * jax.nn.sigmoid(a)

    def conv3x3(v, w, b):
        y = lax.conv_general_dilated(v, w, (1, 1), ((1, 1), (1, 1)),
                                     dimension_numbers=("NCHW", "HWIO", "NCHW"))
        return y + b[None, :, None, None]

    in_ch = x.shape[1]
    out_ch = params["conv1_w"].shape[-1]

    residue = x
    if in_ch != out_ch:                                   # residualLayer = 1x1 conv
        residue = (jnp.einsum("nchw,co->nohw", x, params["res_w"])
                   + params["res_b"][None, :, None, None])

    h = group_norm(x, params["gn1_g"], params["gn1_b"])
    h = silu(h)
    h = conv3x3(h, params["conv1_w"], params["conv1_b"])

    t = silu(time)
    t = t @ params["lin_w"] + params["lin_b"]
    merge = h + t[:, :, None, None]
    merge = group_norm(merge, params["gn2_g"], params["gn2_b"])
    merge = silu(merge)
    merge = conv3x3(merge, params["conv2_w"], params["conv2_b"])
    del merge                                             # module returns x + residue

    return h + residue


# ---------------------------------- main --------------------------------------

def _make_params(key, cin, cout, d_time):
    ks = jax.random.split(key, 12)
    f32 = jnp.float32
    p = {
        "gn1_g": 1.0 + 0.1 * jax.random.normal(ks[0], (cin,), f32),
        "gn1_b": 0.1 * jax.random.normal(ks[1], (cin,), f32),
        "conv1_w": 0.05 * jax.random.normal(ks[2], (3, 3, cin, cout), f32),
        "conv1_b": 0.05 * jax.random.normal(ks[3], (cout,), f32),
        "lin_w": 0.05 * jax.random.normal(ks[4], (d_time, cout), f32),
        "lin_b": 0.05 * jax.random.normal(ks[5], (cout,), f32),
        "gn2_g": 1.0 + 0.1 * jax.random.normal(ks[6], (cout,), f32),
        "gn2_b": 0.1 * jax.random.normal(ks[7], (cout,), f32),
        "conv2_w": 0.05 * jax.random.normal(ks[8], (3, 3, cout, cout), f32),
        "conv2_b": 0.05 * jax.random.normal(ks[9], (cout,), f32),
    }
    if cin != cout:
        p["res_w"] = 0.1 * jax.random.normal(ks[10], (cin, cout), f32)   # 1x1 conv
        p["res_b"] = 0.05 * jax.random.normal(ks[11], (cout,), f32)
    return p


if __name__ == "__main__":
    # GroupNorm(32, C) requires C % 32 == 0 -> smallest sensible test channels.
    key = jax.random.PRNGKey(0)
    d_time = 128
    cases = [
        dict(N=2, Cin=32, Cout=64, H=16, W=16),   # 1x1-conv residual, 1 ch/group
        dict(N=2, Cin=64, Cout=64, H=16, W=16),   # identity residual, 2 ch/group
    ]
    for cfg in cases:
        kp, kx, kt, key = jax.random.split(key, 4)
        params = _make_params(kp, cfg["Cin"], cfg["Cout"], d_time)
        x = jax.random.normal(kx, (cfg["N"], cfg["Cin"], cfg["H"], cfg["W"]),
                              jnp.float32)                 # NCHW (PyTorch layout)
        time = jax.random.normal(kt, (cfg["N"], d_time), jnp.float32)

        fwd = jax.jit(lambda xx, tt, p=params: unet_residual_block_pallas(xx, tt, p))
        out = fwd(x, time)
        jax.block_until_ready(out)

        ref = _reference_forward(x, time, params)
        # bf16 MXU operands (f32 accumulation) -> mixed-precision tolerance.
        np.testing.assert_allclose(np.asarray(out), np.asarray(ref),
                                   rtol=1e-2, atol=1e-2)
    print("KERNEL_OK")
</pallas_src>

<mosaic_0001>
module attributes {stable_mosaic.version = 11 : i64} {
  func.func @_resblock_kernel(%arg0: i32, %arg1: memref<1x16x16x32xf32, #tpu.memory_space<vmem>>, %arg2: memref<1x32xf32, #tpu.memory_space<vmem>>, %arg3: memref<1x32xf32, #tpu.memory_space<vmem>>, %arg4: memref<288x64xbf16, #tpu.memory_space<vmem>>, %arg5: memref<1x64xf32, #tpu.memory_space<vmem>>, %arg6: memref<32x64xbf16, #tpu.memory_space<vmem>>, %arg7: memref<1x16x16x64xf32, #tpu.memory_space<vmem>>, %arg8: memref<18x18x32xbf16, #tpu.memory_space<vmem>>) attributes {dimension_semantics = [#tpu.dimension_semantics<parallel>], iteration_bounds = array<i64: 2>, scalar_prefetch = 0 : i64, scratch_operands = 1 : i64, tpu.core_type = #tpu.core_type<tc>, window_params = [{transform_indices = @transform_0, window_bounds = array<i64: 1, 16, 16, 32>}, {pipeline_mode = #tpu.pipeline_mode<synchronous>, transform_indices = @transform_1, window_bounds = array<i64: 1, 32>}, {pipeline_mode = #tpu.pipeline_mode<synchronous>, transform_indices = @transform_2, window_bounds = array<i64: 1, 32>}, {pipeline_mode = #tpu.pipeline_mode<synchronous>, transform_indices = @transform_3, window_bounds = array<i64: 288, 64>}, {pipeline_mode = #tpu.pipeline_mode<synchronous>, transform_indices = @transform_4, window_bounds = array<i64: 1, 64>}, {pipeline_mode = #tpu.pipeline_mode<synchronous>, transform_indices = @transform_5, window_bounds = array<i64: 32, 64>}, {transform_indices = @transform_6, window_bounds = array<i64: 1, 16, 16, 64>}]} {
    %c0 = arith.constant 0 : index
    %c0_0 = arith.constant 0 : index
    %c0_1 = arith.constant 0 : index
    %c0_2 = arith.constant 0 : index
    %0 = vector.load %arg1[%c0, %c0_0, %c0_1, %c0_2] : memref<1x16x16x32xf32, #tpu.memory_space<vmem>>, vector<1x16x16x32xf32>
    %1 = vector.shape_cast %0 : vector<1x16x16x32xf32> to vector<256x32xf32>
    %cst = arith.constant dense<0.000000e+00> : vector<32xf32>
    %2 = vector.multi_reduction <add>, %1, %cst [0] : vector<256x32xf32> to vector<32xf32>
    %3 = vector.shape_cast %2 : vector<32xf32> to vector<1x32xf32>
    %cst_3 = arith.constant 3.906250e-03 : f32
    %4 = vector.broadcast %cst_3 : f32 to vector<1x32xf32>
    %5 = arith.mulf %3, %4 : vector<1x32xf32>
    %6 = vector.broadcast %5 : vector<1x32xf32> to vector<256x32xf32>
    %7 = arith.subf %1, %6 : vector<256x32xf32>
    %8 = arith.mulf %7, %7 : vector<256x32xf32>
    %cst_4 = arith.constant dense<0.000000e+00> : vector<32xf32>
    %9 = vector.multi_reduction <add>, %8, %cst_4 [0] : vector<256x32xf32> to vector<32xf32>
    %10 = vector.shape_cast %9 : vector<32xf32> to vector<1x32xf32>
    %cst_5 = arith.constant 3.906250e-03 : f32
    %11 = vector.broadcast %cst_5 : f32 to vector<1x32xf32>
    %12 = arith.mulf %10, %11 : vector<1x32xf32>
    %cst_6 = arith.constant 9.99999974E-6 : f32
    %13 = vector.broadcast %cst_6 : f32 to vector<1x32xf32>
    %14 = arith.addf %12, %13 : vector<1x32xf32>
    %15 = math.rsqrt %14 : vector<1x32xf32>
    %c0_7 = arith.constant 0 : index
    %c0_8 = arith.constant 0 : index
    %16 = vector.load %arg2[%c0_7, %c0_8] : memref<1x32xf32, #tpu.memory_space<vmem>>, vector<1x32xf32>
    %17 = arith.mulf %15, %16 : vector<1x32xf32>
    %18 = vector.broadcast %17 : vector<1x32xf32> to vector<256x32xf32>
    %19 = arith.mulf %7, %18 : vector<256x32xf32>
    %c0_9 = arith.constant 0 : index
    %c0_10 = arith.constant 0 : index
    %20 = vector.load %arg3[%c0_9, %c0_10] : memref<1x32xf32, #tpu.memory_space<vmem>>, vector<1x32xf32>
    %21 = vector.broadcast %20 : vector<1x32xf32> to vector<256x32xf32>
    %22 = arith.addf %19, %21 : vector<256x32xf32>
    %23 = arith.negf %22 : vector<256x32xf32>
    %24 = math.exp %23 : vector<256x32xf32>
    %cst_11 = arith.constant 1.000000e+00 : f32
    %25 = vector.broadcast %cst_11 : f32 to vector<256x32xf32>
    %26 = arith.addf %25, %24 : vector<256x32xf32>
    %27 = arith.divf %25, %26 : vector<256x32xf32>
    %28 = arith.mulf %22, %27 : vector<256x32xf32>
    %cst_12 = arith.constant 0.000000e+00 : bf16
    %29 = vector.broadcast %cst_12 : bf16 to vector<1x18x32xbf16>
    %cst_13 = arith.constant 0.000000e+00 : bf16
    %30 = vector.broadcast %cst_13 : bf16 to vector<18x1x32xbf16>
    %c0_14 = arith.constant 0 : index
    %c0_15 = arith.constant 0 : index
    %c0_16 = arith.constant 0 : index
    %31 = vector.load %arg8[%c0_14, %c0_15, %c0_16] : memref<18x18x32xbf16, #tpu.memory_space<vmem>>, vector<1x18x32xbf16>
    tpu.vector_store %arg8[%c0_14, %c0_15, %c0_16], %29 {strides = array<i32>} : memref<18x18x32xbf16, #tpu.memory_space<vmem>>, vector<1x18x32xbf16>,
    %c17 = arith.constant 17 : index
    %c0_17 = arith.constant 0 : index
    %c0_18 = arith.constant 0 : index
    %32 = vector.load %arg8[%c17, %c0_17, %c0_18] : memref<18x18x32xbf16, #tpu.memory_space<vmem>>, vector<1x18x32xbf16>
    tpu.vector_store %arg8[%c17, %c0_17, %c0_18], %29 {strides = array<i32>} : memref<18x18x32xbf16, #tpu.memory_space<vmem>>, vector<1x18x32xbf16>,
    %c0_19 = arith.constant 0 : index
    %c0_20 = arith.constant 0 : index
    %c0_21 = arith.constant 0 : index
    %33 = vector.load %arg8[%c0_19, %c0_20, %c0_21] : memref<18x18x32xbf16, #tpu.memory_space<vmem>>, vector<18x1x32xbf16>
    tpu.vector_store %arg8[%c0_19, %c0_20, %c0_21], %30 {strides = array<i32>} : memref<18x18x32xbf16, #tpu.memory_space<vmem>>, vector<18x1x32xbf16>,
    %c0_22 = arith.constant 0 : index
    %c17_23 = arith.constant 17 : index
    %c0_24 = arith.constant 0 : index
    %34 = vector.load %arg8[%c0_22, %c17_23, %c0_24] : memref<18x18x32xbf16, #tpu.memory_space<vmem>>, vector<18x1x32xbf16>
    tpu.vector_store %arg8[%c0_22, %c17_23, %c0_24], %30 {strides = array<i32>} : memref<18x18x32xbf16, #tpu.memory_space<vmem>>, vector<18x1x32xbf16>,
    %35 = vector.shape_cast %28 : vector<256x32xf32> to vector<16x16x32xf32>
    %36 = arith.truncf %35 : vector<16x16x32xf32> to vector<16x16x32xbf16>
    %c1 = arith.constant 1 : index
    %c1_25 = arith.constant 1 : index
    %c0_26 = arith.constant 0 : index
    %37 = vector.load %arg8[%c1, %c1_25, %c0_26] : memref<18x18x32xbf16, #tpu.memory_space<vmem>>, vector<16x16x32xbf16>
    tpu.vector_store %arg8[%c1, %c1_25, %c0_26], %36 {strides = array<i32>} : memref<18x18x32xbf16, #tpu.memory_space<vmem>>, vector<16x16x32xbf16>,
    %c0_27 = arith.constant 0 : index
    %c0_28 = arith.constant 0 : index
    %38 = vector.load %arg5[%c0_27, %c0_28] : memref<1x64xf32, #tpu.memory_space<vmem>>, vector<1x64xf32>
    %c0_29 = arith.constant 0 : index
    %c0_30 = arith.constant 0 : index
    %39 = vector.load %arg6[%c0_29, %c0_30] : memref<32x64xbf16, #tpu.memory_space<vmem>>, vector<32x64xbf16>
    %c0_i32 = arith.constant 0 : i32
    %c2_i32 = arith.constant 2 : i32
    %40 = arith.addi %c0_i32, %c2_i32 : i32
    %c1_i32 = arith.constant 1 : i32
    scf.for %arg9 = %c0_i32 to %40 step %c1_i32  : i32 {
      %c1_i32_32 = arith.constant 1 : i32
      %41 = arith.muli %arg9, %c1_i32_32 : i32
      %c0_i32_33 = arith.constant 0 : i32
      %42 = arith.addi %c0_i32_33, %41 : i32
      %c8_i32 = arith.constant 8 : i32
      %43 = arith.muli %42, %c8_i32 : i32
      %44 = tpu.assume_multiple %43, 8 : i32
      %cst_34 = arith.constant 0.000000e+00 : f32
      %45 = vector.broadcast %cst_34 : f32 to vector<128x64xf32>
      %c0_i32_35 = arith.constant 0 : i32
      %46 = arith.addi %44, %c0_i32_35 : i32
      %47 = arith.index_cast %46 : i32 to index
      %c0_36 = arith.constant 0 : index
      %c0_37 = arith.constant 0 : index
      %48 = vector.load %arg8[%47, %c0_36, %c0_37] : memref<18x18x32xbf16, #tpu.memory_space<vmem>>, vector<8x16x32xbf16>
      %49 = arith.index_cast %46 : i32 to index
      %c1_38 = arith.constant 1 : index
      %c0_39 = arith.constant 0 : index
      %50 = vector.load %arg8[%49, %c1_38, %c0_39] : memref<18x18x32xbf16, #tpu.memory_space<vmem>>, vector<8x16x32xbf16>
      %51 = arith.index_cast %46 : i32 to index
      %c2 = arith.constant 2 : index
      %c0_40 = arith.constant 0 : index
      %52 = vector.load %arg8[%51, %c2, %c0_40] : memref<18x18x32xbf16, #tpu.memory_space<vmem>>, vector<8x16x32xbf16>
      %53 = tpu.concatenate %48, %50, %52 in 2 : vector<8x16x32xbf16>, vector<8x16x32xbf16>, vector<8x16x32xbf16> -> vector<8x16x96xbf16>
      %54 = vector.shape_cast %53 : vector<8x16x96xbf16> to vector<128x96xbf16>
      %c0_41 = arith.constant 0 : index
      %c0_42 = arith.constant 0 : index
      %55 = vector.load %arg4[%c0_41, %c0_42] : memref<288x64xbf16, #tpu.memory_space<vmem>>, vector<96x64xbf16>
      %cst_43 = arith.constant dense<0.000000e+00> : vector<128x64xf32>
      %56 = tpu.matmul %54, %55, %cst_43 {dimension_numbers = #tpu.dot_dimension_numbers<[1], [0], [0], [1], [0, 0, 1, 1], [], []>} : vector<128x96xbf16>, vector<96x64xbf16>, vector<128x64xf32> -> vector<128x64xf32>
      %57 = arith.addf %45, %56 : vector<128x64xf32>
      %c1_i32_44 = arith.constant 1 : i32
      %58 = arith.addi %44, %c1_i32_44 : i32
      %59 = arith.index_cast %58 : i32 to index
      %c0_45 = arith.constant 0 : index
      %c0_46 = arith.constant 0 : index
      %60 = vector.load %arg8[%59, %c0_45, %c0_46] : memref<18x18x32xbf16, #tpu.memory_space<vmem>>, vector<8x16x32xbf16>
      %61 = arith.index_cast %58 : i32 to index
      %c1_47 = arith.constant 1 : index
      %c0_48 = arith.constant 0 : index
      %62 = vector.load %arg8[%61, %c1_47, %c0_48] : memref<18x18x32xbf16, #tpu.memory_space<vmem>>, vector<8x16x32xbf16>
      %63 = arith.index_cast %58 : i32 to index
      %c2_49 = arith.constant 2 : index
      %c0_50 = arith.constant 0 : index
      %64 = vector.load %arg8[%63, %c2_49, %c0_50] : memref<18x18x32xbf16, #tpu.memory_space<vmem>>, vector<8x16x32xbf16>
      %65 = tpu.concatenate %60, %62, %64 in 2 : vector<8x16x32xbf16>, vector<8x16x32xbf16>, vector<8x16x32xbf16> -> vector<8x16x96xbf16>
      %66 = vector.shape_cast %65 : vector<8x16x96xbf16> to vector<128x96xbf16>
      %c96 = arith.constant 96 : index
      %c0_51 = arith.constant 0 : index
      %67 = vector.load %arg4[%c96, %c0_51] : memref<288x64xbf16, #tpu.memory_space<vmem>>, vector<96x64xbf16>
      %cst_52 = arith.constant dense<0.000000e+00> : vector<128x64xf32>
      %68 = tpu.matmul %66, %67, %cst_52 {dimension_numbers = #tpu.dot_dimension_numbers<[1], [0], [0], [1], [0, 0, 1, 1], [], []>} : vector<128x96xbf16>, vector<96x64xbf16>, vector<128x64xf32> -> vector<128x64xf32>
      %69 = arith.addf %57, %68 : vector<128x64xf32>
      %c2_i32_53 = arith.constant 2 : i32
      %70 = arith.addi %44, %c2_i32_53 : i32
      %71 = arith.index_cast %70 : i32 to index
      %c0_54 = arith.constant 0 : index
      %c0_55 = arith.constant 0 : index
      %72 = vector.load %arg8[%71, %c0_54, %c0_55] : memref<18x18x32xbf16, #tpu.memory_space<vmem>>, vector<8x16x32xbf16>
      %73 = arith.index_cast %70 : i32 to index
      %c1_56 = arith.constant 1 : index
      %c0_57 = arith.constant 0 : index
      %74 = vector.load %arg8[%73, %c1_56, %c0_57] : memref<18x18x32xbf16, #tpu.memory_space<vmem>>, vector<8x16x32xbf16>
      %75 = arith.index_cast %70 : i32 to index
      %c2_58 = arith.constant 2 : index
      %c0_59 = arith.constant 0 : index
      %76 = vector.load %arg8[%75, %c2_58, %c0_59] : memref<18x18x32xbf16, #tpu.memory_space<vmem>>, vector<8x16x32xbf16>
      %77 = tpu.concatenate %72, %74, %76 in 2 : vector<8x16x32xbf16>, vector<8x16x32xbf16>, vector<8x16x32xbf16> -> vector<8x16x96xbf16>
      %78 = vector.shape_cast %77 : vector<8x16x96xbf16> to vector<128x96xbf16>
      %c192 = arith.constant 192 : index
      %c0_60 = arith.constant 0 : index
      %79 = vector.load %arg4[%c192, %c0_60] : memref<288x64xbf16, #tpu.memory_space<vmem>>, vector<96x64xbf16>
      %cst_61 = arith.constant dense<0.000000e+00> : vector<128x64xf32>
      %80 = tpu.matmul %78, %79, %cst_61 {dimension_numbers = #tpu.dot_dimension_numbers<[1], [0], [0], [1], [0, 0, 1, 1], [], []>} : vector<128x96xbf16>, vector<96x64xbf16>, vector<128x64xf32> -> vector<128x64xf32>
      %81 = arith.addf %69, %80 : vector<128x64xf32>
      %82 = vector.broadcast %38 : vector<1x64xf32> to vector<128x64xf32>
      %83 = arith.addf %81, %82 : vector<128x64xf32>
      %c0_62 = arith.constant 0 : index
      %84 = arith.index_cast %44 : i32 to index
      %c0_63 = arith.constant 0 : index
      %c0_64 = arith.constant 0 : index
      %85 = vector.load %arg1[%c0_62, %84, %c0_63, %c0_64] : memref<1x16x16x32xf32, #tpu.memory_space<vmem>>, vector<1x8x16x32xf32>
      %86 = vector.shape_cast %85 : vector<1x8x16x32xf32> to vector<128x32xf32>
      %87 = arith.truncf %86 : vector<128x32xf32> to vector<128x32xbf16>
      %cst_65 = arith.constant dense<0.000000e+00> : vector<128x64xf32>
      %88 = tpu.matmul %87, %39, %cst_65 {dimension_numbers = #tpu.dot_dimension_numbers<[1], [0], [0], [1], [0, 0, 1, 1], [], []>} : vector<128x32xbf16>, vector<32x64xbf16>, vector<128x64xf32> -> vector<128x64xf32>
      %89 = arith.addf %83, %88 : vector<128x64xf32>
      %90 = vector.shape_cast %89 : vector<128x64xf32> to vector<1x8x16x64xf32>
      %c0_66 = arith.constant 0 : index
      %91 = arith.index_cast %44 : i32 to index
      %c0_67 = arith.constant 0 : index
      %c0_68 = arith.constant 0 : index
      %92 = vector.load %arg7[%c0_66, %91, %c0_67, %c0_68] : memref<1x16x16x64xf32, #tpu.memory_space<vmem>>, vector<1x8x16x64xf32>
      tpu.vector_store %arg7[%c0_66, %91, %c0_67, %c0_68], %90 {strides = array<i32>} : memref<1x16x16x64xf32, #tpu.memory_space<vmem>>, vector<1x8x16x64xf32>,
    }
    %c2_i32_31 = arith.constant 2 : i32
    return
  }
  func.func @transform_0(%arg0: i32) -> (i32, i32, i32, i32) {
    %c0_i32 = arith.constant 0 : i32
    %c0_i32_0 = arith.constant 0 : i32
    %c0_i32_1 = arith.constant 0 : i32
    %c0_i32_2 = arith.constant 0 : i32
    return %arg0, %c0_i32, %c0_i32_0, %c0_i32_1 : i32, i32, i32, i32
  }
  func.func @transform_1(%arg0: i32) -> (i32, i32) {
    %c0_i32 = arith.constant 0 : i32
    %c0_i32_0 = arith.constant 0 : i32
    %c0_i32_1 = arith.constant 0 : i32
    return %c0_i32, %c0_i32_0 : i32, i32
  }
  func.func @transform_2(%arg0: i32) -> (i32, i32) {
    %c0_i32 = arith.constant 0 : i32
    %c0_i32_0 = arith.constant 0 : i32
    %c0_i32_1 = arith.constant 0 : i32
    return %c0_i32, %c0_i32_0 : i32, i32
  }
  func.func @transform_3(%arg0: i32) -> (i32, i32) {
    %c0_i32 = arith.constant 0 : i32
    %c0_i32_0 = arith.constant 0 : i32
    %c0_i32_1 = arith.constant 0 : i32
    return %c0_i32, %c0_i32_0 : i32, i32
  }
  func.func @transform_4(%arg0: i32) -> (i32, i32) {
    %c0_i32 = arith.constant 0 : i32
    %c0_i32_0 = arith.constant 0 : i32
    %c0_i32_1 = arith.constant 0 : i32
    return %c0_i32, %c0_i32_0 : i32, i32
  }
  func.func @transform_5(%arg0: i32) -> (i32, i32) {
    %c0_i32 = arith.constant 0 : i32
    %c0_i32_0 = arith.constant 0 : i32
    %c0_i32_1 = arith.constant 0 : i32
    return %c0_i32, %c0_i32_0 : i32, i32
  }
  func.func @transform_6(%arg0: i32) -> (i32, i32, i32, i32) {
    %c0_i32 = arith.constant 0 : i32
    %c0_i32_0 = arith.constant 0 : i32
    %c0_i32_1 = arith.constant 0 : i32
    %c0_i32_2 = arith.constant 0 : i32
    return %arg0, %c0_i32, %c0_i32_0, %c0_i32_1 : i32, i32, i32, i32
  }
}

</mosaic_0001>

<bundles_post_ra>
// kernel: _lambda_.1
= control target key start
LH: loop header
LB: loop body
LE: loop exit
PB: predicated region body
PF: predicated region fallthrough
CT: control target
= control target key end

     0   :  { %11 = vsyncpa [#allocation4], 0  ;;  %s6549_s0 = inlined_call_operand.hbm [shape: f32[2,16,16,32], index: 0, kind: input, shape index: {}]   ;;  %s6550_s1 = inlined_call_operand.vmem [shape: f32[1,32], index: 1, kind: input, shape index: {}]   ;;  %s6551_s2 = inlined_call_operand.vmem [shape: f32[1,32], index: 2, kind: input, shape index: {}]   ;;  %s6552_s3 = inlined_call_operand.hbm [shape: bf16[288,64], index: 3, kind: input, shape index: {}]   ;;  %s6553_s4 = inlined_call_operand.hbm [shape: f32[1,64], index: 4, kind: input, shape index: {}]   ;;  %s6554_s5 = inlined_call_operand.hbm [shape: bf16[32,64], index: 5, kind: input, shape index: {}]   ;;  %s6555_s6 = inlined_call_operand.hbm [shape: f32[2,16,16,64], index: 6, kind: output, shape index: {}]  }
   0x1   :  { %13 = vsyncpa [#allocation4 + $0x1], 0 }
   0x2   :  { %14 = vsyncpa [#allocation7], 0 }
   0x3   :  { %15 = vsyncpa [#allocation10], 0 }
   0x4   :  { %16 = vsyncpa [#allocation5], 0 }
   0x5   :  { %18 = vsyncpa [#allocation5 + $0x1], 0  ;;  %s4334_s21 = smov 0   ;;  %s4336_s22 = smov 0  }
   0x6   :  { %s4338_s23 = smov 0   ;;  %s4340_s24 = smov 0  }
   0x7 LB: > { %s4355_s25 = sadd.s32 4294967295, %s4281_s24   ;;  %s3465_s26 = sadd.s32 4294967294, %s4281_s24   ;;  %s4281_s24 = sphi %s4340_s24, %s6782_s24   ;;  %s4277_s23 = sphi %s4338_s23, %s6781_s23   ;;  %s4273_s22 = sphi %s4336_s22, %s6780_s22   ;;  %s4269_s21 = sphi %s4334_s21, %s6779_s21  }
   0x8   : > { %p44_p0 = scmp.ne.s32.totalorder %s4273_s22, %s4269_s21  ;;  %p45_p1 = scmp.eq.s32.totalorder %s4355_s25, 0 }
   0x9   : > { %p173_p2 = scmp.eq.s32.totalorder %s4355_s25, 1  ;;  %p179_p3 = scmp.eq.s32.totalorder %s3465_s26, 1 }
   0xa   : > { %p4364_p4 = por %p45_p1, %p44_p0  ;;  %p3466_p5 = scmp.ge.s32.totalorder %s4281_s24, 1 }
   0xb   : > { %p4369_p6 = por %p179_p3, %p44_p0  ;;  %p186_p7 = scmp.lt.s32.totalorder %s4281_s24, 3 }
   0xc   : > { %s203_s7 = sshll.u32 %s6552_s3, 4  ;;  %s4287_s9 = smov [#allocation6]   ;;  %s204_s7 = int_to_ptr.hbm [resolvable:$true] %s203_s7 }
   0xd   : > { %p4377_p8 = pnand %p3466_p5, %p186_p7  ;;  %s205_s10 = sshll.u32 %s4287_s9, 4  ;;  %s206_s10 = int_to_ptr.vmem [resolvable:$true] %s205_s10 }
   0xe   : > { %s218_s14 = sshll.u32 %s6553_s4, 4  ;;  %s4288_s15 = smov 64   ;;  %s219_s14 = int_to_ptr.hbm [resolvable:$true] %s218_s14 }
   0xf   : > { %p3836_p9 = pneg %p4377_p8  ;;  %s4289_s16 = smov 4  }
  0x10   : > { %s4290_s17 = smov [#allocation8]   ;;  %s229_s26 = sshll.u32 %s6554_s5, 4  ;;  %s230_s26 = int_to_ptr.hbm [resolvable:$true] %s229_s26 }
  0x11   : > { %p4385_p10 = pnand %p3836_p9, %p45_p1  ;;  %s220_s18 = sshll.u32 %s4290_s17, 4  ;;  %s221_s18 = int_to_ptr.vmem [resolvable:$true] %s220_s18 }
  0x12   : > { %s4291_s29 = smov [#allocation9]   ;;  %p38_p13 = scmp.ne.s32.totalorder %s4277_s23, %s4273_s22 }
  0x13   : > { %3839 = dma.hbm_to_vmem [thread:$0]  (!%p4385_p10), %s204_s7, 2304, %s206_s10, [#allocation7], %s4288_s15, %s4288_s15, %s4289_s16  }
  0x14   : > { %3842 = dma.hbm_to_vmem [thread:$0]  (!%p4385_p10), %s219_s14, 16, %s221_s18, [#allocation7]  }
  0x15   : > { %s231_s30 = sshll.u32 %s4291_s29, 4  ;;  %s4401_s7 = sadd.s32 1, %s4281_s24   ;;  %s232_s30 = int_to_ptr.vmem [resolvable:$true] %s231_s30 }
  0x16   : > { %3845 = dma.hbm_to_vmem [thread:$0]  (!%p4385_p10), %s230_s26, 256, %s232_s30, [#allocation10], %s4288_s15, %s4288_s15, %s4289_s16  }
  0x17   : > { %s28_s9 = ssub.s32 %s4281_s24, %s4401_s7  ;;  %s31_s10 = sadd.s32 1, %s4277_s23 }
  0x18   : > { %p29_p12 = scmp.eq.s32.totalorder %s28_s9, 0  ;;  %p39_p0 = scmp.eq.s32.totalorder %s4281_s24, 0 }
  0x19   : > { %p3857_p3 = scmp.lt.s32.totalorder %s4281_s24, 2  ;;  %p4417_p7 = por %p173_p2, %p38_p13 }
  0x1a   : > { %s4413_s12 = scalar_select %p29_p12, %s4277_s23, %s31_s10  }
  0x1b   : > { %p40_p5 = por %p39_p0, %p38_p13  ;;  %s245_s14 = sand.u32 1, %s4277_s23  }
  0x1c   : > { %s3701_s17 = sshll.u32 %s4281_s24, 8  ;;  %s3471_s11 = sshll.u32 %s245_s14, 8 }
  0x1d   : > { %s254_s16 = scalar_lea.hbm %s6549_s0, %s3701_s17  ;;  %s249_s20 = scalar_lea.vmem [#allocation3], %s3471_s11 }
  0x1e   : > { %s255_s19 = sshll.u32 %s254_s16, 4  ;;  %s257_s26 = sshll.u32 %s249_s20, 4  ;;  %s256_s19 = int_to_ptr.hbm [resolvable:$true] %s255_s19  ;;  %s258_s26 = int_to_ptr.vmem [resolvable:$true] %s257_s26 }
  0x1f   : > { %p4428_p9 = pnand %p3857_p3, %p40_p5  ;;  %s246_s30 = scalar_lea.sflag [#allocation4], %s245_s14 }
  0x20   : > { %s4173_s9 = sshra.s32 %s256_s19, 4  ;;  %s4180_s18 = scalar_lea.hbm %s6549_s0, 512  ;;  %s4174_s9 = int_to_ptr.hbm [resolvable:$true] %s4173_s9 }
  0x21   : > { %s4175_s10 = scalar_lea.hbm %s4174_s9, 256  ;;  %p4177_p10 = pneg %p4428_p9 }
  0x22   : > { %p4176_p2 = scmp.ne.s32.totalorder %s4174_s9, %s4175_s10  ;;  %p4181_p0 = scmp.lt.s32.totalorder %s4174_s9, %s6549_s0 }
  0x23   : > { %p4182_p3 = scmp.lt.s32.totalorder %s4180_s18, %s4175_s10 }
  0x24   : > { %p4178_p12 = pnand %p4177_p10, %p4176_p2 }
  0x25   : > { %p4183_p5 = por %p4182_p3, %p4181_p0 }
  0x26   : > { %p4179_p13 = pneg %p4178_p12 }
  0x28   : > { %p4184_p11 = pnand %p4183_p5, %p4179_p13 }
  0x2a   : > { %4187 = shalt.err (!%p4184_p11)
}
  0x2b   : > { %s4292_s14 = smov 128   ;;  %s4293_s20 = smov 8  }
  0x2c   : > { %3849 = dma.hbm_to_vmem [thread:$0]  (!%p4428_p9), %s256_s19, 4096, %s258_s26, %s246_s30, %s4292_s14, %s4292_s14, %s4293_s20  }
  0x2d   : > { %269 = sbr.rel (%p4377_p8) target bundleno = 901 (0x385), region = 44 }
  0x32   : > { %s4445_s17 = sand.u32 1, %s4273_s22  }
  0x33   : > { %s3475_s9 = sshll.u32 %s4445_s17, 8  ;;  %s272_s10 = scalar_lea.sflag [#allocation4], %s4445_s17 }
  0x34   : > { %s4451_s11 = scalar_lea.vmem [#allocation3], %s3475_s9 }
  0x35   : > { %4252 = dma.done.wait (%p4364_p4), %s272_s10, 4096  }
  0x36   : > { %4254 = vsyncadd (%p4364_p4), %s272_s10, 4294963200 }
  0x37   : > { %4256 = dma.done.wait (%p45_p1), [#allocation7], 2320  }
  0x38   : > { %4258 = vsyncadd (%p45_p1), [#allocation7], 4294964976 }
  0x39   : > { %4260 = dma.done.wait (%p45_p1), [#allocation10], 256  }
  0x3a   : > { %4262 = vsyncadd (%p45_p1), [#allocation10], 4294967040  ;;  %vm6563_vm0 = vcmask 257024   ;;  %v4294_v0 = vmov 0   ;;  %vm1283_vm1 = vcmask 253952   ;;  %vm6559_vm6 = vcmask 261120  }
  0x3b   : > { %1281 = vst.msk [vmem:[#allocation2] sm:$0xf] %vm6563_vm0, %v4294_v0  ;;  %vm6561_vm2 = vsmask.f32 256  ;;  %v4477_v2 = vld [vmem:[#allocation8] sm:$0x1] }
  0x3c   : > { %1282 = vst.msk [vmem:[#allocation2 + $0x4] sm:$0xf] %vm6563_vm0, %v4294_v0  ;;  %vm4472_vm3 = vmand %vm1283_vm1, %vm6561_vm2  ;;  %v4479_v3 = vld [vmem:[#allocation9] sm:$0xf]  ;;  %v4481_v4 = vld [vmem:[#allocation9] sm:$0xf0] }
  0x3d   : > { %1286 = vst.msk [vmem:[#allocation2 + $0xcc] sm:$0xf] %vm6563_vm0, %v4294_v0  ;;  %v4483_v5 = vld [vmem:[#allocation9 + $0x8] sm:$0xf]  ;;  %v4485_v6 = vld [vmem:[#allocation9 + $0x8] sm:$0xf0] }
  0x3e   : > { %1287 = vst.msk [vmem:[#allocation2 + $0xd0] sm:$0xf] %vm6563_vm0, %v4294_v0  ;;  %v1295_v7 = vld [vmem:[#allocation2 + $0xc] sm:$0x1]  ;;  %v1298_v9 = vld [vmem:[#allocation2 + $0x18] sm:$0x1] }
  0x3f   : > { %1284 = vst.msk [vmem:[#allocation2 + $0x8] sm:$0x1] %vm1283_vm1, %v4294_v0  ;;  %v1296_v8 = vsel %vm4472_vm3, 0, %v1295_v7  ;;  %v1301_v10 = vld [vmem:[#allocation2 + $0x24] sm:$0x1]  ;;  %v1299_v11 = vsel %vm4472_vm3, 0, %v1298_v9 }
  0x40   : > { %1288 = vst.msk [vmem:[#allocation2 + $0xd4] sm:$0x1] %vm1283_vm1, %v4294_v0  ;;  %vm6564_vm4 = vsmask.f32 7938  ;;  %v1302_v12 = vsel %vm4472_vm3, 0, %v1301_v10  ;;  %s5997_s18 = scalar_lea.vmem [#allocation11], %s3475_s9 }
  0x41   : > { %6580 = vst [vmem:[#allocation16_spill] sm:$0xff] %v4477_v2  ;;  %v1304_v13 = vld [vmem:[#allocation2 + $0x30] sm:$0x1]  ;;  %v1307_v15 = vld [vmem:[#allocation2 + $0x3c] sm:$0x1]  ;;  %vm4515_vm5 = vmand %vm1283_vm1, %vm6564_vm4  ;;  %s5999_s15 = smov 0  }
  0x42   : > { %6581 = vst [vmem:[#allocation17_spill] sm:$0xff] %v4479_v3  ;;  %v1305_v14 = vsel %vm4472_vm3, 0, %v1304_v13  ;;  %v1308_v16 = vsel %vm4472_vm3, 0, %v1307_v15  ;;  %v1310_v17 = vld [vmem:[#allocation2 + $0x48] sm:$0x1]  ;;  %v4556_v13 = vld [vmem:[%s4451_s11] sm:$0xff] }
  0x43   : > { %6582 = vst [vmem:[#allocation18_spill] sm:$0xff] %v4481_v4  ;;  %v1311_v18 = vsel %vm4472_vm3, 0, %v1310_v17  ;;  %v1313_v19 = vld [vmem:[#allocation2 + $0x54] sm:$0x1]  ;;  %v1316_v21 = vld [vmem:[#allocation2 + $0x60] sm:$0x1] }
  0x44   : > { %6583 = vst [vmem:[#allocation19_spill] sm:$0xff] %v4483_v5  ;;  %v1314_v20 = vsel %vm4472_vm3, 0, %v1313_v19  ;;  %v1317_v22 = vsel %vm4472_vm3, 0, %v1316_v21  ;;  %v1319_v23 = vld [vmem:[#allocation2 + $0x6c] sm:$0x1] }
  0x45   : > { %6584 = vst [vmem:[#allocation20_spill] sm:$0xff] %v4485_v6  ;;  %v1320_v24 = vsel %vm4472_vm3, 0, %v1319_v23  ;;  %v1322_v25 = vld [vmem:[#allocation2 + $0x78] sm:$0x1]  ;;  %v1325_v27 = vld [vmem:[#allocation2 + $0x84] sm:$0x1] }
  0x46   : > { %1297 = vst [vmem:[#allocation2 + $0xc] sm:$0x1] %v1296_v8  ;;  %v1323_v26 = vsel %vm4472_vm3, 0, %v1322_v25  ;;  %v1326_v28 = vsel %vm4472_vm3, 0, %v1325_v27  ;;  %v1328_v29 = vld [vmem:[#allocation2 + $0x90] sm:$0x1] }
  0x47   : > { %1300 = vst [vmem:[#allocation2 + $0x18] sm:$0x1] %v1299_v11  ;;  %v1329_v30 = vsel %vm4472_vm3, 0, %v1328_v29  ;;  %v1331_v31 = vld [vmem:[#allocation2 + $0x9c] sm:$0x1]  ;;  %v4566_v19 = vld [vmem:[%s4451_s11 + $0x10] sm:$0xff] }
  0x48   : > { %1303 = vst [vmem:[#allocation2 + $0x24] sm:$0x1] %v1302_v12  ;;  %v1332_v32 = vsel %vm4472_vm3, 0, %v1331_v31  ;;  %v1334_v33 = vld [vmem:[#allocation2 + $0xa8] sm:$0x1]  ;;  %v354_v25 = vsel %vm6559_vm6, %v4556_v13, 0.0 }
  0x49   : > { %1306 = vst [vmem:[#allocation2 + $0x30] sm:$0x1] %v1305_v14  ;;  %v1335_v35 = vsel %vm4472_vm3, 0, %v1334_v33  ;;  %v1337_v36 = vld [vmem:[#allocation2 + $0xb4] sm:$0x1]  ;;  %v4584_v29 = vld [vmem:[%s4451_s11 + $0x20] sm:$0xff] }
  0x4a   : > { %1309 = vst [vmem:[#allocation2 + $0x3c] sm:$0x1] %v1308_v16  ;;  %v1338_v37 = vsel %vm4472_vm3, 0, %v1337_v36  ;;  %v1340_v38 = vld [vmem:[#allocation2 + $0xc0] sm:$0x1]  ;;  %v361_v34 = vsel %vm6559_vm6, %v4584_v29, 0.0 }
  0x4b   : > { %1312 = vst [vmem:[#allocation2 + $0x48] sm:$0x1] %v1311_v18  ;;  %v1341_v39 = vsel %vm4472_vm3, 0, %v1340_v38  ;;  %v1351_v40 = vld [vmem:[#allocation2 + $0x14] sm:$0x1]  ;;  %v4561_v16 = vld [vmem:[%s4451_s11 + $0x8] sm:$0xff] }
  0x4c   : > { %1315 = vst [vmem:[#allocation2 + $0x54] sm:$0x1] %v1314_v20  ;;  %v1352_v41 = vsel %vm4515_vm5, 0, %v1351_v40  ;;  %v1354_v42 = vld [vmem:[#allocation2 + $0x20] sm:$0x1]  ;;  %v355_v27 = vsel %vm6559_vm6, %v4561_v16, 0.0 }
  0x4d   : > { %1318 = vst [vmem:[#allocation2 + $0x60] sm:$0x1] %v1317_v22  ;;  %v1355_v43 = vsel %vm4515_vm5, 0, %v1354_v42  ;;  %v1357_v44 = vld [vmem:[#allocation2 + $0x2c] sm:$0x1]  ;;  %v4571_v22 = vld [vmem:[%s4451_s11 + $0x18] sm:$0xff] }
  0x4e   : > { %1321 = vst [vmem:[#allocation2 + $0x6c] sm:$0x1] %v1320_v24  ;;  %v1358_v45 = vsel %vm4515_vm5, 0, %v1357_v44  ;;  %v1360_v46 = vld [vmem:[#allocation2 + $0x38] sm:$0x1]  ;;  %v359_v31 = vsel %vm6559_vm6, %v4571_v22, 0.0 }
  0x4f   : > { %1324 = vst [vmem:[#allocation2 + $0x78] sm:$0x1] %v1323_v26  ;;  %v1361_v47 = vsel %vm4515_vm5, 0, %v1360_v46  ;;  %v1363_v48 = vld [vmem:[#allocation2 + $0x44] sm:$0x1]  ;;  %v4599_v38 = vld [vmem:[%s4451_s11 + $0x38] sm:$0xff] }
  0x50   : > { %1327 = vst [vmem:[#allocation2 + $0x84] sm:$0x1] %v1326_v28  ;;  %v1364_v49 = vsel %vm4515_vm5, 0, %v1363_v48  ;;  %v1366_v50 = vld [vmem:[#allocation2 + $0x50] sm:$0x1]  ;;  %v357_v28 = vsel %vm6559_vm6, %v4566_v19, 0.0 }
  0x51   : > { %1330 = vst [vmem:[#allocation2 + $0x90] sm:$0x1] %v1329_v30  ;;  %v1367_v51 = vsel %vm4515_vm5, 0, %v1366_v50  ;;  %v1369_v52 = vld [vmem:[#allocation2 + $0x5c] sm:$0x1]  ;;  %v356_v30 = vadd.f32 %v355_v27, %v354_v25  ;;  %v4609_v44 = vld [vmem:[%s4451_s11 + $0x48] sm:$0xff] }
  0x52   : > { %1333 = vst [vmem:[#allocation2 + $0x9c] sm:$0x1] %v1332_v32  ;;  %v1370_v53 = vsel %vm4515_vm5, 0, %v1369_v52  ;;  %v1372_v54 = vld [vmem:[#allocation2 + $0x68] sm:$0x1]  ;;  %v4589_v32 = vld [vmem:[%s4451_s11 + $0x28] sm:$0xff] }
  0x53   : > { %1336 = vst [vmem:[#allocation2 + $0xa8] sm:$0x1] %v1335_v35  ;;  %v1373_v55 = vsel %vm4515_vm5, 0, %v1372_v54  ;;  %v1375_v56 = vld [vmem:[#allocation2 + $0x74] sm:$0x1]  ;;  %v358_v33 = vadd.f32 %v357_v28, %v356_v30  ;;  %v4594_v35 = vld [vmem:[%s4451_s11 + $0x30] sm:$0xff] }
  0x54   : > { %1339 = vst [vmem:[#allocation2 + $0xb4] sm:$0x1] %v1338_v37  ;;  %v1376_v57 = vsel %vm4515_vm5, 0, %v1375_v56  ;;  %v1378_v58 = vld [vmem:[#allocation2 + $0x80] sm:$0x1]  ;;  %v363_v37 = vsel %vm6559_vm6, %v4589_v32, 0.0 }
  0x55   : > { %1342 = vst [vmem:[#allocation2 + $0xc0] sm:$0x1] %v1341_v39  ;;  %v1379_v59 = vsel %vm4515_vm5, 0, %v1378_v58  ;;  %v1381_v60 = vld [vmem:[#allocation2 + $0x8c] sm:$0x1]  ;;  %v360_v36 = vadd.f32 %v359_v31, %v358_v33  ;;  %v365_v40 = vsel %vm6559_vm6, %v4594_v35, 0.0 }
  0x56   : > { %1353 = vst [vmem:[#allocation2 + $0x14] sm:$0x1] %v1352_v41  ;;  %v1382_v61 = vsel %vm4515_vm5, 0, %v1381_v60  ;;  %v1384_v62 = vld [vmem:[#allocation2 + $0x98] sm:$0x1]  ;;  %v4619_v50 = vld [vmem:[%s4451_s11 + $0x58] sm:$0xff] }
  0x57   : > { %1356 = vst [vmem:[#allocation2 + $0x20] sm:$0x1] %v1355_v43  ;;  %v1385_v63 = vsel %vm4515_vm5, 0, %v1384_v62  ;;  %v1387_v0 = vld [vmem:[#allocation2 + $0xa4] sm:$0x1]  ;;  %v362_v39 = vadd.f32 %v361_v34, %v360_v36  ;;  %v4604_v41 = vld [vmem:[%s4451_s11 + $0x40] sm:$0xff] }
  0x58   : > { %1359 = vst [vmem:[#allocation2 + $0x2c] sm:$0x1] %v1358_v45  ;;  %v1388_v7 = vsel %vm4515_vm5, 0, %v1387_v0  ;;  %v1390_v8 = vld [vmem:[#allocation2 + $0xb0] sm:$0x1]  ;;  %v367_v43 = vsel %vm6559_vm6, %v4599_v38, 0.0 }
  0x59   : > { %1362 = vst [vmem:[#allocation2 + $0x38] sm:$0x1] %v1361_v47  ;;  %v1391_v9 = vsel %vm4515_vm5, 0, %v1390_v8  ;;  %v1393_v10 = vld [vmem:[#allocation2 + $0xbc] sm:$0x1]  ;;  %v364_v42 = vadd.f32 %v363_v37, %v362_v39  ;;  %v369_v46 = vsel %vm6559_vm6, %v4604_v41, 0.0 }
  0x5a   : > { %1365 = vst [vmem:[#allocation2 + $0x44] sm:$0x1] %v1364_v49  ;;  %v1394_v11 = vsel %vm4515_vm5, 0, %v1393_v10  ;;  %v1396_v12 = vld [vmem:[#allocation2 + $0xc8] sm:$0x1]  ;;  %v371_v49 = vsel %vm6559_vm6, %v4609_v44, 0.0 }
  0x5b   : > { %1368 = vst [vmem:[#allocation2 + $0x50] sm:$0x1] %v1367_v51  ;;  %v1397_v14 = vsel %vm4515_vm5, 0, %v1396_v12  ;;  %v1292_v15 = vld [vmem:[#allocation2] sm:$0x1]  ;;  %v366_v45 = vadd.f32 %v365_v40, %v364_v42  ;;  %v4614_v47 = vld [vmem:[%s4451_s11 + $0x50] sm:$0xff] }
  0x5c   : > { %1371 = vst [vmem:[#allocation2 + $0x5c] sm:$0x1] %v1370_v53  ;;  %v1293_v17 = vsel %vm4472_vm3, 0, %v1292_v15  ;;  %v1343_v18 = vld [vmem:[#allocation2 + $0xcc] sm:$0x1]  ;;  %v373_v52 = vsel %vm6559_vm6, %v4614_v47, 0.0 }
  0x5d   : > { %1374 = vst [vmem:[#allocation2 + $0x68] sm:$0x1] %v1373_v55  ;;  %v1344_v20 = vsel %vm4472_vm3, 0, %v1343_v18  ;;  %v1348_v21 = vld [vmem:[#allocation2 + $0x8] sm:$0x1]  ;;  %v368_v48 = vadd.f32 %v367_v43, %v366_v45  ;;  %v4624_v53 = vld [vmem:[%s4451_s11 + $0x60] sm:$0xff] }
  0x5e   : > { %1377 = vst [vmem:[#allocation2 + $0x74] sm:$0x1] %v1376_v57  ;;  %v1349_v23 = vsel %vm4515_vm5, 0, %v1348_v21  ;;  %v1399_v24 = vld [vmem:[#allocation2 + $0xd4] sm:$0x1]  ;;  %v375_v55 = vsel %vm6559_vm6, %v4619_v50, 0.0 }
  0x5f   : > { %1380 = vst [vmem:[#allocation2 + $0x80] sm:$0x1] %v1379_v59  ;;  %v1400_v26 = vsel %vm4515_vm5, 0, %v1399_v24  ;;  %v370_v51 = vadd.f32 %v369_v46, %v368_v48  ;;  %v4629_v56 = vld [vmem:[%s4451_s11 + $0x68] sm:$0xff]  ;;  %v377_v58 = vsel %vm6559_vm6, %v4624_v53, 0.0  ;;  %v4634_v59 = vld [vmem:[%s4451_s11 + $0x70] sm:$0xff] }
  0x60   : > { %1383 = vst [vmem:[#allocation2 + $0x8c] sm:$0x1] %v1382_v61  ;;  %v379_v61 = vsel %vm6559_vm6, %v4629_v56, 0.0  ;;  %v4639_v62 = vld [vmem:[%s4451_s11 + $0x78] sm:$0xff]  ;;  %v381_v0 = vsel %vm6559_vm6, %v4634_v59, 0.0  ;;  %v4649_v10 = vld [vmem:[%s4451_s11 + $0x88] sm:$0xff] }
  0x61   : > { %1386 = vst [vmem:[#allocation2 + $0x98] sm:$0x1] %v1385_v63  ;;  %v372_v54 = vadd.f32 %v371_v49, %v370_v51  ;;  %v4659_v18 = vld [vmem:[%s4451_s11 + $0x98] sm:$0xff]  ;;  %v4674_v30 = vld [vmem:[%s4451_s11 + $0xb0] sm:$0xff]  ;;  %v4684_v39 = vld [vmem:[%s4451_s11 + $0xc0] sm:$0xff] }
  0x62   : > { %1389 = vst [vmem:[#allocation2 + $0xa4] sm:$0x1] %v1388_v7  ;;  %v4644_v7 = vld [vmem:[%s4451_s11 + $0x80] sm:$0xff]  ;;  %v391_v25 = vsel %vm6559_vm6, %v4659_v18, 0.0  ;;  %v4679_v34 = vld [vmem:[%s4451_s11 + $0xb8] sm:$0xff]  ;;  %v397_v37 = vsel %vm6559_vm6, %v4674_v30, 0.0 }
  0x63   : > { %1392 = vst [vmem:[#allocation2 + $0xb0] sm:$0x1] %v1391_v9  ;;  %v374_v57 = vadd.f32 %v373_v52, %v372_v54  ;;  %v383_v9 = vsel %vm6559_vm6, %v4639_v62, 0.0  ;;  %v385_v12 = vsel %vm6559_vm6, %v4644_v7, 0.0  ;;  %v399_v42 = vsel %vm6559_vm6, %v4679_v34, 0.0  ;;  %v4689_v43 = vld [vmem:[%s4451_s11 + $0xc8] sm:$0xff] }
  0x64   : > { %1395 = vst [vmem:[#allocation2 + $0xbc] sm:$0x1] %v1394_v11  ;;  %v401_v46 = vsel %vm6559_vm6, %v4684_v39, 0.0  ;;  %v4694_v48 = vld [vmem:[%s4451_s11 + $0xd0] sm:$0xff]  ;;  %v403_v51 = vsel %vm6559_vm6, %v4689_v43, 0.0  ;;  %v4699_v52 = vld [vmem:[%s4451_s11 + $0xd8] sm:$0xff] }
  0x65   : > { %1398 = vst [vmem:[#allocation2 + $0xc8] sm:$0x1] %v1397_v14  ;;  %v376_v60 = vadd.f32 %v375_v55, %v374_v57  ;;  %v4654_v14 = vld [vmem:[%s4451_s11 + $0x90] sm:$0xff]  ;;  %v405_v55 = vsel %vm6559_vm6, %v4694_v48, 0.0  ;;  %v4704_v57 = vld [vmem:[%s4451_s11 + $0xe0] sm:$0xff] }
  0x66   : > { %1294 = vst [vmem:[#allocation2] sm:$0x1] %v1293_v17  ;;  %v387_v17 = vsel %vm6559_vm6, %v4649_v10, 0.0  ;;  %v389_v21 = vsel %vm6559_vm6, %v4654_v14, 0.0  ;;  %vm1434_vm15 = vsmask.f32 4368 }
  0x67   : > { %1345 = vst [vmem:[#allocation2 + $0xcc] sm:$0x1] %v1344_v20  ;;  %v378_v63 = vadd.f32 %v377_v58, %v376_v60  ;;  %v407_v60 = vsel %vm6559_vm6, %v4699_v52, 0.0  ;;  %v1759_v5 = vld [vmem:[#allocation2 + $0xc] sm:$0xf] }
  0x68   : > { %1350 = vst [vmem:[#allocation2 + $0x8] sm:$0x1] %v1349_v23  ;;  %v4664_v23 = vld [vmem:[%s4451_s11 + $0xa0] sm:$0xff] }
  0x69   : > { %1401 = vst [vmem:[#allocation2 + $0xd4] sm:$0x1] %v1400_v26  ;;  %v380_v8 = vadd.f32 %v379_v61, %v378_v63  ;;  %v4669_v26 = vld [vmem:[%s4451_s11 + $0xa8] sm:$0xff]  ;;  %v393_v28 = vsel %vm6559_vm6, %v4664_v23, 0.0 }
  0x6a   : > { %v395_v33 = vsel %vm6559_vm6, %v4669_v26, 0.0  ;;  %v4709_v61 = vld [vmem:[%s4451_s11 + $0xe8] sm:$0xff] }
  0x6b   : > { %v382_v11 = vadd.f32 %v381_v0, %v380_v8  ;;  %v409_v0 = vsel %vm6559_vm6, %v4704_v57, 0.0  ;;  %v4714_v8 = vld [vmem:[%s4451_s11 + $0xf0] sm:$0xff] }
  0x6d   : > { %v384_v15 = vadd.f32 %v383_v9, %v382_v11  ;;  %v411_v11 = vsel %vm6559_vm6, %v4709_v61, 0.0 }
  0x6f   : > { %v386_v20 = vadd.f32 %v385_v12, %v384_v15  ;;  %v4719_v12 = vld [vmem:[%s4451_s11 + $0xf8] sm:$0xff] }
  0x71   : > { %v388_v24 = vadd.f32 %v387_v17, %v386_v20  ;;  %v413_v17 = vsel %vm6559_vm6, %v4714_v8, 0.0 }
  0x73   : > { %v390_v27 = vadd.f32 %v389_v21, %v388_v24  ;;  %v415_v21 = vsel %vm6559_vm6, %v4719_v12, 0.0 }
  0x75   : > { %v392_v31 = vadd.f32 %v391_v25, %v390_v27 }
  0x77   : > { %v394_v36 = vadd.f32 %v393_v28, %v392_v31 }
  0x79   : > { %v396_v40 = vadd.f32 %v395_v33, %v394_v36 }
  0x7b   : > { %v398_v45 = vadd.f32 %v397_v37, %v396_v40 }
  0x7d   : > { %v400_v49 = vadd.f32 %v399_v42, %v398_v45 }
  0x7f   : > { %v402_v54 = vadd.f32 %v401_v46, %v400_v49 }
  0x81   : > { %v404_v58 = vadd.f32 %v403_v51, %v402_v54 }
  0x83   : > { %v406_v63 = vadd.f32 %v405_v55, %v404_v58 }
  0x85   : > { %v408_v9 = vadd.f32 %v407_v60, %v406_v63 }
  0x87   : > { %v410_v15 = vadd.f32 %v409_v0, %v408_v9 }
  0x89   : > { %v412_v20 = vadd.f32 %v411_v11, %v410_v15 }
  0x8b   : > { %v414_v24 = vadd.f32 %v413_v17, %v412_v20 }
  0x8d   : > { %v416_v25 = vadd.f32 %v415_v21, %v414_v24 }
  0x8f   : > { %v417_v27 = vrot.slane %v416_v25, 4 }
  0x91   : > { %v418_v28 = vadd.f32 %v417_v27, %v416_v25 }
  0x93   : > { %v419_v31 = vrot.slane %v418_v28, 2 }
  0x95   : > { %v420_v33 = vadd.f32 %v419_v31, %v418_v28 }
  0x97   : > { %v421_v36 = vrot.slane %v420_v33, 1 }
  0x99   : > { %v422_v37 = vadd.f32 %v421_v36, %v420_v33 }
  0x9b   : > { %v4725_v40 = vmul.f32 0.00390625, %v422_v37 }
  0x9d   : > { %v4729_v42 = vsub.f32 %v4556_v13, %v4725_v40  ;;  %v4733_v45 = vsub.f32 %v4561_v16, %v4725_v40  ;;  %v4737_v46 = vsub.f32 %v4566_v19, %v4725_v40  ;;  %v4741_v49 = vsub.f32 %v4571_v22, %v4725_v40 }
  0x9e   : > { %v4745_v51 = vsub.f32 %v4584_v29, %v4725_v40  ;;  %v4755_v19 = vsub.f32 %v4589_v32, %v4725_v40  ;;  %v4761_v29 = vsub.f32 %v4594_v35, %v4725_v40  ;;  %v4770_v32 = vsub.f32 %v4599_v38, %v4725_v40 }
  0x9f   : > { %v456_v13 = vmul.f32 %v4729_v42, %v4729_v42  ;;  %v457_v54 = vmul.f32 %v4733_v45, %v4733_v45  ;;  %v458_v16 = vmul.f32 %v4737_v46, %v4737_v46  ;;  %v459_v22 = vmul.f32 %v4741_v49, %v4741_v49 }
  0xa0   : > { %v460_v55 = vmul.f32 %v4745_v51, %v4745_v51  ;;  %v461_v9 = vmul.f32 %v4755_v19, %v4755_v19  ;;  %v4777_v15 = vsub.f32 %v4604_v41, %v4725_v40  ;;  %v462_v17 = vmul.f32 %v4761_v29, %v4761_v29 }
  0xa1   : > { %v488_v58 = vsel %vm6559_vm6, %v456_v13, 0.0  ;;  %v489_v60 = vsel %vm6559_vm6, %v457_v54, 0.0  ;;  %v491_v63 = vsel %vm6559_vm6, %v458_v16, 0.0  ;;  %v493_v35 = vsel %vm6559_vm6, %v459_v22, 0.0 }
  0xa2   : > { %v490_v0 = vadd.f32 %v489_v60, %v488_v58  ;;  %v495_v20 = vsel %vm6559_vm6, %v460_v55, 0.0  ;;  %v4784_v38 = vsub.f32 %v4609_v44, %v4725_v40  ;;  %v463_v24 = vmul.f32 %v4770_v32, %v4770_v32 }
  0xa3   : > { %v497_v25 = vsel %vm6559_vm6, %v461_v9, 0.0  ;;  %v4791_v41 = vsub.f32 %v4614_v47, %v4725_v40  ;;  %v464_v28 = vmul.f32 %v4777_v15, %v4777_v15  ;;  %v499_v31 = vsel %vm6559_vm6, %v462_v17, 0.0 }
  0xa4   : > { %v492_v11 = vadd.f32 %v491_v63, %v490_v0  ;;  %v4798_v44 = vsub.f32 %v4619_v50, %v4725_v40  ;;  %v465_v36 = vmul.f32 %v4784_v38, %v4784_v38  ;;  %v501_v37 = vsel %vm6559_vm6, %v463_v24, 0.0 }
  0xa5   : > { %v4805_v47 = vsub.f32 %v4624_v53, %v4725_v40  ;;  %v466_v54 = vmul.f32 %v4791_v41, %v4791_v41  ;;  %v503_v16 = vsel %vm6559_vm6, %v464_v28, 0.0  ;;  %v4812_v50 = vsub.f32 %v4629_v56, %v4725_v40 }
  0xa6   : > { %v494_v21 = vadd.f32 %v493_v35, %v492_v11  ;;  %v467_v55 = vmul.f32 %v4798_v44, %v4798_v44  ;;  %v505_v58 = vsel %vm6559_vm6, %v465_v36, 0.0  ;;  %v4819_v53 = vsub.f32 %v4634_v59, %v4725_v40 }
  0xa7   : > { %v468_v63 = vmul.f32 %v4805_v47, %v4805_v47  ;;  %v507_v0 = vsel %vm6559_vm6, %v466_v54, 0.0  ;;  %v4826_v56 = vsub.f32 %v4639_v62, %v4725_v40  ;;  %v469_v35 = vmul.f32 %v4812_v50, %v4812_v50 }
  0xa8   : > { %v496_v27 = vadd.f32 %v495_v20, %v494_v21  ;;  %v509_v11 = vsel %vm6559_vm6, %v467_v55, 0.0  ;;  %v4833_v59 = vsub.f32 %v4644_v7, %v4725_v40  ;;  %v470_v20 = vmul.f32 %v4819_v53, %v4819_v53 }
  0xa9   : > { %v511_v21 = vsel %vm6559_vm6, %v468_v63, 0.0  ;;  %v4840_v62 = vsub.f32 %v4649_v10, %v4725_v40  ;;  %v4847_v7 = vsub.f32 %v4654_v14, %v4725_v40  ;;  %v4854_v10 = vsub.f32 %v4659_v18, %v4725_v40 }
  0xaa   : > { %v498_v33 = vadd.f32 %v497_v25, %v496_v27  ;;  %v471_v25 = vmul.f32 %v4826_v56, %v4826_v56  ;;  %v513_v27 = vsel %vm6559_vm6, %v469_v35, 0.0  ;;  %v4861_v14 = vsub.f32 %v4664_v23, %v4725_v40 }
  0xab   : > { %v4868_v18 = vsub.f32 %v4669_v26, %v4725_v40  ;;  %v4875_v23 = vsub.f32 %v4674_v30, %v4725_v40  ;;  %v4882_v26 = vsub.f32 %v4679_v34, %v4725_v40  ;;  %v4889_v30 = vsub.f32 %v4684_v39, %v4725_v40 }
  0xac   : > { %v500_v13 = vadd.f32 %v499_v31, %v498_v33  ;;  %v472_v31 = vmul.f32 %v4833_v59, %v4833_v59  ;;  %v515_v33 = vsel %vm6559_vm6, %v470_v20, 0.0  ;;  %6587 = vst [vmem:[#allocation21_spill] sm:$0xff] %v4861_v14  ;;  %v4896_v34 = vsub.f32 %v4689_v43, %v4725_v40 }
  0xad   : > { %6588 = vst [vmem:[#allocation22_spill] sm:$0xff] %v4868_v18  ;;  %v4903_v39 = vsub.f32 %v4694_v48, %v4725_v40  ;;  %v4910_v43 = vsub.f32 %v4699_v52, %v4725_v40  ;;  %v4917_v48 = vsub.f32 %v4704_v57, %v4725_v40  ;;  %v4924_v52 = vsub.f32 %v4709_v61, %v4725_v40 }
  0xae   : > { %v502_v22 = vadd.f32 %v501_v37, %v500_v13  ;;  %v473_v37 = vmul.f32 %v4840_v62, %v4840_v62  ;;  %v517_v13 = vsel %vm6559_vm6, %v471_v25, 0.0  ;;  %6589 = vst [vmem:[#allocation23_spill] sm:$0xff] %v4875_v23  ;;  %v4931_v57 = vsub.f32 %v4714_v8, %v4725_v40 }
  0xaf   : > { %6590 = vst [vmem:[#allocation24_spill] sm:$0xff] %v4882_v26  ;;  %v4938_v61 = vsub.f32 %v4719_v12, %v4725_v40 }
  0xb0   : > { %v504_v60 = vadd.f32 %v503_v16, %v502_v22  ;;  %v474_v16 = vmul.f32 %v4847_v7, %v4847_v7  ;;  %v519_v22 = vsel %vm6559_vm6, %v472_v31, 0.0  ;;  %6591 = vst [vmem:[#allocation25_spill] sm:$0xff] %v4889_v30  ;;  %v486_v8 = vmul.f32 %v4931_v57, %v4931_v57 }
  0xb1   : > { %6592 = vst [vmem:[#allocation26_spill] sm:$0xff] %v4896_v34 }
  0xb2   : > { %v506_v9 = vadd.f32 %v505_v58, %v504_v60  ;;  %v475_v58 = vmul.f32 %v4854_v10, %v4854_v10  ;;  %v521_v60 = vsel %vm6559_vm6, %v473_v37, 0.0  ;;  %6593 = vst [vmem:[#allocation27_spill] sm:$0xff] %v4903_v39  ;;  %v547_v12 = vsel %vm6559_vm6, %v486_v8, 0.0 }
  0xb3   : > { %6594 = vst [vmem:[#allocation28_spill] sm:$0xff] %v4910_v43 }
  0xb4   : > { %v508_v17 = vadd.f32 %v507_v0, %v506_v9  ;;  %v476_v0 = vmul.f32 %v4861_v14, %v4861_v14  ;;  %v523_v9 = vsel %vm6559_vm6, %v474_v16, 0.0  ;;  %6595 = vst [vmem:[#allocation29_spill] sm:$0xff] %v4917_v48 }
  0xb5   : > { %6596 = vst [vmem:[#allocation30_spill] sm:$0xff] %v4924_v52 }
  0xb6   : > { %v510_v24 = vadd.f32 %v509_v11, %v508_v17  ;;  %v477_v11 = vmul.f32 %v4868_v18, %v4868_v18  ;;  %v525_v17 = vsel %vm6559_vm6, %v475_v58, 0.0  ;;  %6597 = vst [vmem:[#allocation31_spill] sm:$0xff] %v4931_v57 }
  0xb7   : > { %6598 = vst [vmem:[#allocation32_spill] sm:$0xff] %v4938_v61 }
  0xb8   : > { %v512_v28 = vadd.f32 %v511_v21, %v510_v24  ;;  %v478_v21 = vmul.f32 %v4875_v23, %v4875_v23  ;;  %v527_v24 = vsel %vm6559_vm6, %v476_v0, 0.0 }
  0xba   : > { %v514_v36 = vadd.f32 %v513_v27, %v512_v28  ;;  %v479_v27 = vmul.f32 %v4882_v26, %v4882_v26  ;;  %v529_v28 = vsel %vm6559_vm6, %v477_v11, 0.0 }
  0xbc   : > { %v516_v54 = vadd.f32 %v515_v33, %v514_v36  ;;  %v480_v33 = vmul.f32 %v4889_v30, %v4889_v30  ;;  %v531_v36 = vsel %vm6559_vm6, %v478_v21, 0.0 }
  0xbe   : > { %v518_v55 = vadd.f32 %v517_v13, %v516_v54  ;;  %v481_v13 = vmul.f32 %v4896_v34, %v4896_v34  ;;  %v533_v54 = vsel %vm6559_vm6, %v479_v27, 0.0  ;;  %v487_v27 = vmul.f32 %v4938_v61, %v4938_v61 }
  0xc0   : > { %v520_v63 = vadd.f32 %v519_v22, %v518_v55  ;;  %v482_v22 = vmul.f32 %v4903_v39, %v4903_v39  ;;  %v535_v55 = vsel %vm6559_vm6, %v480_v33, 0.0  ;;  %v549_v33 = vsel %vm6559_vm6, %v487_v27, 0.0  ;;  %v4959_v27 = vld [vmem:[%s6551_s2] ss:$0 sm:$0xff] }
  0xc2   : > { %v522_v35 = vadd.f32 %v521_v60, %v520_v63  ;;  %v483_v60 = vmul.f32 %v4910_v43, %v4910_v43  ;;  %v537_v63 = vsel %vm6559_vm6, %v481_v13, 0.0 }
  0xc4   : > { %v524_v20 = vadd.f32 %v523_v9, %v522_v35  ;;  %v484_v9 = vmul.f32 %v4917_v48, %v4917_v48  ;;  %v539_v35 = vsel %vm6559_vm6, %v482_v22, 0.0 }
  0xc6   : > { %v526_v25 = vadd.f32 %v525_v17, %v524_v20  ;;  %v485_v17 = vmul.f32 %v4924_v52, %v4924_v52  ;;  %v541_v20 = vsel %vm6559_vm6, %v483_v60, 0.0 }
  0xc8   : > { %v528_v31 = vadd.f32 %v527_v24, %v526_v25  ;;  %v543_v24 = vsel %vm6559_vm6, %v484_v9, 0.0 }
  0xca   : > { %v530_v37 = vadd.f32 %v529_v28, %v528_v31  ;;  %v545_v28 = vsel %vm6559_vm6, %v485_v17, 0.0 }
  0xcc   : > { %v532_v16 = vadd.f32 %v531_v36, %v530_v37 }
  0xce   : > { %v534_v58 = vadd.f32 %v533_v54, %v532_v16 }
  0xd0   : > { %v536_v0 = vadd.f32 %v535_v55, %v534_v58 }
  0xd2   : > { %v538_v11 = vadd.f32 %v537_v63, %v536_v0 }
  0xd4   : > { %v540_v21 = vadd.f32 %v539_v35, %v538_v11 }
  0xd6   : > { %v542_v25 = vadd.f32 %v541_v20, %v540_v21  ;;  %v569_v21 = vld [vmem:[%s6550_s1] sm:$0x1] }
  0xd8   : > { %v544_v31 = vadd.f32 %v543_v24, %v542_v25 }
  0xda   : > { %v546_v40 = vadd.f32 %v545_v28, %v544_v31 }
  0xdc   : > { %v548_v36 = vadd.f32 %v547_v12, %v546_v40 }
  0xde   : > { %v550_v37 = vadd.f32 %v549_v33, %v548_v36 }
  0xe0   : > { %v551_v13 = vrot.slane %v550_v37, 4 }
  0xe2   : > { %v552_v54 = vadd.f32 %v551_v13, %v550_v37 }
  0xe4   : > { %v553_v16 = vrot.slane %v552_v54, 2 }
  0xe6   : > { %v554_v22 = vadd.f32 %v553_v16, %v552_v54 }
  0xe8   : > { %v555_v55 = vrot.slane %v554_v22, 1 }
  0xea   : > { %v556_v58 = vadd.f32 %v555_v55, %v554_v22 }
  0xec   : > { %v557_v60 = vmul.f32 0.00390625, %v556_v58 }
  0xee   : > { %v558_v63 = vadd.f32 1e-05, %v557_v60 }
  0xf0   : > { %3915 = vrsqrt.f32 %v558_v63  ;;  %vm565_vm7 = vweird.f32 %v558_v63 }
  0xf6   : > { %v3916_v0 = vpop.eup %3915 }
  0xf7   : > { %v560_v9 = vmul.f32 %v3916_v0, %v558_v63  ;;  %vm566_vm8 = vweird.f32 %v3916_v0 }
  0xf8   : > { %vm567_vm9 = vmor %vm565_vm7, %vm566_vm8 }
  0xf9   : > { %v561_v35 = vmul.f32 %v3916_v0, %v560_v9 }
  0xfb   : > { %v562_v11 = vmul.f32 0.5, %v561_v35 }
  0xfd   : > { %v563_v17 = vsub.f32 1.5, %v562_v11 }
  0xff   : > { %v564_v20 = vmul.f32 %v3916_v0, %v563_v17 }
 0x101   : > { %v568_v8 = vsel %vm567_vm9, %v3916_v0, %v564_v20 }
 0x102   : > { %v570_v24 = vmul.f32 %v569_v21, %v568_v8 }
 0x104   : > { %v4954_v25 = vperm.slane %v570_v24, 0 }
 0x106   : > { %v572_v28 = vmul.f32 %v4954_v25, %v4729_v42  ;;  %v573_v31 = vmul.f32 %v4954_v25, %v4733_v45  ;;  %v574_v12 = vmul.f32 %v4954_v25, %v4737_v46  ;;  %v575_v40 = vmul.f32 %v4954_v25, %v4741_v49 }
 0x107   : > { %v576_v33 = vmul.f32 %v4954_v25, %v4745_v51  ;;  %v577_v36 = vmul.f32 %v4954_v25, %v4755_v19  ;;  %v578_v37 = vmul.f32 %v4954_v25, %v4761_v29  ;;  %v579_v42 = vmul.f32 %v4954_v25, %v4770_v32 }
 0x108   : > { %v4978_v45 = vadd.f32 %v4959_v27, %v572_v28  ;;  %v4981_v46 = vadd.f32 %v4959_v27, %v573_v31  ;;  %v4984_v49 = vadd.f32 %v4959_v27, %v574_v12  ;;  %v4987_v51 = vadd.f32 %v4959_v27, %v575_v40 }
 0x109   : > { %v4990_v19 = vadd.f32 %v4959_v27, %v576_v33  ;;  %v4993_v29 = vadd.f32 %v4959_v27, %v577_v36  ;;  %v5000_v22 = vadd.f32 %v4959_v27, %v578_v37  ;;  %v5004_v58 = vadd.f32 %v4959_v27, %v579_v42 }
 0x10a   : > { %v3480_v32 = vmul.f32 -1.442695, %v4978_v45  ;;  %v3481_v13 = vmul.f32 -1.442695, %v4981_v46  ;;  %v3482_v54 = vmul.f32 -1.442695, %v4984_v49  ;;  %v580_v60 = vmul.f32 %v4954_v25, %v4777_v15 }
 0x10b   : > { %v3483_v16 = vmul.f32 -1.442695, %v4987_v51  ;;  %v3484_v55 = vmul.f32 -1.442695, %v4990_v19  ;;  %v3485_v63 = vmul.f32 -1.442695, %v4993_v29  ;;  %v581_v24 = vmul.f32 %v4954_v25, %v4784_v38 }
 0x10c   : > { %3917 = vpow2.f32 %v3480_v32  ;;  %v3486_v0 = vmul.f32 -1.442695, %v5000_v22  ;;  %v3487_v9 = vmul.f32 -1.442695, %v5004_v58  ;;  %v5012_v35 = vadd.f32 %v4959_v27, %v580_v60 }
 0x10d   : > { %3919 = vpow2.f32 %v3481_v13  ;;  %v5035_v13 = vadd.f32 %v4959_v27, %v581_v24 }
 0x10e   : > { %3921 = vpow2.f32 %v3482_v54  ;;  %v3488_v8 = vmul.f32 -1.442695, %v5012_v35 }
 0x10f   : > { %3923 = vpow2.f32 %v3483_v16 }
 0x110   : > { %3925 = vpow2.f32 %v3484_v55 }
 0x111   : > { %3927 = vpow2.f32 %v3485_v63 }
 0x112   : > { %v3918_v11 = vpop.eup %3917  ;;  %3929 = vpow2.f32 %v3486_v0 }
 0x113   : > { %v3920_v17 = vpop.eup %3919  ;;  %v5014_v20 = vadd.f32 1.0, %v3918_v11  ;;  %3931 = vpow2.f32 %v3487_v9 }
 0x114   : > { %v3922_v15 = vpop.eup %3921  ;;  %v5016_v21 = vadd.f32 1.0, %v3920_v17 }
 0x115   : > { %v3924_v28 = vpop.eup %3923  ;;  %3933 = vrcp.f32 %v5014_v20  ;;  %v779_v31 = vand.u32 2147483648, %v5014_v20  ;;  %v777_v40 = vand.u32 2147483647, %v5014_v20  ;;  %v5027_v42 = vadd.f32 1.0, %v3922_v15 }
 0x116   : > { %v3926_v12 = vpop.eup %3925  ;;  %3935 = vrcp.f32 %v5016_v21  ;;  %v792_v36 = vand.u32 2147483647, %v5016_v21  ;;  %v794_v37 = vand.u32 2147483648, %v5016_v21  ;;  %v5029_v32 = vadd.f32 1.0, %v3924_v28 }
 0x117   : > { %v3928_v33 = vpop.eup %3927  ;;  %vm773_vm10 = vweird.f32 %v5014_v20  ;;  %v5032_v38 = vadd.f32 1.0, %v3926_v12  ;;  %3937 = vpow2.f32 %v3488_v8  ;;  %v5037_v16 = vor.u32 1.1754944e-38, %v779_v31 }
 0x118   : > { %v3930_v54 = vpop.eup %3929  ;;  %vm788_vm11 = vweird.f32 %v5016_v21  ;;  %3939 = vrcp.f32 %v5027_v42  ;;  %v809_v55 = vand.u32 2147483648, %v5027_v42  ;;  %vm5042_vm12 = vcmp.eq.f32.partialorder %v777_v40, 8.507059e+37 }
 0x119   : > { %v3932_v60 = vpop.eup %3931  ;;  %v807_v0 = vand.u32 2147483647, %v5027_v42  ;;  %3941 = vrcp.f32 %v5029_v32  ;;  %v824_v9 = vand.u32 2147483648, %v5029_v32  ;;  %v5049_v11 = vadd.f32 1.0, %v3928_v33 }
 0x11a   : > { %vm5051_vm13 = vcmp.eq.f32.partialorder %v792_v36, 8.507059e+37  ;;  %v795_v8 = vor.u32 1.1754944e-38, %v794_v37  ;;  %v822_v24 = vand.u32 2147483647, %v5029_v32  ;;  %3943 = vrcp.f32 %v5032_v38 }
 0x11b   : > { %v3934_v17 = vpop.eup %3933  ;;  %vm803_vm14 = vweird.f32 %v5027_v42  ;;  %v5059_v12 = vor.u32 1.1754944e-38, %v809_v55  ;;  %v837_v33 = vand.u32 2147483647, %v5032_v38  ;;  %v839_v36 = vand.u32 2147483648, %v5032_v38 }
 0x11c   : > { %v3936_v28 = vpop.eup %3935  ;;  %v769_v31 = vmul.f32 %v3934_v17, %v5014_v20  ;;  %vm774_vm5 = vweird.f32 %v3934_v17  ;;  %vm5066_vm7 = vcmp.eq.f32.partialorder %v807_v0, 8.507059e+37  ;;  %v5070_v3 = vor.u32 1.1754944e-38, %v824_v9 }
 0x11d   : > { %v784_v40 = vmul.f32 %v3936_v28, %v5016_v21  ;;  %v3938_v37 = vpop.eup %3937  ;;  %3945 = vrcp.f32 %v5049_v11  ;;  %vm789_vm8 = vweird.f32 %v3936_v28  ;;  %vm5073_vm9 = vcmp.eq.f32.partialorder %v822_v24, 8.507059e+37  ;;  %vm5083_vm2 = vmor %vm773_vm10, %vm774_vm5 }
 0x11e   : > { %v770_v2 = vsub.f32 1.0, %v769_v31  ;;  %v3940_v55 = vpop.eup %3939  ;;  %v852_v61 = vand.u32 2147483647, %v5049_v11  ;;  %v854_v31 = vand.u32 2147483648, %v5049_v11  ;;  %v840_v9 = vor.u32 1.1754944e-38, %v839_v36  ;;  %vm5097_vm1 = vmor %vm788_vm11, %vm789_vm8 }
 0x11f   : > { %v785_v6 = vsub.f32 1.0, %v784_v40  ;;  %v3942_v57 = vpop.eup %3941  ;;  %v799_v52 = vmul.f32 %v3940_v55, %v5027_v42  ;;  %vm804_vm6 = vweird.f32 %v3940_v55  ;;  %vm5088_vm4 = vcmp.eq.f32.partialorder %v837_v33, 8.507059e+37 }
 0x120   : > { %v771_v0 = vmul.f32 %v3934_v17, %v770_v2  ;;  %v3944_v48 = vpop.eup %3943  ;;  %v814_v43 = vmul.f32 %v3942_v57, %v5029_v32  ;;  %vm819_vm0 = vweird.f32 %v3942_v57  ;;  %v5092_v2 = vor.u32 1.1754944e-38, %v854_v31  ;;  %vm5121_vm11 = vmor %vm803_vm14, %vm804_vm6 }
 0x121   : > { %v786_v24 = vmul.f32 %v3936_v28, %v785_v6  ;;  %v800_v36 = vsub.f32 1.0, %v799_v52  ;;  %v829_v6 = vmul.f32 %v3944_v48, %v5032_v38  ;;  %vm834_vm10 = vweird.f32 %v3944_v48 }
 0x122   : > { %v772_v34 = vadd.f32 %v3934_v17, %v771_v0  ;;  %vm848_vm5 = vweird.f32 %v5049_v11  ;;  %v815_v30 = vsub.f32 1.0, %v814_v43  ;;  %v5103_v26 = vadd.f32 1.0, %v3930_v54 }
 0x123   : > { %v787_v33 = vadd.f32 %v3936_v28, %v786_v24  ;;  %v5105_v31 = vadd.f32 1.0, %v3932_v60  ;;  %v5107_v0 = vpop.eup %3945  ;;  %v801_v23 = vmul.f32 %v3940_v55, %v800_v36  ;;  %v830_v18 = vsub.f32 1.0, %v829_v6 }
 0x124   : > { %v776_v21 = vsel %vm5083_vm2, %v3934_v17, %v772_v34  ;;  %v5111_v52 = vadd.f32 1.0, %v3938_v37  ;;  %v816_v60 = vmul.f32 %v3942_v57, %v815_v30  ;;  %v844_v34 = vmul.f32 %v5107_v0, %v5049_v11 }
 0x125   : > { %v781_v14 = vsel %vm5042_vm12, %v5037_v16, %v776_v21  ;;  %v791_v43 = vsel %vm5097_vm1, %v3936_v28, %v787_v33  ;;  %v802_v16 = vadd.f32 %v3940_v55, %v801_v23  ;;  %vm6615_vm2 = vweird.f32 %v5029_v32 }
 0x126   : > { %v1248_v17 = vmul.f32 %v781_v14, %v4978_v45  ;;  %v796_v63 = vsel %vm5051_vm13, %v795_v8, %v791_v43  ;;  %vm5133_vm12 = vmor %vm6615_vm2, %vm819_vm0  ;;  %v831_v42 = vmul.f32 %v3944_v48, %v830_v18  ;;  %vm5137_vm6 = vcmp.eq.f32.partialorder %v852_v61, 8.507059e+37 }
 0x127   : > { %v1249_v30 = vmul.f32 %v796_v63, %v4981_v46  ;;  %v817_v40 = vadd.f32 %v3942_v57, %v816_v60  ;;  %v845_v14 = vsub.f32 1.0, %v844_v34  ;;  %vm849_vm14 = vweird.f32 %v5107_v0  ;;  %v1763_v34 = vld [vmem:[#allocation2 + $0x14] sm:$0x1] }
 0x128   : > { %v1402_v45 = vpack.c.bf16 %v1248_v17, %v1248_v17  ;;  %v806_v23 = vsel %vm5121_vm11, %v3940_v55, %v802_v16  ;;  %v832_v32 = vadd.f32 %v3944_v48, %v831_v42  ;;  %vm6620_vm0 = vweird.f32 %v5032_v38 }
 0x129   : > { %vm5148_vm13 = vmor %vm6620_vm0, %vm834_vm10  ;;  %3947 = vrcp.f32 %v5103_v26  ;;  %v1403_v61 = vpack.c.bf16 %v1249_v30, %v1249_v30  ;;  %v811_v46 = vsel %vm5066_vm7, %v5059_v12, %v806_v23  ;;  %v821_v15 = vsel %vm5133_vm12, %v3942_v57, %v817_v40 }
 0x12a   : > { %v846_v8 = vmul.f32 %v5107_v0, %v845_v14  ;;  %v1437_v55 = vshrl.u32 %v1402_v45, 16  ;;  %v1440_v24 = vshll.u32 %v1402_v45, 16  ;;  %v1250_v38 = vmul.f32 %v811_v46, %v4984_v49  ;;  %v1766_v14 = vld [vmem:[#allocation2 + $0x18] sm:$0xf]  ;;  %v1770_v46 = vld [vmem:[#allocation2 + $0x20] sm:$0x1] }
 0x12b   : > { %v826_v20 = vsel %vm5073_vm9, %v5070_v3, %v821_v15  ;;  %v1445_v36 = vshrl.u32 %v1403_v61, 16  ;;  %v1448_v6 = vshll.u32 %v1403_v61, 16  ;;  %v836_v4 = vsel %vm5148_vm13, %v3944_v48, %v832_v32  ;;  %vm5180_vm9 = vmor %vm848_vm5, %vm849_vm14 }
 0x12c   : > { %v1251_v33 = vmul.f32 %v826_v20, %v4987_v51  ;;  %vm6623_vm1 = vsmask.f32 7938  ;;  %vm6624_vm7 = vcmask 257024   ;;  %v1439_v12 = vrot.slane %v1437_v55, 7 }
 0x12d   : > { %vm5168_vm8 = vmand %vm6624_vm7, %vm6623_vm1  ;;  %v1404_v21 = vpack.c.bf16 %v1250_v38, %v1250_v38  ;;  %v841_v49 = vsel %vm5088_vm4, %v840_v9, %v836_v4  ;;  %v847_v3 = vadd.f32 %v5107_v0, %v846_v8  ;;  %v1447_v43 = vrot.slane %v1445_v36, 7 }
 0x12e   : > { %v1405_v54 = vpack.c.bf16 %v1251_v33, %v1251_v33  ;;  %v1252_v51 = vmul.f32 %v841_v49, %v4990_v19  ;;  %vm863_vm10 = vweird.f32 %v5103_v26  ;;  %v1442_v39 = vor.u32 %v1440_v24, %v1439_v12  ;;  %vm6633_vm2 = vmmov %vm6624_vm7 }
 0x12f   : > { %v5185_v60 = vpop.eup %3947  ;;  %vm6629_vm4 = vsmask.f32 256  ;;  %v1443_v19 = vrot.slane %v1439_v12, 4  ;;  %v1454_v17 = vshrl.u32 %v1404_v21, 16  ;;  %v1457_v63 = vshll.u32 %v1404_v21, 16  ;;  %vm6638_vm1 = vmmov %vm6633_vm2 }
 0x130   : > { %vm5189_vm11 = vmor %vm6629_vm4, %vm1434_vm15  ;;  %v1450_v11 = vor.u32 %v1448_v6, %v1447_v43  ;;  %v1452_v16 = vrot.slane %v1447_v43, 4  ;;  %v1462_v28 = vshrl.u32 %v1405_v54, 16  ;;  %v1465_v42 = vshll.u32 %v1405_v54, 16  ;;  %v1773_v21 = vld [vmem:[#allocation2 + $0x24] sm:$0xf] }
 0x131   : > { %v1760_v30 = vsel %vm5168_vm8, %v1442_v39, %v1759_v5  ;;  %v1456_v40 = vrot.slane %v1454_v17, 7  ;;  %v1406_v45 = vpack.c.bf16 %v1252_v51, %v1252_v51  ;;  %v851_v23 = vsel %vm5180_vm9, %v5107_v0, %v847_v3  ;;  %vm6632_vm15 = vmmov %vm6624_vm7 }
 0x132   : > { %1761 = vst [vmem:[#allocation2 + $0xc] sm:$0xf] %v1760_v30  ;;  %v1451_v32 = vsel %vm5189_vm11, %v1443_v19, %v1450_v11  ;;  %v1764_v18 = vsel %vm4472_vm3, %v1452_v16, %v1763_v34  ;;  %v1464_v61 = vrot.slane %v1462_v28, 7  ;;  %v856_v15 = vsel %vm5137_vm6, %v5092_v2, %v851_v23  ;;  %v1777_v28 = vld [vmem:[#allocation2 + $0x2c] sm:$0x1] }
 0x133   : > { %1762 = vst.msk [vmem:[#allocation2 + $0x10] sm:$0xf] %vm6632_vm15, %v1451_v32  ;;  %v1459_v8 = vor.u32 %v1457_v63, %v1456_v40  ;;  %v1460_v55 = vrot.slane %v1456_v40, 4  ;;  %v1471_v24 = vshrl.u32 %v1406_v45, 16  ;;  %v1474_v38 = vshll.u32 %v1406_v45, 16 }
 0x134   : > { %1765 = vst [vmem:[#allocation2 + $0x14] sm:$0x1] %v1764_v18  ;;  %v1467_v0 = vor.u32 %v1465_v42, %v1464_v61  ;;  %v1469_v20 = vrot.slane %v1464_v61, 4  ;;  %v1253_v36 = vmul.f32 %v856_v15, %v4993_v29  ;;  %v859_v6 = vmul.f32 %v5185_v60, %v5103_v26 }
 0x135   : > { %v1767_v33 = vsel %vm5168_vm8, %v1459_v8, %v1766_v14  ;;  %v1473_v4 = vrot.slane %v1471_v24, 7  ;;  %vm864_vm5 = vweird.f32 %v5185_v60  ;;  %v867_v2 = vand.u32 2147483647, %v5103_v26 }
 0x136   : > { %1768 = vst [vmem:[#allocation2 + $0x18] sm:$0xf] %v1767_v33  ;;  %v1468_v37 = vsel %vm5189_vm11, %v1460_v55, %v1467_v0  ;;  %v1771_v12 = vsel %vm4472_vm3, %v1469_v20, %v1770_v46  ;;  %v1407_v29 = vpack.c.bf16 %v1253_v36, %v1253_v36  ;;  %v860_v49 = vsub.f32 1.0, %v859_v6  ;;  %vm5228_vm12 = vmor %vm863_vm10, %vm864_vm5 }
 0x137   : > { %1769 = vst.msk [vmem:[#allocation2 + $0x1c] sm:$0xf] %vm6633_vm2, %v1468_v37  ;;  %v1476_v3 = vor.u32 %v1474_v38, %v1473_v4  ;;  %v869_v5 = vand.u32 2147483648, %v5103_v26  ;;  %v3489_v43 = vmul.f32 -1.442695, %v5035_v13  ;;  %3949 = vrcp.f32 %v5105_v31 }
 0x138   : > { %1772 = vst [vmem:[#allocation2 + $0x20] sm:$0x1] %v1771_v12  ;;  %v1479_v54 = vshrl.u32 %v1407_v29, 16  ;;  %v1482_v51 = vshll.u32 %v1407_v29, 16  ;;  %v861_v48 = vmul.f32 %v5185_v60, %v860_v49  ;;  %v1477_v19 = vrot.slane %v1473_v4, 4 }
 0x139   : > { %v1774_v39 = vsel %vm5168_vm8, %v1476_v3, %v1773_v21  ;;  %v870_v17 = vor.u32 1.1754944e-38, %v869_v5  ;;  %v882_v63 = vand.u32 2147483647, %v5105_v31  ;;  %vm868_vm6 = vcmp.eq.f32.partialorder %v867_v2, 8.507059e+37 }
 0x13a   : > { %1775 = vst [vmem:[#allocation2 + $0x24] sm:$0xf] %v1774_v39  ;;  %v1481_v11 = vrot.slane %v1479_v54, 7  ;;  %v862_v16 = vadd.f32 %v5185_v60, %v861_v48  ;;  %3951 = vrcp.f32 %v5111_v52  ;;  %vm878_vm14 = vweird.f32 %v5105_v31  ;;  %v1780_v54 = vld [vmem:[#allocation2 + $0x30] sm:$0xf] }
 0x13b   : > { %v884_v42 = vand.u32 2147483648, %v5105_v31  ;;  %vm893_vm0 = vweird.f32 %v5111_v52  ;;  %vm5241_vm13 = vcmp.eq.f32.partialorder %v882_v63, 8.507059e+37  ;;  %v897_v23 = vand.u32 2147483647, %v5111_v52 }
 0x13c   : > { %v1484_v26 = vor.u32 %v1482_v51, %v1481_v11  ;;  %v1486_v30 = vrot.slane %v1481_v11, 4  ;;  %v866_v40 = vsel %vm5228_vm12, %v5185_v60, %v862_v16  ;;  %v899_v32 = vand.u32 2147483648, %v5111_v52 }
 0x13d   : > { %v871_v14 = vsel %vm868_vm6, %v870_v17, %v866_v40  ;;  %3953 = vpow2.f32 %v3489_v43  ;;  %v3950_v18 = vpop.eup %3949  ;;  %v582_v15 = vmul.f32 %v4954_v25, %v4791_v41  ;;  %v885_v55 = vor.u32 1.1754944e-38, %v884_v42 }
 0x13e   : > { %v1485_v61 = vsel %vm5189_vm11, %v1477_v19, %v1484_v26  ;;  %v1778_v46 = vsel %vm4472_vm3, %v1486_v30, %v1777_v28  ;;  %v1254_v60 = vmul.f32 %v871_v14, %v5000_v22  ;;  %v874_v8 = vmul.f32 %v3950_v18, %v5105_v31 }
 0x13f   : > { %1776 = vst.msk [vmem:[#allocation2 + $0x28] sm:$0xf] %vm6638_vm1, %v1485_v61  ;;  %v583_v24 = vmul.f32 %v4954_v25, %v4798_v44  ;;  %v584_v38 = vmul.f32 %v4954_v25, %v4805_v47  ;;  %vm879_vm7 = vweird.f32 %v3950_v18  ;;  %v5261_v22 = vadd.f32 %v4959_v27, %v582_v15 }
 0x140   : > { %v3952_v0 = vpop.eup %3951  ;;  %1779 = vst [vmem:[#allocation2 + $0x2c] sm:$0x1] %v1778_v46  ;;  %v1408_v20 = vpack.c.bf16 %v1254_v60, %v1254_v60  ;;  %v585_v41 = vmul.f32 %v4954_v25, %v4812_v50  ;;  %v875_v36 = vsub.f32 1.0, %v874_v8  ;;  %vm5282_vm10 = vmor %vm878_vm14, %vm879_vm7  ;;  %v586_v43 = vmul.f32 %v4954_v25, %v4819_v53 }
 0x141   : > { %v889_v6 = vmul.f32 %v3952_v0, %v5111_v52  ;;  %vm894_vm9 = vweird.f32 %v3952_v0  ;;  %v5267_v33 = vadd.f32 %v4959_v27, %v583_v24  ;;  %v3490_v47 = vmul.f32 -1.442695, %v5261_v22 }
 0x142   : > { %v1488_v44 = vshrl.u32 %v1408_v20, 16  ;;  %v1491_v4 = vshll.u32 %v1408_v20, 16  ;;  %v5271_v2 = vadd.f32 %v4959_v27, %v584_v38  ;;  %v876_v12 = vmul.f32 %v3950_v18, %v875_v36  ;;  %vm5295_vm4 = vmor %vm893_vm0, %vm894_vm9 }
 0x143   : > { %v3954_v37 = vpop.eup %3953  ;;  %v890_v21 = vsub.f32 1.0, %v889_v6  ;;  %v3491_v29 = vmul.f32 -1.442695, %v5267_v33  ;;  %v5275_v50 = vadd.f32 %v4959_v27, %v585_v41  ;;  %3955 = vpow2.f32 %v3490_v47  ;;  %v1784_v47 = vld [vmem:[#allocation2 + $0x38] sm:$0x1] }
 0x144   : > { %v5277_v49 = vrot.slane %v1488_v44, 7  ;;  %v5286_v5 = vadd.f32 1.0, %v3954_v37  ;;  %v877_v51 = vadd.f32 %v3950_v18, %v876_v12  ;;  %v3492_v39 = vmul.f32 -1.442695, %v5271_v2 }
 0x145   : > { %v891_v48 = vmul.f32 %v3952_v0, %v890_v21  ;;  %3957 = vpow2.f32 %v3491_v29  ;;  %v900_v34 = vor.u32 1.1754944e-38, %v899_v32  ;;  %vm898_vm15 = vcmp.eq.f32.partialorder %v897_v23, 8.507059e+37 }
 0x146   : > { %v1493_v19 = vor.u32 %v1491_v4, %v5277_v49  ;;  %3959 = vrcp.f32 %v5286_v5  ;;  %v881_v53 = vsel %vm5282_vm10, %v3950_v18, %v877_v51  ;;  %v3493_v63 = vmul.f32 -1.442695, %v5275_v50  ;;  %v1787_v51 = vld [vmem:[#allocation2 + $0x3c] sm:$0xf] }
 0x147   : > { %v892_v17 = vadd.f32 %v3952_v0, %v891_v48  ;;  %v886_v52 = vsel %vm5241_vm13, %v885_v55, %v881_v53  ;;  %v912_v16 = vand.u32 2147483647, %v5286_v5  ;;  %v5309_v28 = vadd.f32 %v4959_v27, %v586_v43  ;;  %vm6649_vm13 = vmmov %vm6638_vm1 }
 0x148   : > { %v1781_v11 = vsel %vm5168_vm8, %v1493_v19, %v1780_v54  ;;  %v1255_v42 = vmul.f32 %v886_v52, %v5004_v58  ;;  %v1494_v26 = vrot.slane %v5277_v49, 4  ;;  %3961 = vpow2.f32 %v3492_v39 }
 0x149   : > { %1782 = vst [vmem:[#allocation2 + $0x30] sm:$0xf] %v1781_v11  ;;  %v896_v30 = vsel %vm5295_vm4, %v3952_v0, %v892_v17  ;;  %v3956_v40 = vpop.eup %3955  ;;  %vm908_vm5 = vweird.f32 %v5286_v5  ;;  %v914_v45 = vand.u32 2147483648, %v5286_v5  ;;  %v3494_v23 = vmul.f32 -1.442695, %v5309_v28 }
 0x14a   : > { %v901_v14 = vsel %vm898_vm15, %v900_v34, %v896_v30  ;;  %v1409_v18 = vpack.c.bf16 %v1255_v42, %v1255_v42  ;;  %v5319_v46 = vadd.f32 1.0, %v3956_v40  ;;  %3963 = vpow2.f32 %v3493_v63 }
 0x14b   : > { %v3958_v32 = vpop.eup %3957  ;;  %v1256_v61 = vmul.f32 %v901_v14, %v5012_v35  ;;  %vm5321_vm2 = vcmp.eq.f32.partialorder %v912_v16, 8.507059e+37  ;;  %3965 = vpow2.f32 %v3494_v23  ;;  %v587_v8 = vmul.f32 %v4954_v25, %v4826_v56 }
 0x14c   : > { %v3960_v58 = vpop.eup %3959  ;;  %v5325_v15 = vadd.f32 1.0, %v3958_v32  ;;  %v1496_v55 = vshrl.u32 %v1409_v18, 16  ;;  %v1499_v24 = vshll.u32 %v1409_v18, 16  ;;  %v915_v35 = vor.u32 1.1754944e-38, %v914_v45 }
 0x14d   : > { %v1410_v38 = vpack.c.bf16 %v1256_v61, %v1256_v61  ;;  %v904_v0 = vmul.f32 %v3960_v58, %v5286_v5  ;;  %vm909_vm12 = vweird.f32 %v3960_v58  ;;  %3967 = vrcp.f32 %v5319_v46 }
 0x14e   : > { %v927_v20 = vand.u32 2147483647, %v5319_v46  ;;  %v3962_v41 = vpop.eup %3961  ;;  %v1498_v36 = vrot.slane %v1496_v55, 7  ;;  %v929_v37 = vand.u32 2147483648, %v5319_v46  ;;  %3969 = vrcp.f32 %v5325_v15  ;;  %vm5346_vm6 = vmor %vm908_vm5, %vm909_vm12 }
 0x14f   : > { %v1505_v6 = vshrl.u32 %v1410_v38, 16  ;;  %v1508_v44 = vshll.u32 %v1410_v38, 16  ;;  %v905_v4 = vsub.f32 1.0, %v904_v0  ;;  %v5335_v56 = vadd.f32 %v4959_v27, %v587_v8 }
 0x150   : > { %v5339_v12 = vmul.f32 %v4954_v25, %v4833_v59  ;;  %v3964_v21 = vpop.eup %3963  ;;  %v1501_v29 = vor.u32 %v1499_v24, %v1498_v36  ;;  %v1503_v49 = vrot.slane %v1498_v36, 4  ;;  %vm923_vm14 = vweird.f32 %v5319_v46 }
 0x151   : > { %v5341_v3 = vrot.slane %v1505_v6, 7  ;;  %v906_v43 = vmul.f32 %v3960_v58, %v905_v4  ;;  %v3966_v54 = vpop.eup %3965  ;;  %v942_v59 = vand.u32 2147483647, %v5325_v15  ;;  %v5352_v39 = vadd.f32 1.0, %v3962_v41 }
 0x152   : > { %v5356_v19 = vmul.f32 %v4954_v25, %v4840_v62  ;;  %v1502_v31 = vsel %vm5189_vm11, %v1494_v26, %v1501_v29  ;;  %v1785_v5 = vsel %vm4472_vm3, %v1503_v49, %v1784_v47  ;;  %vm5363_vm0 = vcmp.eq.f32.partialorder %v927_v20, 8.507059e+37 }
 0x153   : > { %v1510_v34 = vor.u32 %v1508_v44, %v5341_v3  ;;  %v907_v53 = vadd.f32 %v3960_v58, %v906_v43  ;;  %v3968_v63 = vpop.eup %3967  ;;  %1783 = vst.msk [vmem:[#allocation2 + $0x34] sm:$0xf] %vm6649_vm13, %v1502_v31  ;;  %v930_v11 = vor.u32 1.1754944e-38, %v929_v37  ;;  %vm938_vm1 = vweird.f32 %v5325_v15  ;;  %v1791_v43 = vld [vmem:[#allocation2 + $0x44] sm:$0x1] }
 0x154   : > { %v944_v62 = vand.u32 2147483648, %v5325_v15  ;;  %3971 = vrcp.f32 %v5352_v39  ;;  %1786 = vst [vmem:[#allocation2 + $0x38] sm:$0x1] %v1785_v5  ;;  %v1511_v42 = vrot.slane %v5341_v3, 4  ;;  %v919_v26 = vmul.f32 %v3968_v63, %v5319_v46  ;;  %v3970_v30 = vpop.eup %3969 }
 0x155   : > { %v1788_v52 = vsel %vm5168_vm8, %v1510_v34, %v1787_v51  ;;  %v911_v16 = vsel %vm5346_vm6, %v3960_v58, %v907_v53  ;;  %vm5379_vm7 = vcmp.eq.f32.partialorder %v942_v59, 8.507059e+37  ;;  %v957_v45 = vand.u32 2147483647, %v5352_v39 }
 0x156   : > { %1789 = vst [vmem:[#allocation2 + $0x3c] sm:$0xf] %v1788_v52  ;;  %v916_v40 = vsel %vm5321_vm2, %v915_v35, %v911_v16  ;;  %v959_v23 = vand.u32 2147483648, %v5352_v39  ;;  %v920_v18 = vsub.f32 1.0, %v919_v26  ;;  %vm924_vm9 = vweird.f32 %v3968_v63 }
 0x157   : > { %v1257_v32 = vmul.f32 %v916_v40, %v5035_v13  ;;  %v934_v61 = vmul.f32 %v3970_v30, %v5325_v15  ;;  %vm939_vm10 = vweird.f32 %v3970_v30  ;;  %v945_v58 = vor.u32 1.1754944e-38, %v944_v62  ;;  %vm5394_vm15 = vmor %vm923_vm14, %vm924_vm9 }
 0x158   : > { %vm953_vm4 = vweird.f32 %v5352_v39  ;;  %v5388_v60 = vadd.f32 1.0, %v3964_v21  ;;  %v921_v55 = vmul.f32 %v3968_v63, %v920_v18  ;;  %v5390_v38 = vadd.f32 1.0, %v3966_v54  ;;  %vm5408_vm2 = vmor %vm938_vm1, %vm939_vm10 }
 0x159   : > { %v1411_v8 = vpack.c.bf16 %v1257_v32, %v1257_v32  ;;  %v935_v24 = vsub.f32 1.0, %v934_v61  ;;  %vm5398_vm5 = vcmp.eq.f32.partialorder %v957_v45, 8.507059e+37  ;;  %v960_v20 = vor.u32 1.1754944e-38, %v959_v23 }
 0x15a   : > { %v3972_v0 = vpop.eup %3971  ;;  %3973 = vrcp.f32 %v5388_v60  ;;  %v974_v41 = vand.u32 2147483648, %v5388_v60  ;;  %v3495_v36 = vmul.f32 -1.442695, %v5335_v56  ;;  %v922_v4 = vadd.f32 %v3968_v63, %v921_v55 }
 0x15b   : > { %v1513_v6 = vshrl.u32 %v1411_v8, 16  ;;  %v1516_v44 = vshll.u32 %v1411_v8, 16  ;;  %v936_v47 = vmul.f32 %v3970_v30, %v935_v24  ;;  %v949_v37 = vmul.f32 %v3972_v0, %v5352_v39 }
 0x15c   : > { %vm954_vm12 = vweird.f32 %v3972_v0  ;;  %vm968_vm6 = vweird.f32 %v5388_v60  ;;  %v972_v21 = vand.u32 2147483647, %v5388_v60  ;;  %v926_v49 = vsel %vm5394_vm15, %v3968_v63, %v922_v4 }
 0x15d   : > { %v1515_v29 = vrot.slane %v1513_v6, 7  ;;  %v937_v3 = vadd.f32 %v3970_v30, %v936_v47  ;;  %3975 = vrcp.f32 %v5390_v38  ;;  %v931_v15 = vsel %vm5363_vm0, %v930_v11, %v926_v49  ;;  %vm5442_vm13 = vmor %vm953_vm4, %vm954_vm12 }
 0x15e   : > { %v950_v54 = vsub.f32 1.0, %v949_v37  ;;  %v5420_v51 = vor.u32 1.1754944e-38, %v974_v41  ;;  %v987_v48 = vand.u32 2147483647, %v5390_v38  ;;  %v1258_v5 = vmul.f32 %v931_v15, %v5261_v22  ;;  %v1794_v41 = vld [vmem:[#allocation2 + $0x48] sm:$0xf] }
 0x15f   : > { %v1518_v59 = vor.u32 %v1516_v44, %v1515_v29  ;;  %v1520_v31 = vrot.slane %v1515_v29, 4  ;;  %v941_v34 = vsel %vm5408_vm2, %v3970_v30, %v937_v3  ;;  %vm5428_vm14 = vcmp.eq.f32.partialorder %v972_v21, 8.507059e+37 }
 0x160   : > { %v3974_v53 = vpop.eup %3973  ;;  %v946_v63 = vsel %vm5379_vm7, %v945_v58, %v941_v34  ;;  %v951_v62 = vmul.f32 %v3972_v0, %v950_v54  ;;  %vm983_vm0 = vweird.f32 %v5390_v38  ;;  %v989_v11 = vand.u32 2147483648, %v5390_v38 }
 0x161   : > { %v1519_v52 = vsel %vm5189_vm11, %v1511_v42, %v1518_v59  ;;  %v1792_v22 = vsel %vm4472_vm3, %v1520_v31, %v1791_v43  ;;  %v1412_v16 = vpack.c.bf16 %v1258_v5, %v1258_v5  ;;  %v1259_v26 = vmul.f32 %v946_v63, %v5267_v33 }
 0x162   : > { %vm6662_vm1 = vcmask 257024   ;;  %v952_v40 = vadd.f32 %v3972_v0, %v951_v62  ;;  %v964_v14 = vmul.f32 %v3974_v53, %v5388_v60  ;;  %vm969_vm7 = vweird.f32 %v3974_v53  ;;  %1793 = vst [vmem:[#allocation2 + $0x44] sm:$0x1] %v1792_v22 }
 0x163   : > { %1790 = vst.msk [vmem:[#allocation2 + $0x40] sm:$0xf] %vm6662_vm1, %v1519_v52  ;;  %vm5448_vm9 = vcmp.eq.f32.partialorder %v987_v48, 8.507059e+37  ;;  %v990_v45 = vor.u32 1.1754944e-38, %v989_v11  ;;  %v3976_v23 = vpop.eup %3975  ;;  %v1522_v33 = vshrl.u32 %v1412_v16, 16  ;;  %v1525_v32 = vshll.u32 %v1412_v16, 16  ;;  %vm5465_vm4 = vmor %vm968_vm6, %vm969_vm7 }
 0x164   : > { %v1413_v39 = vpack.c.bf16 %v1259_v26, %v1259_v26  ;;  %3977 = vpow2.f32 %v3495_v36  ;;  %v956_v18 = vsel %vm5442_vm13, %v3972_v0, %v952_v40  ;;  %v965_v61 = vsub.f32 1.0, %v964_v14  ;;  %v1801_v52 = vld [vmem:[#allocation2 + $0x54] sm:$0xf]  ;;  %vm6671_vm6 = vmmov %vm6662_vm1 }
 0x165   : > { %v979_v58 = vmul.f32 %v3976_v23, %v5390_v38  ;;  %vm984_vm10 = vweird.f32 %v3976_v23  ;;  %v1524_v8 = vrot.slane %v1522_v33, 7  ;;  %v961_v13 = vsel %vm5398_vm5, %v960_v20, %v956_v18  ;;  %vm6669_vm5 = vmmov %vm6662_vm1 }
 0x166   : > { %v1530_v55 = vshrl.u32 %v1413_v39, 16  ;;  %v1533_v24 = vshll.u32 %v1413_v39, 16  ;;  %v1260_v6 = vmul.f32 %v961_v13, %v5271_v2  ;;  %v966_v44 = vmul.f32 %v3974_v53, %v965_v61  ;;  %v1798_v2 = vld [vmem:[#allocation2 + $0x50] sm:$0x1]  ;;  %vm5479_vm15 = vmor %vm983_vm0, %vm984_vm10 }
 0x167   : > { %v980_v4 = vsub.f32 1.0, %v979_v58  ;;  %v5460_v36 = vadd.f32 %v4959_v27, %v5339_v12  ;;  %v1527_v0 = vor.u32 %v1525_v32, %v1524_v8  ;;  %v1528_v47 = vrot.slane %v1524_v8, 4  ;;  %v1805_v8 = vld [vmem:[#allocation2 + $0x5c] sm:$0x1] }
 0x168   : > { %v1532_v46 = vrot.slane %v1530_v55, 7  ;;  %v5471_v35 = vadd.f32 %v4959_v27, %v5356_v19  ;;  %v1414_v20 = vpack.c.bf16 %v1260_v6, %v1260_v6  ;;  %v967_v21 = vadd.f32 %v3974_v53, %v966_v44 }
 0x169   : > { %v981_v29 = vmul.f32 %v3976_v23, %v980_v4  ;;  %v3496_v12 = vmul.f32 -1.442695, %v5460_v36  ;;  %v1795_v3 = vsel %vm5168_vm8, %v1527_v0, %v1794_v41  ;;  %v590_v17 = vmul.f32 %v4954_v25, %v4847_v7 }
 0x16a   : > { %v3978_v49 = vpop.eup %3977  ;;  %v1535_v43 = vor.u32 %v1533_v24, %v1532_v46  ;;  %v1537_v60 = vrot.slane %v1532_v46, 4  ;;  %v3497_v19 = vmul.f32 -1.442695, %v5471_v35  ;;  %1796 = vst [vmem:[#allocation2 + $0x48] sm:$0xf] %v1795_v3  ;;  %v1539_v54 = vshrl.u32 %v1414_v20, 16 }
 0x16b   : > { %v1542_v48 = vshll.u32 %v1414_v20, 16  ;;  %v971_v59 = vsel %vm5465_vm4, %v3974_v53, %v967_v21  ;;  %v982_v31 = vadd.f32 %v3976_v23, %v981_v29  ;;  %v751_v63 = vadd.f32 1.0, %v3978_v49 }
 0x16c   : > { %v1536_v5 = vsel %vm5189_vm11, %v1528_v47, %v1535_v43  ;;  %v1799_v34 = vsel %vm4472_vm3, %v1537_v60, %v1798_v2  ;;  %v976_v38 = vsel %vm5428_vm14, %v5420_v51, %v971_v59  ;;  %v1541_v62 = vrot.slane %v1539_v54, 7  ;;  %v1808_v47 = vld [vmem:[#allocation2 + $0x60] sm:$0xf] }
 0x16d   : > { %1797 = vst.msk [vmem:[#allocation2 + $0x4c] sm:$0xf] %vm6669_vm5, %v1536_v5  ;;  %v1261_v11 = vmul.f32 %v976_v38, %v5275_v50  ;;  %v986_v53 = vsel %vm5479_vm15, %v3976_v23, %v982_v31  ;;  %3979 = vpow2.f32 %v3496_v12  ;;  %vm998_vm2 = vweird.f32 %v751_v63 }
 0x16e   : > { %1800 = vst [vmem:[#allocation2 + $0x50] sm:$0x1] %v1799_v34  ;;  %v991_v22 = vsel %vm5448_vm9, %v990_v45, %v986_v53  ;;  %3981 = vrcp.f32 %v751_v63  ;;  %v1544_v16 = vor.u32 %v1542_v48, %v1541_v62  ;;  %v1002_v23 = vand.u32 2147483647, %v751_v63 }
 0x16f   : > { %v1415_v26 = vpack.c.bf16 %v1261_v11, %v1261_v11  ;;  %v1262_v51 = vmul.f32 %v991_v22, %v5309_v28  ;;  %3983 = vpow2.f32 %v3497_v19  ;;  %v5505_v42 = vadd.f32 %v4959_v27, %v590_v17  ;;  %v6670_v28 = vld [vmem:[#allocation21_spill] sm:$0xff]  ;;  %v5561_v11 = vld [vmem:[%s6551_s2] ss:$0 sm:$0xff] }
 0x170   : > { %v1802_v50 = vsel %vm5168_vm8, %v1544_v16, %v1801_v52  ;;  %v591_v45 = vmul.f32 %v4954_v25, %v4854_v10  ;;  %v592_v33 = vmul.f32 %v4954_v25, %v6670_v28  ;;  %v1545_v39 = vrot.slane %v1541_v62, 4  ;;  %v6679_v52 = vld [vmem:[#allocation23_spill] sm:$0xff]  ;;  %v6680_v17 = vld [vmem:[#allocation24_spill] sm:$0xff] }
 0x171   : > { %v1547_v30 = vshrl.u32 %v1415_v26, 16  ;;  %v1550_v40 = vshll.u32 %v1415_v26, 16  ;;  %v1416_v14 = vpack.c.bf16 %v1262_v51, %v1262_v51  ;;  %1803 = vst [vmem:[#allocation2 + $0x54] sm:$0xf] %v1802_v50  ;;  %v1004_v55 = vand.u32 2147483648, %v751_v63 }
 0x172   : > { %v3498_v13 = vmul.f32 -1.442695, %v5505_v42  ;;  %v5515_v41 = vadd.f32 %v4959_v27, %v591_v45  ;;  %v5522_v37 = vadd.f32 %v4959_v27, %v592_v33  ;;  %vm5530_vm14 = vcmp.eq.f32.partialorder %v1002_v23, 8.507059e+37  ;;  %v6674_v27 = vld [vmem:[#allocation22_spill] sm:$0xff] }
 0x173   : > { %v3980_v32 = vpop.eup %3979  ;;  %v1549_v7 = vrot.slane %v1547_v30, 7  ;;  %v1556_v18 = vshrl.u32 %v1416_v14, 16  ;;  %v1559_v61 = vshll.u32 %v1416_v14, 16  ;;  %v593_v43 = vmul.f32 %v4954_v25, %v6674_v27 }
 0x174   : > { %v3982_v58 = vpop.eup %3981  ;;  %v5511_v24 = vadd.f32 1.0, %v3980_v32  ;;  %v3499_v19 = vmul.f32 -1.442695, %v5515_v41  ;;  %v1005_v48 = vor.u32 1.1754944e-38, %v1004_v55  ;;  %v3500_v34 = vmul.f32 -1.442695, %v5522_v37 }
 0x175   : > { %v1552_v6 = vor.u32 %v1550_v40, %v1549_v7  ;;  %v1554_v10 = vrot.slane %v1549_v7, 4  ;;  %v5517_v44 = vrot.slane %v1556_v18, 7  ;;  %v994_v4 = vmul.f32 %v3982_v58, %v751_v63  ;;  %v3984_v0 = vpop.eup %3983 }
 0x176   : > { %vm999_vm12 = vweird.f32 %v3982_v58  ;;  %3985 = vrcp.f32 %v5511_v24  ;;  %v1017_v46 = vand.u32 2147483647, %v5511_v24  ;;  %v1019_v49 = vand.u32 2147483648, %v5511_v24 }
 0x177   : > { %v1553_v2 = vsel %vm5189_vm11, %v1545_v39, %v1552_v6  ;;  %v1806_v20 = vsel %vm4472_vm3, %v1554_v10, %v1805_v8  ;;  %v1561_v21 = vor.u32 %v1559_v61, %v5517_v44  ;;  %v995_v29 = vsub.f32 1.0, %v994_v4  ;;  %vm5544_vm0 = vmor %vm998_vm2, %vm999_vm12  ;;  %v6685_v6 = vld [vmem:[#allocation25_spill] sm:$0xff] }
 0x178   : > { %1804 = vst.msk [vmem:[#allocation2 + $0x58] sm:$0xf] %vm6671_vm6, %v1553_v2  ;;  %v5535_v3 = vadd.f32 1.0, %v3984_v0  ;;  %3987 = vpow2.f32 %v3498_v13  ;;  %v1562_v59 = vrot.slane %v5517_v44, 4  ;;  %vm1013_vm13 = vweird.f32 %v5511_v24 }
 0x179   : > { %1807 = vst [vmem:[#allocation2 + $0x5c] sm:$0x1] %v1806_v20  ;;  %v1809_v60 = vsel %vm5168_vm8, %v1561_v21, %v1808_v47  ;;  %v996_v15 = vmul.f32 %v3982_v58, %v995_v29  ;;  %vm5551_vm1 = vcmp.eq.f32.partialorder %v1017_v46, 8.507059e+37  ;;  %v5564_v53 = vadd.f32 %v5561_v11, %v593_v43  ;;  %v1812_v43 = vld [vmem:[#allocation2 + $0x68] sm:$0x1] }
 0x17a   : > { %1810 = vst [vmem:[#allocation2 + $0x60] sm:$0xf] %v1809_v60  ;;  %3989 = vrcp.f32 %v5535_v3  ;;  %v1032_v63 = vand.u32 2147483647, %v5535_v3  ;;  %v1034_v62 = vand.u32 2147483648, %v5535_v3  ;;  %v594_v22 = vmul.f32 %v4954_v25, %v6679_v52 }
 0x17b   : > { %v997_v31 = vadd.f32 %v3982_v58, %v996_v15  ;;  %3991 = vpow2.f32 %v3499_v19  ;;  %v1020_v51 = vor.u32 1.1754944e-38, %v1019_v49  ;;  %v595_v50 = vmul.f32 %v4954_v25, %v6680_v17  ;;  %v6688_v19 = vld [vmem:[#allocation26_spill] sm:$0xff]  ;;  %v1819_v15 = vld [vmem:[#allocation2 + $0x74] sm:$0x1] }
 0x17c   : > { %v3986_v38 = vpop.eup %3985  ;;  %3993 = vpow2.f32 %v3500_v34  ;;  %v3501_v40 = vmul.f32 -1.442695, %v5564_v53  ;;  %v5577_v14 = vadd.f32 %v5561_v11, %v594_v22  ;;  %vm1028_vm9 = vweird.f32 %v5535_v3 }
 0x17d   : > { %v1001_v16 = vsel %vm5544_vm0, %v3982_v58, %v997_v31  ;;  %v1009_v26 = vmul.f32 %v3986_v38, %v5511_v24  ;;  %vm1014_vm7 = vweird.f32 %v3986_v38  ;;  %vm5581_vm10 = vcmp.eq.f32.partialorder %v1032_v63, 8.507059e+37 }
 0x17e   : > { %v1006_v30 = vsel %vm5530_vm14, %v1005_v48, %v1001_v16  ;;  %v3988_v23 = vpop.eup %3987  ;;  %v1035_v39 = vor.u32 1.1754944e-38, %v1034_v62  ;;  %v3502_v18 = vmul.f32 -1.442695, %v5577_v14  ;;  %3995 = vpow2.f32 %v3501_v40  ;;  %vm5591_vm4 = vmor %vm1013_vm13, %vm1014_vm7 }
 0x17f   : > { %v1263_v45 = vmul.f32 %v1006_v30, %v5335_v56  ;;  %v1010_v28 = vsub.f32 1.0, %v1009_v26  ;;  %v5585_v7 = vadd.f32 1.0, %v3988_v23  ;;  %v5597_v13 = vadd.f32 %v5561_v11, %v595_v50 }
 0x180   : > { %v3990_v33 = vpop.eup %3989  ;;  %v5601_v10 = vmul.f32 %v4954_v25, %v6685_v6  ;;  %v5624_v54 = vmul.f32 %v4954_v25, %v6688_v19 }
 0x181   : > { %v3992_v61 = vpop.eup %3991  ;;  %v1417_v58 = vpack.c.bf16 %v1263_v45, %v1263_v45  ;;  %v1011_v8 = vmul.f32 %v3986_v38, %v1010_v28  ;;  %v1024_v55 = vmul.f32 %v3990_v33, %v5535_v3  ;;  %vm1029_vm15 = vweird.f32 %v3990_v33 }
 0x182   : > { %3997 = vrcp.f32 %v5585_v7  ;;  %v3994_v2 = vpop.eup %3993  ;;  %v1047_v24 = vand.u32 2147483647, %v5585_v7  ;;  %v1049_v20 = vand.u32 2147483648, %v5585_v7  ;;  %v5605_v21 = vadd.f32 1.0, %v3992_v61  ;;  %vm5616_vm5 = vmor %vm1028_vm9, %vm1029_vm15 }
 0x183   : > { %v1564_v4 = vshrl.u32 %v1417_v58, 16  ;;  %v1567_v0 = vshll.u32 %v1417_v58, 16  ;;  %v1012_v47 = vadd.f32 %v3986_v38, %v1011_v8  ;;  %v1025_v46 = vsub.f32 1.0, %v1024_v55 }
 0x184   : > { %3999 = vpow2.f32 %v3502_v18  ;;  %v5609_v27 = vadd.f32 1.0, %v3994_v2  ;;  %vm1043_vm2 = vweird.f32 %v5585_v7  ;;  %v3996_v48 = vpop.eup %3995  ;;  %vm5627_vm12 = vcmp.eq.f32.partialorder %v1047_v24, 8.507059e+37 }
 0x185   : > { %v1566_v29 = vrot.slane %v1564_v4, 7  ;;  %v1016_v12 = vsel %vm5591_vm4, %v3986_v38, %v1012_v47  ;;  %v1026_v49 = vmul.f32 %v3990_v33, %v1025_v46  ;;  %4001 = vrcp.f32 %v5605_v21 }
 0x186   : > { %v1021_v60 = vsel %vm5551_vm1, %v1020_v51, %v1016_v12  ;;  %v1050_v62 = vor.u32 1.1754944e-38, %v1049_v20  ;;  %v1062_v52 = vand.u32 2147483647, %v5605_v21  ;;  %v1064_v22 = vand.u32 2147483648, %v5605_v21 }
 0x187   : > { %v1569_v31 = vor.u32 %v1567_v0, %v1566_v29  ;;  %v1571_v34 = vrot.slane %v1566_v29, 4  ;;  %v1264_v5 = vmul.f32 %v1021_v60, %v5460_v36  ;;  %v1027_v38 = vadd.f32 %v3990_v33, %v1026_v49 }
 0x188   : > { %v3998_v63 = vpop.eup %3997  ;;  %4003 = vrcp.f32 %v5609_v27  ;;  %vm1058_vm14 = vweird.f32 %v5605_v21  ;;  %vm1073_vm0 = vweird.f32 %v5609_v27  ;;  %v1077_v23 = vand.u32 2147483647, %v5609_v27 }
 0x189   : > { %v1570_v16 = vsel %vm5189_vm11, %v1562_v59, %v1569_v31  ;;  %v1813_v36 = vsel %vm4472_vm3, %v1571_v34, %v1812_v43  ;;  %v1418_v26 = vpack.c.bf16 %v1264_v5, %v1264_v5  ;;  %v1031_v51 = vsel %vm5616_vm5, %v3990_v33, %v1027_v38 }
 0x18a   : > { %v4000_v17 = vpop.eup %3999  ;;  %1811 = vst.msk [vmem:[#allocation2 + $0x64] sm:$0xf] %vm6671_vm6, %v1570_v16  ;;  %v1036_v50 = vsel %vm5581_vm10, %v1035_v39, %v1031_v51  ;;  %v1039_v30 = vmul.f32 %v3998_v63, %v5585_v7  ;;  %vm1044_vm13 = vweird.f32 %v3998_v63  ;;  %vm5650_vm1 = vcmp.eq.f32.partialorder %v1062_v52, 8.507059e+37 }
 0x18b   : > { %1814 = vst [vmem:[#allocation2 + $0x68] sm:$0x1] %v1813_v36  ;;  %v1573_v44 = vshrl.u32 %v1418_v26, 16  ;;  %v1576_v59 = vshll.u32 %v1418_v26, 16  ;;  %v1265_v40 = vmul.f32 %v1036_v50, %v5471_v35  ;;  %v4002_v45 = vpop.eup %4001  ;;  %v1079_v32 = vand.u32 2147483648, %v5609_v27  ;;  %vm5664_vm9 = vmor %vm1043_vm2, %vm1044_vm13 }
 0x18c   : > { %v1040_v28 = vsub.f32 1.0, %v1039_v30  ;;  %v5655_v39 = vadd.f32 1.0, %v3996_v48  ;;  %v1054_v58 = vmul.f32 %v4002_v45, %v5605_v21  ;;  %v1065_v8 = vor.u32 1.1754944e-38, %v1064_v22  ;;  %v1815_v35 = vld [vmem:[#allocation2 + $0x6c] sm:$0xf] }
 0x18d   : > { %v1575_v18 = vrot.slane %v1573_v44, 7  ;;  %v1419_v61 = vpack.c.bf16 %v1265_v40, %v1265_v40  ;;  %vm1059_vm7 = vweird.f32 %v4002_v45  ;;  %v5659_v6 = vadd.f32 1.0, %v4000_v17 }
 0x18e   : > { %v4004_v55 = vpop.eup %4003  ;;  %v1041_v56 = vmul.f32 %v3998_v63, %v1040_v28  ;;  %4005 = vrcp.f32 %v5655_v39  ;;  %vm5668_vm10 = vcmp.eq.f32.partialorder %v1077_v23, 8.507059e+37  ;;  %v1055_v20 = vsub.f32 1.0, %v1054_v58  ;;  %vm5683_vm15 = vmor %vm1058_vm14, %vm1059_vm7 }
 0x18f   : > { %v1578_v4 = vor.u32 %v1576_v59, %v1575_v18  ;;  %v1581_v0 = vshrl.u32 %v1419_v61, 16  ;;  %v1584_v47 = vshll.u32 %v1419_v61, 16  ;;  %v1069_v29 = vmul.f32 %v4004_v55, %v5609_v27 }
 0x190   : > { %v1042_v24 = vadd.f32 %v3998_v63, %v1041_v56  ;;  %v1080_v12 = vor.u32 1.1754944e-38, %v1079_v32  ;;  %v1579_v43 = vrot.slane %v1575_v18, 4  ;;  %v1092_v7 = vand.u32 2147483647, %v5655_v39 }
 0x191   : > { %v1816_v49 = vsel %vm5168_vm8, %v1578_v4, %v1815_v35  ;;  %v1583_v60 = vrot.slane %v1581_v0, 7  ;;  %v1056_v48 = vmul.f32 %v4002_v45, %v1055_v20  ;;  %v1070_v31 = vsub.f32 1.0, %v1069_v29  ;;  %v6713_v20 = vld [vmem:[#allocation29_spill] sm:$0xff] }
 0x192   : > { %1817 = vst [vmem:[#allocation2 + $0x6c] sm:$0xf] %v1816_v49  ;;  %v1046_v19 = vsel %vm5664_vm9, %v3998_v63, %v1042_v24  ;;  %vm1074_vm4 = vweird.f32 %v4004_v55  ;;  %vm1088_vm5 = vweird.f32 %v5655_v39  ;;  %v1094_v26 = vand.u32 2147483648, %v5655_v39  ;;  %vm6709_vm9 = vmmov %vm6671_vm6 }
 0x193   : > { %v1586_v34 = vor.u32 %v1584_v47, %v1583_v60  ;;  %v1588_v5 = vrot.slane %v1583_v60, 4  ;;  %v1051_v38 = vsel %vm5627_vm12, %v1050_v62, %v1046_v19  ;;  %v1057_v16 = vadd.f32 %v4002_v45, %v1056_v48  ;;  %vm5696_vm2 = vmor %vm1073_vm0, %vm1074_vm4 }
 0x194   : > { %v4006_v22 = vpop.eup %4005  ;;  %v1266_v63 = vmul.f32 %v1051_v38, %v5505_v42  ;;  %v1071_v36 = vmul.f32 %v4004_v55, %v1070_v31  ;;  %vm5701_vm12 = vcmp.eq.f32.partialorder %v1092_v7, 8.507059e+37  ;;  %4007 = vrcp.f32 %v5659_v6  ;;  %vm6712_vm4 = vmmov %vm6671_vm6 }
 0x195   : > { %v1587_v3 = vsel %vm5189_vm11, %v1579_v43, %v1586_v34  ;;  %v1820_v62 = vsel %vm4472_vm3, %v1588_v5, %v1819_v15  ;;  %v1084_v51 = vmul.f32 %v4006_v22, %v5655_v39  ;;  %v1061_v50 = vsel %vm5683_vm15, %v4002_v45, %v1057_v16  ;;  %v1826_v43 = vld [vmem:[#allocation2 + $0x80] sm:$0x1]  ;;  %v6707_v16 = vld [vmem:[#allocation27_spill] sm:$0xff] }
 0x196   : > { %1818 = vst.msk [vmem:[#allocation2 + $0x70] sm:$0xf] %vm6671_vm6, %v1587_v3  ;;  %v1420_v17 = vpack.c.bf16 %v1266_v63, %v1266_v63  ;;  %v1072_v30 = vadd.f32 %v4004_v55, %v1071_v36  ;;  %v1066_v27 = vsel %vm5650_vm1, %v1065_v8, %v1061_v50  ;;  %vm1089_vm14 = vweird.f32 %v4006_v22 }
 0x197   : > { %1821 = vst [vmem:[#allocation2 + $0x74] sm:$0x1] %v1820_v62  ;;  %v1085_v44 = vsub.f32 1.0, %v1084_v51  ;;  %v1107_v59 = vand.u32 2147483647, %v5659_v6  ;;  %v1267_v28 = vmul.f32 %v1066_v27, %v5515_v41  ;;  %v1095_v61 = vor.u32 1.1754944e-38, %v1094_v26  ;;  %vm5721_vm13 = vmor %vm1088_vm5, %vm1089_vm14 }
 0x198   : > { %v1590_v40 = vshrl.u32 %v1420_v17, 16  ;;  %v1593_v23 = vshll.u32 %v1420_v17, 16  ;;  %v1076_v32 = vsel %vm5696_vm2, %v4004_v55, %v1072_v30  ;;  %vm1103_vm0 = vweird.f32 %v5659_v6  ;;  %v1822_v55 = vld [vmem:[#allocation2 + $0x78] sm:$0xf] }
 0x199   : > { %v1081_v45 = vsel %vm5668_vm10, %v1080_v12, %v1076_v32  ;;  %v1086_v18 = vmul.f32 %v4006_v22, %v1085_v44  ;;  %v1421_v58 = vpack.c.bf16 %v1267_v28, %v1267_v28  ;;  %v3503_v41 = vmul.f32 -1.442695, %v5597_v13  ;;  %v6708_v62 = vld [vmem:[#allocation28_spill] sm:$0xff]  ;;  %v1833_v32 = vld [vmem:[#allocation2 + $0x8c] sm:$0x1] }
 0x19a   : > { %v1592_v33 = vrot.slane %v1590_v40, 7  ;;  %v1268_v8 = vmul.f32 %v1081_v45, %v5522_v37  ;;  %v1109_v4 = vand.u32 2147483648, %v5659_v6  ;;  %v5729_v0 = vadd.f32 %v5561_v11, %v5601_v10  ;;  %v4008_v37 = vpop.eup %4007 }
 0x19b   : > { %v1087_v56 = vadd.f32 %v4006_v22, %v1086_v18  ;;  %v5733_v47 = vadd.f32 %v5561_v11, %v5624_v54  ;;  %v1598_v2 = vshrl.u32 %v1421_v58, 16  ;;  %v1601_v24 = vshll.u32 %v1421_v58, 16 }
 0x19c   : > { %v1595_v39 = vor.u32 %v1593_v23, %v1592_v33  ;;  %v1596_v46 = vrot.slane %v1592_v33, 4  ;;  %vm5735_vm1 = vcmp.eq.f32.partialorder %v1107_v59, 8.507059e+37  ;;  %v1422_v29 = vpack.c.bf16 %v1268_v8, %v1268_v8 }
 0x19d   : > { %v1091_v12 = vsel %vm5721_vm13, %v4006_v22, %v1087_v56  ;;  %v1099_v10 = vmul.f32 %v4008_v37, %v5659_v6  ;;  %vm1104_vm7 = vweird.f32 %v4008_v37  ;;  %v1600_v49 = vrot.slane %v1598_v2, 7 }
 0x19e   : > { %v1823_v54 = vsel %vm5168_vm8, %v1595_v39, %v1822_v55  ;;  %v1096_v60 = vsel %vm5701_vm12, %v1095_v61, %v1091_v12  ;;  %4009 = vpow2.f32 %v3503_v41  ;;  %v1607_v7 = vshrl.u32 %v1422_v29, 16  ;;  %vm5761_vm10 = vmor %vm1103_vm0, %vm1104_vm7  ;;  %v6714_v12 = vld [vmem:[#allocation30_spill] sm:$0xff] }
 0x19f   : > { %1824 = vst [vmem:[#allocation2 + $0x78] sm:$0xf] %v1823_v54  ;;  %v1610_v15 = vshll.u32 %v1422_v29, 16  ;;  %v1269_v19 = vmul.f32 %v1096_v60, %v5564_v53  ;;  %v1100_v48 = vsub.f32 1.0, %v1099_v10  ;;  %v1603_v31 = vor.u32 %v1601_v24, %v1600_v49  ;;  %v1829_v53 = vld [vmem:[#allocation2 + $0x84] sm:$0xf] }
 0x1a0   : > { %v1605_v34 = vrot.slane %v1600_v49, 4  ;;  %v3504_v5 = vmul.f32 -1.442695, %v5729_v0  ;;  %v3505_v38 = vmul.f32 -1.442695, %v5733_v47  ;;  %v1609_v52 = vrot.slane %v1607_v7, 7 }
 0x1a1   : > { %v1423_v22 = vpack.c.bf16 %v1269_v19, %v1269_v19  ;;  %v1101_v63 = vmul.f32 %v4008_v37, %v1100_v48  ;;  %v598_v36 = vmul.f32 %v4954_v25, %v6707_v16  ;;  %v1604_v26 = vsel %vm5189_vm11, %v1596_v46, %v1603_v31  ;;  %v6717_v48 = vld [vmem:[#allocation31_spill] sm:$0xff] }
 0x1a2   : > { %v1827_v3 = vsel %vm4472_vm3, %v1605_v34, %v1826_v43  ;;  %4011 = vpow2.f32 %v3504_v5  ;;  %v599_v21 = vmul.f32 %v4954_v25, %v6708_v62  ;;  %1825 = vst.msk [vmem:[#allocation2 + $0x7c] sm:$0xf] %vm6709_vm9, %v1604_v26  ;;  %v1612_v51 = vor.u32 %v1610_v15, %v1609_v52  ;;  %v1847_v15 = vld [vmem:[#allocation2 + $0xa4] sm:$0x1] }
 0x1a3   : > { %v1615_v42 = vshrl.u32 %v1423_v22, 16  ;;  %v1618_v17 = vshll.u32 %v1423_v22, 16  ;;  %v1110_v30 = vor.u32 1.1754944e-38, %v1109_v4  ;;  %1828 = vst [vmem:[#allocation2 + $0x80] sm:$0x1] %v1827_v3  ;;  %v1102_v44 = vadd.f32 %v4008_v37, %v1101_v63 }
 0x1a4   : > { %v4010_v27 = vpop.eup %4009  ;;  %4013 = vpow2.f32 %v3505_v38  ;;  %v5766_v59 = vadd.f32 %v5561_v11, %v598_v36  ;;  %v5769_v40 = vadd.f32 %v5561_v11, %v599_v21  ;;  %v1830_v23 = vsel %vm5168_vm8, %v1612_v51, %v1829_v53 }
 0x1a5   : > { %v1613_v28 = vrot.slane %v1609_v52, 4  ;;  %v1617_v6 = vrot.slane %v1615_v42, 7  ;;  %v759_v45 = vadd.f32 1.0, %v4010_v27  ;;  %1831 = vst [vmem:[#allocation2 + $0x84] sm:$0xf] %v1830_v23  ;;  %v1106_v18 = vsel %vm5761_vm10, %v4008_v37, %v1102_v44 }
 0x1a6   : > { %v3506_v61 = vmul.f32 -1.442695, %v5766_v59  ;;  %v3507_v33 = vmul.f32 -1.442695, %v5769_v40  ;;  %v1111_v35 = vsel %vm5735_vm1, %v1110_v30, %v1106_v18  ;;  %v600_v29 = vmul.f32 %v4954_v25, %v6713_v20  ;;  %v1836_v52 = vld [vmem:[#allocation2 + $0x90] sm:$0xf] }
 0x1a7   : > { %v1620_v58 = vor.u32 %v1618_v17, %v1617_v6  ;;  %v1622_v8 = vrot.slane %v1617_v6, 4  ;;  %4015 = vrcp.f32 %v759_v45  ;;  %v1270_v55 = vmul.f32 %v1111_v35, %v5577_v14 }
 0x1a8   : > { %v4012_v41 = vpop.eup %4011  ;;  %v1122_v56 = vand.u32 2147483647, %v759_v45  ;;  %v1124_v4 = vand.u32 2147483648, %v759_v45  ;;  %4017 = vpow2.f32 %v3506_v61  ;;  %v601_v10 = vmul.f32 %v4954_v25, %v6714_v12 }
 0x1a9   : > { %v1621_v39 = vsel %vm5189_vm11, %v1613_v28, %v1620_v58  ;;  %v1834_v37 = vsel %vm4472_vm3, %v1622_v8, %v1833_v32  ;;  %v5784_v46 = vadd.f32 1.0, %v4012_v41  ;;  %v1424_v24 = vpack.c.bf16 %v1270_v55, %v1270_v55 }
 0x1aa   : > { %v4014_v2 = vpop.eup %4013  ;;  %1832 = vst.msk [vmem:[#allocation2 + $0x88] sm:$0xf] %vm6712_vm4, %v1621_v39  ;;  %4019 = vpow2.f32 %v3507_v33  ;;  %vm1118_vm15 = vweird.f32 %v759_v45  ;;  %vm5796_vm5 = vcmp.eq.f32.partialorder %v1122_v56, 8.507059e+37  ;;  %v1125_v19 = vor.u32 1.1754944e-38, %v1124_v4 }
 0x1ab   : > { %1835 = vst [vmem:[#allocation2 + $0x8c] sm:$0x1] %v1834_v37  ;;  %4021 = vrcp.f32 %v5784_v46  ;;  %v1139_v14 = vand.u32 2147483648, %v5784_v46  ;;  %v1624_v54 = vshrl.u32 %v1424_v24, 16  ;;  %v1627_v49 = vshll.u32 %v1424_v24, 16 }
 0x1ac   : > { %v1137_v43 = vand.u32 2147483647, %v5784_v46  ;;  %v5794_v60 = vadd.f32 1.0, %v4014_v2  ;;  %v602_v31 = vmul.f32 %v4954_v25, %v6717_v48  ;;  %vm1133_vm2 = vweird.f32 %v5784_v46 }
 0x1ad   : > { %v4016_v7 = vpop.eup %4015  ;;  %v5802_v34 = vrot.slane %v1624_v54, 7  ;;  %v1140_v22 = vor.u32 1.1754944e-38, %v1139_v14  ;;  %v5809_v36 = vadd.f32 %v5561_v11, %v600_v29  ;;  %v5822_v17 = vadd.f32 %v5561_v11, %v601_v10 }
 0x1ae   : > { %v1114_v5 = vmul.f32 %v4016_v7, %v759_v45  ;;  %4023 = vrcp.f32 %v5794_v60  ;;  %v4018_v38 = vpop.eup %4017  ;;  %v1152_v63 = vand.u32 2147483647, %v5794_v60  ;;  %v1154_v16 = vand.u32 2147483648, %v5794_v60 }
 0x1af   : > { %v1629_v3 = vor.u32 %v1627_v49, %v5802_v34  ;;  %vm1119_vm12 = vweird.f32 %v4016_v7  ;;  %vm5812_vm6 = vcmp.eq.f32.partialorder %v1137_v43, 8.507059e+37  ;;  %v5816_v21 = vadd.f32 1.0, %v4018_v38 }
 0x1b0   : > { %v4020_v26 = vpop.eup %4019  ;;  %v1115_v53 = vsub.f32 1.0, %v1114_v5  ;;  %vm1148_vm14 = vweird.f32 %v5794_v60  ;;  %v5825_v50 = vadd.f32 %v5561_v11, %v602_v31  ;;  %v1630_v44 = vrot.slane %v5802_v34, 4  ;;  %vm5832_vm0 = vmor %vm1118_vm15, %vm1119_vm12 }
 0x1b1   : > { %v4022_v51 = vpop.eup %4021  ;;  %v5819_v42 = vadd.f32 1.0, %v4020_v26  ;;  %v1837_v30 = vsel %vm5168_vm8, %v1629_v3, %v1836_v52  ;;  %vm5836_vm1 = vcmp.eq.f32.partialorder %v1152_v63, 8.507059e+37  ;;  %v1155_v32 = vor.u32 1.1754944e-38, %v1154_v16 }
 0x1b2   : > { %v1116_v27 = vmul.f32 %v4016_v7, %v1115_v53  ;;  %v1129_v23 = vmul.f32 %v4022_v51, %v5784_v46  ;;  %1838 = vst [vmem:[#allocation2 + $0x90] sm:$0xf] %v1837_v30  ;;  %vm1134_vm13 = vweird.f32 %v4022_v51  ;;  %4025 = vrcp.f32 %v5816_v21 }
 0x1b3   : > { %v3508_v18 = vmul.f32 -1.442695, %v5809_v36  ;;  %v1169_v8 = vand.u32 2147483648, %v5816_v21  ;;  %4027 = vrcp.f32 %v5819_v42  ;;  %vm1163_vm9 = vweird.f32 %v5816_v21  ;;  %vm5856_vm10 = vmor %vm1133_vm2, %vm1134_vm13 }
 0x1b4   : > { %v4024_v61 = vpop.eup %4023  ;;  %v1117_v33 = vadd.f32 %v4016_v7, %v1116_v27  ;;  %v1130_v58 = vsub.f32 1.0, %v1129_v23  ;;  %v1167_v35 = vand.u32 2147483647, %v5816_v21  ;;  %v1182_v56 = vand.u32 2147483647, %v5819_v42 }
 0x1b5   : > { %v1144_v45 = vmul.f32 %v4024_v61, %v5794_v60  ;;  %vm1149_vm7 = vweird.f32 %v4024_v61  ;;  %v1184_v4 = vand.u32 2147483648, %v5819_v42  ;;  %4029 = vpow2.f32 %v3508_v18  ;;  %v1840_v18 = vld [vmem:[#allocation2 + $0x98] sm:$0x1] }
 0x1b6   : > { %v1121_v41 = vsel %vm5832_vm0, %v4016_v7, %v1117_v33  ;;  %v1131_v55 = vmul.f32 %v4022_v51, %v1130_v58  ;;  %v3509_v24 = vmul.f32 -1.442695, %v5822_v17  ;;  %v1170_v29 = vor.u32 1.1754944e-38, %v1169_v8  ;;  %vm5876_vm2 = vmor %vm1148_vm14, %vm1149_vm7 }
 0x1b7   : > { %v1126_v39 = vsel %vm5796_vm5, %v1125_v19, %v1121_v41  ;;  %v1145_v2 = vsub.f32 1.0, %v1144_v45  ;;  %vm1178_vm4 = vweird.f32 %v5819_v42  ;;  %vm5863_vm15 = vcmp.eq.f32.partialorder %v1167_v35, 8.507059e+37 }
 0x1b8   : > { %v1271_v14 = vmul.f32 %v1126_v39, %v5597_v13  ;;  %v1132_v20 = vadd.f32 %v4022_v51, %v1131_v55  ;;  %v4026_v12 = vpop.eup %4025  ;;  %vm5867_vm5 = vcmp.eq.f32.partialorder %v1182_v56, 8.507059e+37  ;;  %v1185_v49 = vor.u32 1.1754944e-38, %v1184_v4 }
 0x1b9   : > { %v1146_v10 = vmul.f32 %v4024_v61, %v1145_v2  ;;  %4031 = vpow2.f32 %v3509_v24  ;;  %v4028_v43 = vpop.eup %4027  ;;  %v1159_v19 = vmul.f32 %v4026_v12, %v5816_v21  ;;  %v3510_v48 = vmul.f32 -1.442695, %v5825_v50 }
 0x1ba   : > { %v1425_v7 = vpack.c.bf16 %v1271_v14, %v1271_v14  ;;  %v1136_v13 = vsel %vm5856_vm10, %v4022_v51, %v1132_v20  ;;  %vm1164_vm12 = vweird.f32 %v4026_v12  ;;  %v1174_v38 = vmul.f32 %v4028_v43, %v5819_v42  ;;  %v6732_v51 = vld [vmem:[#allocation32_spill] sm:$0xff] }
 0x1bb   : > { %v1141_v31 = vsel %vm5812_vm6, %v1140_v22, %v1136_v13  ;;  %v1147_v5 = vadd.f32 %v4024_v61, %v1146_v10  ;;  %v1160_v60 = vsub.f32 1.0, %v1159_v19  ;;  %v4030_v26 = vpop.eup %4029  ;;  %vm1179_vm14 = vweird.f32 %v4028_v43  ;;  %vm5896_vm6 = vmor %vm1163_vm9, %vm1164_vm12  ;;  %v1843_v42 = vld [vmem:[#allocation2 + $0x9c] sm:$0xf] }
 0x1bc   : > { %v1632_v52 = vshrl.u32 %v1425_v7, 16  ;;  %v1635_v63 = vshll.u32 %v1425_v7, 16  ;;  %v1272_v16 = vmul.f32 %v1141_v31, %v5729_v0  ;;  %v1175_v53 = vsub.f32 1.0, %v1174_v38  ;;  %vm5905_vm0 = vmor %vm1178_vm4, %vm1179_vm14 }
 0x1bd   : > { %v1151_v3 = vsel %vm5876_vm2, %v4024_v61, %v1147_v5  ;;  %v603_v30 = vmul.f32 %v4954_v25, %v6732_v51  ;;  %v1161_v23 = vmul.f32 %v4026_v12, %v1160_v60  ;;  %v5900_v58 = vadd.f32 1.0, %v4030_v26  ;;  %v1850_v51 = vld [vmem:[#allocation2 + $0xa8] sm:$0xf] }
 0x1be   : > { %v1634_v62 = vrot.slane %v1632_v52, 7  ;;  %v1426_v22 = vpack.c.bf16 %v1272_v16, %v1272_v16  ;;  %v1156_v27 = vsel %vm5836_vm1, %v1155_v32, %v1151_v3  ;;  %v1176_v33 = vmul.f32 %v4028_v43, %v1175_v53 }
 0x1bf   : > { %v4032_v28 = vpop.eup %4031  ;;  %v1273_v0 = vmul.f32 %v1156_v27, %v5733_v47  ;;  %4033 = vpow2.f32 %v3510_v48  ;;  %v1162_v45 = vadd.f32 %v4026_v12, %v1161_v23  ;;  %vm6737_vm13 = vcmask 257024   ;;  %v1854_v23 = vld [vmem:[#allocation2 + $0xb0] sm:$0x1] }
 0x1c0   : > { %v1637_v25 = vor.u32 %v1635_v63, %v1634_v62  ;;  %v1639_v8 = vrot.slane %v1634_v62, 4  ;;  %v1641_v6 = vshrl.u32 %v1426_v22, 16  ;;  %v1644_v32 = vshll.u32 %v1426_v22, 16  ;;  %vm6738_vm9 = vmmov %vm6737_vm13 }
 0x1c1   : > { %v1427_v21 = vpack.c.bf16 %v1273_v0, %v1273_v0  ;;  %v1177_v35 = vadd.f32 %v4028_v43, %v1176_v33  ;;  %4035 = vrcp.f32 %v5900_v58  ;;  %v1166_v37 = vsel %vm5896_vm6, %v4026_v12, %v1162_v45 }
 0x1c2   : > { %v1638_v41 = vsel %vm5189_vm11, %v1630_v44, %v1637_v25  ;;  %v1841_v55 = vsel %vm4472_vm3, %v1639_v8, %v1840_v18  ;;  %v1643_v56 = vrot.slane %v1641_v6, 7  ;;  %v1171_v44 = vsel %vm5863_vm15, %v1170_v29, %v1166_v37  ;;  %vm6739_vm15 = vmmov %vm6738_vm9 }
 0x1c3   : > { %1839 = vst.msk [vmem:[#allocation2 + $0x94] sm:$0xf] %vm6737_vm13, %v1638_v41  ;;  %v1649_v4 = vshrl.u32 %v1427_v21, 16  ;;  %v1652_v39 = vshll.u32 %v1427_v21, 16  ;;  %v1181_v2 = vsel %vm5905_vm0, %v4028_v43, %v1177_v35  ;;  %v5926_v14 = vadd.f32 %v5561_v11, %v603_v30 }
 0x1c4   : > { %1842 = vst [vmem:[#allocation2 + $0x98] sm:$0x1] %v1841_v55  ;;  %v1646_v34 = vor.u32 %v1644_v32, %v1643_v56  ;;  %v1186_v24 = vsel %vm5867_vm5, %v1185_v49, %v1181_v2  ;;  %v1647_v10 = vrot.slane %v1643_v56, 4  ;;  %v1274_v13 = vmul.f32 %v1171_v44, %v5766_v59 }
 0x1c5   : > { %v4034_v20 = vpop.eup %4033  ;;  %v1651_v7 = vrot.slane %v1649_v4, 7  ;;  %v1275_v12 = vmul.f32 %v1186_v24, %v5769_v40  ;;  %vm1193_vm1 = vweird.f32 %v5900_v58  ;;  %v1197_v29 = vand.u32 2147483647, %v5900_v58 }
 0x1c6   : > { %v1844_v43 = vsel %vm5168_vm8, %v1646_v34, %v1843_v42  ;;  %v5934_v54 = vadd.f32 1.0, %v4032_v28  ;;  %v1428_v19 = vpack.c.bf16 %v1274_v13, %v1274_v13  ;;  %v1199_v40 = vand.u32 2147483648, %v5900_v58 }
 0x1c7   : > { %v4036_v46 = vpop.eup %4035  ;;  %1845 = vst [vmem:[#allocation2 + $0x9c] sm:$0xf] %v1844_v43  ;;  %v1654_v11 = vor.u32 %v1652_v39, %v1651_v7  ;;  %v1656_v49 = vrot.slane %v1651_v7, 4  ;;  %v1429_v48 = vpack.c.bf16 %v1275_v12, %v1275_v12  ;;  %v5938_v31 = vadd.f32 1.0, %v4034_v20 }
 0x1c8   : > { %v1189_v59 = vmul.f32 %v4036_v46, %v5900_v58  ;;  %vm1194_vm7 = vweird.f32 %v4036_v46  ;;  %v1658_v52 = vshrl.u32 %v1428_v19, 16  ;;  %v1661_v63 = vshll.u32 %v1428_v19, 16 }
 0x1c9   : > { %v1655_v5 = vsel %vm5189_vm11, %v1647_v10, %v1654_v11  ;;  %v1848_v38 = vsel %vm4472_vm3, %v1656_v49, %v1847_v15  ;;  %v1666_v16 = vshrl.u32 %v1429_v48, 16  ;;  %v1669_v60 = vshll.u32 %v1429_v48, 16  ;;  %vm1195_vm10 = vmor %vm1193_vm1, %vm1194_vm7  ;;  %v1857_v15 = vld [vmem:[#allocation2 + $0xb4] sm:$0xf] }
 0x1ca   : > { %1846 = vst.msk [vmem:[#allocation2 + $0xa0] sm:$0xf] %vm6738_vm9, %v1655_v5  ;;  %v1190_v26 = vsub.f32 1.0, %v1189_v59  ;;  %4037 = vrcp.f32 %v5934_v54  ;;  %v1660_v3 = vrot.slane %v1658_v52, 7  ;;  %v3511_v53 = vmul.f32 -1.442695, %v5926_v14 }
 0x1cb   : > { %1849 = vst [vmem:[#allocation2 + $0xa4] sm:$0x1] %v1848_v38  ;;  %v1668_v30 = vrot.slane %v1666_v16, 7  ;;  %4039 = vrcp.f32 %v5938_v31  ;;  %v1200_v28 = vor.u32 1.1754944e-38, %v1199_v40  ;;  %vm1198_vm4 = vcmp.eq.f32.partialorder %v1197_v29, 8.507059e+37 }
 0x1cc   : > { %v1191_v62 = vmul.f32 %v4036_v46, %v1190_v26  ;;  %v1663_v22 = vor.u32 %v1661_v63, %v1660_v3  ;;  %v1664_v27 = vrot.slane %v1660_v3, 4  ;;  %4041 = vpow2.f32 %v3511_v53 }
 0x1cd   : > { %v1671_v18 = vor.u32 %v1669_v60, %v1668_v30  ;;  %v1673_v0 = vrot.slane %v1668_v30, 4  ;;  %vm1208_vm5 = vweird.f32 %v5934_v54  ;;  %v1214_v35 = vand.u32 2147483648, %v5934_v54 }
 0x1ce   : > { %v1192_v61 = vadd.f32 %v4036_v46, %v1191_v62  ;;  %v1851_v33 = vsel %vm5168_vm8, %v1663_v22, %v1850_v51  ;;  %v1212_v55 = vand.u32 2147483647, %v5934_v54  ;;  %vm1223_vm12 = vweird.f32 %v5938_v31  ;;  %v1861_v62 = vld [vmem:[#allocation2 + $0xbc] sm:$0x1] }
 0x1cf   : > { %1852 = vst [vmem:[#allocation2 + $0xa8] sm:$0xf] %v1851_v33  ;;  %v1672_v8 = vsel %vm5189_vm11, %v1664_v27, %v1671_v18  ;;  %v1855_v6 = vsel %vm4472_vm3, %v1673_v0, %v1854_v23  ;;  %v1229_v4 = vand.u32 2147483648, %v5938_v31  ;;  %v1215_v20 = vor.u32 1.1754944e-38, %v1214_v35 }
 0x1d0   : > { %v4038_v25 = vpop.eup %4037  ;;  %v1196_v32 = vsel %vm1195_vm10, %v4036_v46, %v1192_v61  ;;  %1853 = vst.msk [vmem:[#allocation2 + $0xac] sm:$0xf] %vm6739_vm15, %v1672_v8  ;;  %vm1213_vm0 = vcmp.eq.f32.partialorder %v1212_v55, 8.507059e+37  ;;  %v1868_v55 = vld [vmem:[#allocation2 + $0xc8] sm:$0x1] }
 0x1d1   : > { %v1201_v58 = vsel %vm1198_vm4, %v1200_v28, %v1196_v32  ;;  %v1204_v47 = vmul.f32 %v4038_v25, %v5934_v54  ;;  %v4040_v21 = vpop.eup %4039  ;;  %1856 = vst [vmem:[#allocation2 + $0xb0] sm:$0x1] %v1855_v6  ;;  %vm1209_vm2 = vweird.f32 %v4038_v25  ;;  %v1230_v43 = vor.u32 1.1754944e-38, %v1229_v4 }
 0x1d2   : > { %v1276_v45 = vmul.f32 %v1201_v58, %v5809_v36  ;;  %v1219_v56 = vmul.f32 %v4040_v21, %v5938_v31  ;;  %v4042_v39 = vpop.eup %4041  ;;  %vm1224_vm14 = vweird.f32 %v4040_v21  ;;  %v1227_v36 = vand.u32 2147483647, %v5938_v31  ;;  %vm5969_vm6 = vmor %vm1208_vm5, %vm1209_vm2 }
 0x1d3   : > { %v1205_v41 = vsub.f32 1.0, %v1204_v47  ;;  %v767_v10 = vadd.f32 1.0, %v4042_v39  ;;  %vm1225_vm13 = vmor %vm1223_vm12, %vm1224_vm14 }
 0x1d4   : > { %v1430_v42 = vpack.c.bf16 %v1276_v45, %v1276_v45  ;;  %v1220_v2 = vsub.f32 1.0, %v1219_v56  ;;  %vm1228_vm1 = vcmp.eq.f32.partialorder %v1227_v36, 8.507059e+37 }
 0x1d5   : > { %v1206_v37 = vmul.f32 %v4038_v25, %v1205_v41  ;;  %4043 = vrcp.f32 %v767_v10  ;;  %vm1238_vm7 = vweird.f32 %v767_v10  ;;  %v1242_v26 = vand.u32 2147483647, %v767_v10 }
 0x1d6   : > { %v1675_v34 = vshrl.u32 %v1430_v42, 16  ;;  %v1678_v44 = vshll.u32 %v1430_v42, 16  ;;  %v1221_v13 = vmul.f32 %v4040_v21, %v1220_v2  ;;  %v1244_v3 = vand.u32 2147483648, %v767_v10 }
 0x1d7   : > { %v1207_v7 = vadd.f32 %v4038_v25, %v1206_v37  ;;  %vm1243_vm4 = vcmp.eq.f32.partialorder %v1242_v26, 8.507059e+37 }
 0x1d8   : > { %v1677_v12 = vrot.slane %v1675_v34, 7  ;;  %v1222_v54 = vadd.f32 %v4040_v21, %v1221_v13  ;;  %v1245_v18 = vor.u32 1.1754944e-38, %v1244_v3 }
 0x1d9   : > { %v1211_v29 = vsel %vm5969_vm6, %v4038_v25, %v1207_v7 }
 0x1da   : > { %v1680_v46 = vor.u32 %v1678_v44, %v1677_v12  ;;  %v1216_v11 = vsel %vm1213_vm0, %v1215_v20, %v1211_v29  ;;  %v1226_v19 = vsel %vm1225_vm13, %v4040_v21, %v1222_v54  ;;  %v1681_v60 = vrot.slane %v1677_v12, 4 }
 0x1db   : > { %v1277_v49 = vmul.f32 %v1216_v11, %v5822_v17  ;;  %v1231_v59 = vsel %vm1228_vm1, %v1230_v43, %v1226_v19  ;;  %v4044_v5 = vpop.eup %4043 }
 0x1dc   : > { %v1858_v48 = vsel %vm5168_vm8, %v1680_v46, %v1857_v15  ;;  %v1278_v31 = vmul.f32 %v1231_v59, %v5825_v50  ;;  %v1234_v16 = vmul.f32 %v4044_v5, %v767_v10  ;;  %vm1239_vm9 = vweird.f32 %v4044_v5  ;;  %v1864_v50 = vld [vmem:[#allocation2 + $0xc0] sm:$0xf] }
 0x1dd   : > { %1859 = vst [vmem:[#allocation2 + $0xb4] sm:$0xf] %v1858_v48  ;;  %v1431_v40 = vpack.c.bf16 %v1277_v49, %v1277_v49  ;;  %vm1240_vm10 = vmor %vm1238_vm7, %vm1239_vm9 }
 0x1de   : > { %v1432_v63 = vpack.c.bf16 %v1278_v31, %v1278_v31  ;;  %v1235_v30 = vsub.f32 1.0, %v1234_v16 }
 0x1df   : > { %v1683_v38 = vshrl.u32 %v1431_v40, 16  ;;  %v1686_v52 = vshll.u32 %v1431_v40, 16 }
 0x1e0   : > { %v1692_v53 = vshrl.u32 %v1432_v63, 16  ;;  %v1695_v51 = vshll.u32 %v1432_v63, 16  ;;  %v1236_v28 = vmul.f32 %v4044_v5, %v1235_v30 }
 0x1e1   : > { %v1685_v17 = vrot.slane %v1683_v38, 7 }
 0x1e2   : > { %v1694_v23 = vrot.slane %v1692_v53, 7  ;;  %v1237_v25 = vadd.f32 %v4044_v5, %v1236_v28 }
 0x1e3   : > { %v1688_v22 = vor.u32 %v1686_v52, %v1685_v17  ;;  %v1690_v27 = vrot.slane %v1685_v17, 4 }
 0x1e4   : > { %v1697_v33 = vor.u32 %v1695_v51, %v1694_v23  ;;  %v1241_v6 = vsel %vm1240_vm10, %v4044_v5, %v1237_v25  ;;  %v1698_v35 = vrot.slane %v1694_v23, 4 }
 0x1e5   : > { %v1689_v0 = vsel %vm5189_vm11, %v1681_v60, %v1688_v22  ;;  %v1862_v61 = vsel %vm4472_vm3, %v1690_v27, %v1861_v62  ;;  %v1246_v32 = vsel %vm1243_vm4, %v1245_v18, %v1241_v6 }
 0x1e6   : > { %1860 = vst.msk [vmem:[#allocation2 + $0xb8] sm:$0xf] %vm6739_vm15, %v1689_v0  ;;  %v1865_v8 = vsel %vm5168_vm8, %v1697_v33, %v1864_v50  ;;  %v1279_v58 = vmul.f32 %v1246_v32, %v5926_v14  ;;  %vm6742_vm8 = vmmov %vm6739_vm15 }
 0x1e7   : > { %1863 = vst [vmem:[#allocation2 + $0xbc] sm:$0x1] %v1862_v61 }
 0x1e8   : > { %1866 = vst [vmem:[#allocation2 + $0xc0] sm:$0xf] %v1865_v8  ;;  %v1433_v47 = vpack.c.bf16 %v1279_v58, %v1279_v58 }
 0x1ea   : > { %v1700_v21 = vshrl.u32 %v1433_v47, 16  ;;  %v1703_v45 = vshll.u32 %v1433_v47, 16 }
 0x1ec   : > { %v1702_v41 = vrot.slane %v1700_v21, 7 }
 0x1ee   : > { %v1705_v56 = vor.u32 %v1703_v45, %v1702_v41  ;;  %v1707_v42 = vrot.slane %v1702_v41, 4 }
 0x1f0   : > { %v1706_v4 = vsel %vm5189_vm11, %v1698_v35, %v1705_v56  ;;  %v1869_v57 = vsel %vm4472_vm3, %v1707_v42, %v1868_v55 }
 0x1f1   : > { %1867 = vst.msk [vmem:[#allocation2 + $0xc4] sm:$0xf] %vm6742_vm8, %v1706_v4 }
 0x1f2   : > { %1870 = vst [vmem:[#allocation2 + $0xc8] sm:$0x1] %v1869_v57 }
 0x1f3 LB: >> { %s3704_s16 = smul.u32 96, %s4285_s15  ;;  %vm1982_vm3 = vsmask.f32 7424  ;;  %s4295_s20 = smov 32   ;;  %vm2119_vm11 = vcmask 1046528   ;;  %vm6747_vm5 = vcmask 261120   ;;  %s4285_s15 = sphi %s5999_s15, %s1881_s15  }
 0x1f4   : >> { %s4296_s9 = smov 64   ;;  %s3723_s10 = sshll.u32 %s4285_s15, 7  ;;  %vm6748_vm2 = vmmov %vm6747_vm5  ;;  %vm2176_vm12 = vcmask 523264   ;;  %vm2561_vm14 = vcmask 785408  }
 0x1f5   : >> { %s6005_s14 = scalar_lea.vmem [#allocation2], %s3704_s16  ;;  %s6258_s27 = scalar_lea.vmem %s4451_s11, %s3723_s10 [#allocation3]  ;;  %vm6749_vm6 = vmmov %vm6748_vm2 }
 0x1f6   : >> { %vm6750_vm0 = vmmov %vm6748_vm2  ;;  %s6463_s8 = scalar_lea.vmem %s5997_s18, %s3723_s10 [#allocation11]  ;;  %s1881_s15 = sadd.s32 1, %s4285_s15  }
 0x1f7   : >> { %vm6751_vm13 = vmmov %vm6750_vm0  ;;  %p1878_p1 = scmp.ge.s32.totalorder %s1881_s15, 2  }
 0x1f8   : >> { %vm6752_vm1 = vmmov %vm6750_vm0  ;;  %s3724_s19 = sshll.u32 (%p1878_p1), %s4355_s25, 8  ;;  %s3341_s16 = sshll.u32 (%p1878_p1), %s5997_s18, 4  ;;  %s3342_s16 = int_to_ptr.vmem [resolvable:$true] %s3341_s16 }
 0x1f9   : >> { %v3804_v1 = vld [vmem:[%s6005_s14 + $0x18] sm:$0xff]   ;;  %v3631_v9 = vld [vmem:[%s6005_s14 + $0x20] sm:$0x1]  ;;  %v1902_v36 = vld [vmem:[%s6005_s14 + $0x8] sm:$0x1]  ;;  %s3340_s30 = scalar_lea.hbm (%p1878_p1), %s6555_s6, %s3724_s19  ;;  %s4223_s25 = scalar_lea.hbm (%p1878_p1), %s6555_s6, 512 }
 0x1fa   : >> { %v6010_v14 = vld [vmem:[%s6005_s14] sm:$0xff]   ;;  %v2812_v39 = vunpack.c.l.b16 %v3631_v9  ;;  %v2829_v37 = vshrl.u32 %v3804_v1, 16  ;;  %v2831_v2 = vshll.u32 %v3804_v1, 16  ;;  %v6015_v44 = vld [vmem:[%s6005_s14 + $0xc] sm:$0xff]   ;;  %v1966_v20 = vunpack.c.l.b16 %v1902_v36  ;;  %v3808_v7 = vld [vmem:[%s6005_s14 + $0x18] sm:$0xf0] }
 0x1fb   : >> { %v1984_v34 = vshrl.u32 %v6010_v14, 16  ;;  %v6018_v24 = vld [vmem:[%s6005_s14 + $0xc] sm:$0xf0]  ;;  %v1986_v10 = vshll.u32 %v6010_v14, 16  ;;  %v6023_v13 = vld [vmem:[%s6005_s14 + $0x24] sm:$0xff]   ;;  %v2308_v63 = vshll.u32 %v6015_v44, 16  ;;  %vm6753_vm7 = vmmov %vm6750_vm0 }
 0x1fc   : >> { %v4047_v12 = vld [vmem:[%s6005_s14 + $0x24] sm:$0xf0]  ;;  %v2820_v43 = vpack.c.b16 %v2812_v39, %v2812_v39  ;;  %v2833_v15 = vrot.slane %v2831_v2, 1  ;;  %v3809_v29 = vld [vmem:[%s6005_s14 + $0x18] sm:$0xe]  ;;  %v1974_v46 = vpack.c.b16 %v1966_v20, %v1966_v20  ;;  %v2306_v26 = vshrl.u32 %v6015_v44, 16  ;;  %vm6754_vm9 = vmmov %vm6750_vm0 }
 0x1fd   : >> { %v3533_v54 = vld [vmem:[%s6005_s14 + $0x14] sm:$0x1]  ;;  %v1988_v11 = vrot.slane %v1986_v10, 1  ;;  %v3632_v59 = vld [vmem:[%s6005_s14 + $0x2c] sm:$0x1]  ;;  %v3810_v5 = vor.u32 %v3809_v29, %v3808_v7  ;;  %v2310_v51 = vrot.slane %v2308_v63, 1  ;;  %vm6755_vm10 = vmmov %vm6750_vm0 }
 0x1fe   : >> { %v2289_v49 = vunpack.c.l.b16 %v3533_v54  ;;  %v6028_v19 = vor.u32 %v2833_v15, %v2829_v37  ;;  %v2836_v48 = vshll.u32 %v2820_v43, 16  ;;  %v1991_v31 = vshll.u32 %v1974_v46, 16  ;;  %v4048_v16 = vld [vmem:[%s6005_s14 + $0x24] sm:$0xe]  ;;  %v3534_v28 = vld [vmem:[%s6005_s14 + $0x20] sm:$0x1]  ;;  %vm6756_vm4 = vmmov %vm6750_vm0 }
 0x1ff   : >> { %v1989_v40 = vor.u32 %v1988_v11, %v1984_v34  ;;  %v2813_v17 = vunpack.c.l.b16 %v3632_v59  ;;  %v2964_v62 = vrot.slane %v3810_v5, 1  ;;  %v2965_v22 = vrot.slane %v2820_v43, 1  ;;  %v3776_v0 = vld [vmem:[%s6005_s14] sm:$0xf0]  ;;  %v3777_v61 = vld [vmem:[%s6005_s14] sm:$0xe]  ;;  %vm6757_vm15 = vmmov %vm6750_vm0 }
 0x200   : >> { %v6031_v38 = vpack.c.b16 %v2289_v49, %v2289_v49  ;;  %v2838_v52 = vrot.slane %v2836_v48, 1  ;;  %v1993_v60 = vrot.slane %v1991_v31, 1  ;;  %v2843_v23 = vshll.u32 %v6023_v13, 16  ;;  %v4051_v35 = vld [vmem:[%s6005_s14 + $0xc] sm:$0xe]  ;;  %v6066_v7 = vld [vmem:[%s6005_s14 + $0x30] sm:$0xff]   ;;  %vm6758_vm8 = vmmov %vm6750_vm0 }
 0x201   : >> { %v2821_v27 = vpack.c.b16 %v2813_v17, %v2813_v17  ;;  %v2311_v50 = vor.u32 %v2310_v51, %v2306_v26  ;;  %v2966_v33 = vsel %vm2119_vm11, %v2964_v62, %v2965_v22  ;;  %v4049_v25 = vor.u32 %v4048_v16, %v4047_v12  ;;  %v6051_v41 = vld [vmem:[%s6005_s14 + $0xc] sm:$0xff]   ;;  %v1903_v56 = vld [vmem:[%s6005_s14 + $0x14] sm:$0x1]  ;;  %v3633_v34 = vld [vmem:[%s6005_s14 + $0x38] sm:$0x1] }
 0x202   : >> { %v2313_v3 = vshll.u32 %v6031_v38, 16  ;;  %v2839_v53 = vsel %vm1982_vm3, %v6028_v19, %v2838_v52  ;;  %v1994_v30 = vsel %vm1982_vm3, %v1989_v40, %v1993_v60  ;;  %v2290_v8 = vunpack.c.l.b16 %v3534_v28  ;;  %v4053_v55 = vld [vmem:[%s6005_s14 + $0xc] sm:$0xf0]  ;;  %v4054_v42 = vld [vmem:[%s6005_s14 + $0xc] sm:$0xe]  ;;  %v6069_v12 = vld [vmem:[%s6005_s14 + $0x24] sm:$0xff]  }
 0x203   : >> { %2924 = vrot.lane.b32.xlu0 %v2839_v53, %s4295_s20  ;;  %2079 = vrot.lane.b32.xlu1 %v1994_v30, %s4295_s20  ;;  %v2841_v6 = vshrl.u32 %v6023_v13, 16  ;;  %v2845_v32 = vrot.slane %v2843_v23, 1  ;;  %v2848_v58 = vshll.u32 %v2821_v27, 16  ;;  %v3778_v47 = vor.u32 %v3777_v61, %v3776_v0  ;;  %v6072_v43 = vld [vmem:[%s6005_s14 + $0x24] sm:$0xf0] }
 0x204   : >> { %v2315_v18 = vrot.slane %v2313_v3, 1  ;;  %v2121_v45 = vrot.slane %v1974_v46, 1  ;;  %v2967_v57 = vrot.slane %v4049_v25, 1  ;;  %v6057_v1 = vpack.c.b16 %v2290_v8, %v2290_v8  ;;  %v3535_v63 = vld [vmem:[%s6005_s14 + $0x2c] sm:$0x1] }
 0x205   : >> { %v2120_v4 = vrot.slane %v3778_v47, 1  ;;  %v2846_v9 = vor.u32 %v2845_v32, %v2841_v6  ;;  %v2850_v39 = vrot.slane %v2848_v58, 1  ;;  %v2968_v2 = vrot.slane %v2821_v27, 1  ;;  %v3811_v17 = vld [vmem:[%s6005_s14 + $0x30] sm:$0xf0] }
 0x206   : >> { %v2316_v21 = vsel %vm1982_vm3, %v2311_v50, %v2315_v18  ;;  %v1967_v36 = vunpack.c.l.b16 %v1903_v56  ;;  %v4052_v20 = vor.u32 %v4051_v35, %v6018_v24  ;;  %v2442_v10 = vrot.slane %v6031_v38, 1  ;;  %v3812_v53 = vld [vmem:[%s6005_s14 + $0x30] sm:$0xe]  ;;  %v3792_v27 = vld [vmem:[%s6005_s14 + $0x18] sm:$0xf0] }
 0x207   : >> { %v2122_v37 = vsel %vm2119_vm11, %v2120_v4, %v2121_v45  ;;  %v2851_v15 = vsel %vm1982_vm3, %v2846_v9, %v2850_v39  ;;  %v2325_v29 = vshll.u32 %v6057_v1, 16  ;;  %v2814_v54 = vunpack.c.l.b16 %v3633_v34  ;;  %v3793_v23 = vld [vmem:[%s6005_s14 + $0x18] sm:$0xe]  ;;  %v1904_v61 = vld [vmem:[%s6005_s14 + $0x20] sm:$0x1] }
 0x208   : >> { %2144 = vrot.lane.b32.xlu2 %v2122_v37, %s4296_s9  ;;  %v2441_v46 = vrot.slane %v4052_v20, 1  ;;  %v2969_v11 = vsel %vm2119_vm11, %v2967_v57, %v2968_v2  ;;  %v1975_v49 = vpack.c.b16 %v1967_v36, %v1967_v36  ;;  %v4055_v48 = vor.u32 %v4054_v42, %v4053_v55  ;;  %v4056_v25 = vld [vmem:[%s6005_s14 + $0x3c] sm:$0xf0]  ;;  %v3634_v56 = vld [vmem:[%s6005_s14 + $0x44] sm:$0x1] }
 0x209   : >> { %v2855_v24 = vshll.u32 %v6066_v7, 16  ;;  %v1996_v40 = vshrl.u32 %v6051_v41, 16  ;;  %v1998_v31 = vshll.u32 %v6051_v41, 16  ;;  %v2327_v38 = vrot.slane %v2325_v29, 1  ;;  %v3779_v42 = vld [vmem:[%s6005_s14 + $0x18] sm:$0xf0] }
 0x20a   : >> { %v2443_v59 = vsel %vm2119_vm11, %v2441_v46, %v2442_v10  ;;  %v2003_v5 = vshll.u32 %v1975_v49, 16  ;;  %v2822_v52 = vpack.c.b16 %v2814_v54, %v2814_v54  ;;  %v2123_v16 = vrot.slane %v4055_v48, 1  ;;  %v3780_v4 = vld [vmem:[%s6005_s14 + $0x18] sm:$0xe]  ;;  %v4057_v29 = vld [vmem:[%s6005_s14 + $0x3c] sm:$0xe] }
 0x20b   : >> { %2988 = vrot.lane.b32.xlu0 %v2966_v33, %s4296_s9  ;;  %2401 = vrot.lane.b32.xlu1 %v2316_v21, %s4295_s20  ;;  %v2124_v60 = vrot.slane %v1975_v49, 1  ;;  %v2000_v26 = vrot.slane %v1998_v31, 1  ;;  %v2853_v3 = vshrl.u32 %v6066_v7, 16  ;;  %v2857_v30 = vrot.slane %v2855_v24, 1  ;;  %v6095_v33 = vld [vmem:[%s6005_s14 + $0x3c] sm:$0xff]  }
 0x20c   : >> { %v2005_v51 = vrot.slane %v2003_v5, 1  ;;  %v2291_v62 = vunpack.c.l.b16 %v3535_v63  ;;  %v2328_v28 = vsel %vm1982_vm3, %v6028_v19, %v2327_v38  ;;  %v2860_v50 = vshll.u32 %v2822_v52, 16  ;;  %v4060_v49 = vld [vmem:[%s6005_s14 + $0x24] sm:$0xe]  ;;  %v4062_v38 = vld [vmem:[%s6005_s14 + $0x24] sm:$0xf0] }
 0x20d   : >> { %v2001_v22 = vor.u32 %v2000_v26, %v1996_v40  ;;  %v2125_v18 = vsel %vm2119_vm11, %v2123_v16, %v2124_v60  ;;  %v3813_v0 = vor.u32 %v3812_v53, %v3811_v17  ;;  %v3794_v6 = vor.u32 %v3793_v23, %v3792_v27  ;;  %v6125_v5 = vld [vmem:[%s6005_s14 + $0x24] sm:$0xff]  }
 0x20e   : >> { %v6100_v32 = vor.u32 %v2857_v30, %v2853_v3  ;;  %v6102_v58 = vpack.c.b16 %v2291_v62, %v2291_v62  ;;  %v2332_v47 = vshll.u32 %v6069_v12, 16  ;;  %v2862_v21 = vrot.slane %v2860_v50, 1  ;;  %v4063_v30 = vld [vmem:[%s6005_s14 + $0x24] sm:$0xe] }
 0x20f   : >> { %v2006_v8 = vsel %vm1982_vm3, %v2001_v22, %v2005_v51  ;;  %v1968_v45 = vunpack.c.l.b16 %v1904_v61  ;;  %v2970_v35 = vrot.slane %v3813_v0, 1  ;;  %v2971_v55 = vrot.slane %v2822_v52, 1  ;;  %v1905_v51 = vld [vmem:[%s6005_s14 + $0x2c] sm:$0x1]  ;;  %v3635_v61 = vld [vmem:[%s6005_s14 + $0x50] sm:$0x1] }
 0x210   : >> { %2465 = vrot.lane.b32.xlu2 %v2443_v59, %s4296_s9  ;;  %v2444_v57 = vrot.slane %v3794_v6, 1  ;;  %v2445_v9 = vrot.slane %v6057_v1, 1  ;;  %v2330_v39 = vshrl.u32 %v6069_v12, 16  ;;  %v2334_v37 = vrot.slane %v2332_v47, 1  ;;  %v3536_v59 = vld [vmem:[%s6005_s14 + $0x38] sm:$0x1] }
 0x211   : >> { %v2337_v2 = vshll.u32 %v6102_v58, 16  ;;  %v2863_v36 = vsel %vm1982_vm3, %v6100_v32, %v2862_v21  ;;  %v1976_v34 = vpack.c.b16 %v1968_v45, %v1968_v45  ;;  %v2815_v20 = vunpack.c.l.b16 %v3634_v56  ;;  %v6147_v21 = vld [vmem:[%s6005_s14 + $0x48] sm:$0xff]  }
 0x212   : >> { %v2972_v10 = vsel %vm2119_vm11, %v2970_v35, %v2971_v55  ;;  %v2446_v54 = vsel %vm2119_vm11, %v2444_v57, %v2445_v9  ;;  %v2335_v46 = vor.u32 %v2334_v37, %v2330_v39  ;;  %v2867_v24 = vshll.u32 %v6095_v33, 16  ;;  %v6150_v35 = vld [vmem:[%s6005_s14 + $0x3c] sm:$0xff]  }
 0x213   : >> { %2926 = vrot.lane.b32.xlu0 %v2851_v15, %s4295_s20  ;;  %2990 = vrot.lane.b32.xlu1 %v2969_v11, %s4296_s9  ;;  %v3781_v15 = vor.u32 %v3780_v4, %v3779_v42  ;;  %v2015_v1 = vshll.u32 %v1976_v34, 16  ;;  %v2339_v11 = vrot.slane %v2337_v2, 1  ;;  %v2823_v48 = vpack.c.b16 %v2815_v20, %v2815_v20  ;;  %v6153_v55 = vld [vmem:[%s6005_s14 + $0x3c] sm:$0xf0] }
 0x214   : >> { %v2127_v31 = vrot.slane %v1976_v34, 1  ;;  %v2292_v16 = vunpack.c.l.b16 %v3536_v59  ;;  %v2865_v60 = vshrl.u32 %v6095_v33, 16  ;;  %v2869_v26 = vrot.slane %v2867_v24, 1 }
 0x215   : >> { %v2126_v40 = vrot.slane %v3781_v15, 1  ;;  %v2017_v52 = vrot.slane %v2015_v1, 1  ;;  %v2340_v63 = vsel %vm1982_vm3, %v2335_v46, %v2339_v11  ;;  %v2872_v3 = vshll.u32 %v2823_v48, 16  ;;  %v3815_v15 = vld [vmem:[%s6005_s14 + $0x48] sm:$0xe] }
 0x216   : >> { %v4058_v53 = vor.u32 %v4057_v29, %v4056_v25  ;;  %v4061_v22 = vor.u32 %v4060_v49, %v6072_v43  ;;  %v2870_v27 = vor.u32 %v2869_v26, %v2865_v60  ;;  %v1969_v50 = vunpack.c.l.b16 %v1905_v51  ;;  %v3795_v49 = vld [vmem:[%s6005_s14 + $0x30] sm:$0xf0] }
 0x217   : >> { %v2128_v17 = vsel %vm2119_vm11, %v2126_v40, %v2127_v31  ;;  %v2018_v62 = vsel %vm1982_vm3, %v6028_v19, %v2017_v52  ;;  %v2874_v23 = vrot.slane %v2872_v3, 1  ;;  %v2974_v0 = vrot.slane %v2823_v48, 1  ;;  %v3796_v48 = vld [vmem:[%s6005_s14 + $0x30] sm:$0xe]  ;;  %v6173_v52 = vld [vmem:[%s6005_s14 + $0x54] sm:$0xff]  }
 0x218   : >> { %2081 = vrot.lane.b32.xlu2 %v2006_v8, %s4295_s20  ;;  %v2447_v19 = vrot.slane %v4061_v22, 1  ;;  %v2448_v43 = vrot.slane %v6102_v58, 1  ;;  %v2022_v25 = vshll.u32 %v6125_v5, 16  ;;  %v1977_v47 = vpack.c.b16 %v1969_v50, %v1969_v50  ;;  %v3783_v50 = vld [vmem:[%s6005_s14 + $0x30] sm:$0xe] }
 0x219   : >> { %v2875_v8 = vsel %vm1982_vm3, %v2870_v27, %v2874_v23  ;;  %v2816_v45 = vunpack.c.l.b16 %v3635_v61  ;;  %v4064_v58 = vor.u32 %v4063_v30, %v4062_v38  ;;  %v2020_v4 = vshrl.u32 %v6125_v5, 16  ;;  %v1906_v38 = vld [vmem:[%s6005_s14 + $0x38] sm:$0x1]  ;;  %v3710_v30 = vld [vmem:[#allocation6 + $0x28] sm:$0xff]  ;;  %v3636_v27 = vld [vmem:[%s6005_s14 + $0x5c] sm:$0x1] }
 0x21a   : >> { %v2449_v42 = vsel %vm2119_vm11, %v2447_v19, %v2448_v43  ;;  %v2024_v57 = vrot.slane %v2022_v25, 1  ;;  %v2027_v9 = vshll.u32 %v1977_v47, 16  ;;  %v2879_v39 = vshll.u32 %v6147_v21, 16  ;;  %v3782_v23 = vld [vmem:[%s6005_s14 + $0x30] sm:$0xf0]  ;;  %2681 = vmatpush.bf16.msra.mxu1 %v3710_v30 }
 0x21b   : >> { %2403 = vrot.lane.b32.xlu0 %v2328_v28, %s4295_s20  ;;  %2146 = vrot.lane.b32.xlu1 %v2125_v18, %s4296_s9  ;;  %v6138_v28 = vpack.c.b16 %v2292_v16, %v2292_v16  ;;  %v2973_v18 = vrot.slane %v4058_v53, 1  ;;  %v2824_v2 = vpack.c.b16 %v2816_v45, %v2816_v45  ;;  %v2129_v34 = vrot.slane %v4064_v58, 1 }
 0x21c   : >> { %v2130_v20 = vrot.slane %v1977_v47, 1  ;;  %v2025_v29 = vor.u32 %v2024_v57, %v2020_v4  ;;  %v2877_v1 = vshrl.u32 %v6147_v21, 16  ;;  %v2881_v46 = vrot.slane %v2879_v39, 1  ;;  %v4069_v57 = vld [vmem:[%s6005_s14 + $0x3c] sm:$0xe] }
 0x21d   : >> { %v2349_v6 = vshll.u32 %v6138_v28, 16  ;;  %v2975_v56 = vsel %vm2119_vm11, %v2973_v18, %v2974_v0  ;;  %v2884_v59 = vshll.u32 %v2824_v2, 16  ;;  %v3797_v60 = vor.u32 %v3796_v48, %v3795_v49 }
 0x21e   : >> { %v2131_v40 = vsel %vm2119_vm11, %v2129_v34, %v2130_v20  ;;  %v6180_v26 = vor.u32 %v2881_v46, %v2877_v1  ;;  %v1970_v51 = vunpack.c.l.b16 %v1906_v38  ;;  %v2977_v22 = vrot.slane %v2824_v2, 1  ;;  %v3722_v2 = vld [vmem:[#allocation6 + $0x88] sm:$0xff]  ;;  %v3708_v1 = vld [vmem:[#allocation6 + $0x18] sm:$0xff]  ;;  %v4072_v38 = vld [vmem:[%s6005_s14 + $0x3c] sm:$0xe] }
 0x21f   : >> { %v2351_v37 = vrot.slane %v2349_v6, 1  ;;  %v2886_v53 = vrot.slane %v2884_v59, 1  ;;  %v2450_v18 = vrot.slane %v3797_v60, 1  ;;  %v2451_v0 = vrot.slane %v6138_v28, 1  ;;  %3102 = vmatpush.bf16.msra.mxu2 %v3722_v2  ;;  %v6744_v2 = vld [vmem:[#allocation20_spill] sm:$0xff] }
 0x220   : >> { %2467 = vrot.lane.b32.xlu2 %v2446_v54, %s4296_s9  ;;  %v2029_v54 = vrot.slane %v2027_v9, 1  ;;  %v2354_v61 = vshrl.u32 %v6150_v35, 16  ;;  %v2817_v6 = vunpack.c.l.b16 %v3636_v27  ;;  %v3784_v45 = vor.u32 %v3783_v50, %v3782_v23 }
 0x221   : >> { %v2352_v24 = vsel %vm1982_vm3, %v6100_v32, %v2351_v37  ;;  %v2887_v25 = vsel %vm1982_vm3, %v6180_v26, %v2886_v53  ;;  %v2452_v58 = vsel %vm2119_vm11, %v2450_v18, %v2451_v0  ;;  %v2891_v39 = vshll.u32 %v6173_v52, 16  ;;  %v3709_v37 = vld [vmem:[#allocation6 + $0x20] sm:$0xff] }
 0x222   : >> { %v2030_v16 = vsel %vm1982_vm3, %v2025_v29, %v2029_v54  ;;  %v2825_v9 = vpack.c.b16 %v2817_v6, %v2817_v6  ;;  %v2132_v34 = vrot.slane %v3784_v45, 1  ;;  %v6208_v29 = vld [vmem:[%s6005_s14 + $0x3c] sm:$0xf0]  ;;  %2682 = vmatpush.bf16.msra.mxu1 %v3709_v37  ;;  %v4070_v60 = vor.u32 %v4069_v57, %v6153_v55  ;;  %v3720_v55 = vld [vmem:[#allocation6 + $0x78] sm:$0xff] }
 0x223   : >> { %2928 = vrot.lane.b32.xlu0 %v2863_v36, %s4295_s20  ;;  %2992 = vrot.lane.b32.xlu1 %v2972_v10, %s4296_s9  ;;  %v3537_v36 = vld [vmem:[%s6005_s14 + $0x44] sm:$0x1]  ;;  %v3814_v10 = vld [vmem:[%s6005_s14 + $0x48] sm:$0xf0]  ;;  %v2893_v49 = vrot.slane %v2891_v39, 1  ;;  %v6743_v37 = vld [vmem:[#allocation19_spill] sm:$0xff] }
 0x224   : >> { %v2293_v11 = vunpack.c.l.b16 %v3537_v36  ;;  %v3816_v31 = vor.u32 %v3815_v15, %v3814_v10  ;;  %v3716_v36 = vld [vmem:[#allocation6 + $0x58] sm:$0xff]  ;;  %v6205_v15 = vld [vmem:[%s6005_s14 + $0x3c] sm:$0xff]   ;;  %v2896_v48 = vshll.u32 %v2825_v9, 16  ;;  %v2980_v23 = vrot.slane %v2825_v9, 1  ;;  %v3719_v39 = vld [vmem:[#allocation6 + $0x70] sm:$0xff] }
 0x225   : >> { %v3538_v10 = vld [vmem:[%s6005_s14 + $0x50] sm:$0x1]  ;;  %2580 = vmatpush.bf16.msra.mxu0 %v3716_v36  ;;  %v2453_v50 = vrot.slane %v4070_v60, 1  ;;  %v2046_v0 = vshll.u32 %v6205_v15, 16  ;;  %v6230_v6 = vld [vmem:[%s6005_s14 + $0x60] sm:$0xff]   ;;  %v6233_v45 = vld [vmem:[%s6005_s14 + $0x54] sm:$0xff]   ;;  %v3687_v36 = vor.u32 %v6744_v2, %v6743_v37 }
 0x226   : >> { %v6182_v3 = vpack.c.b16 %v2293_v11, %v2293_v11  ;;  %v2889_v11 = vshrl.u32 %v6173_v52, 16  ;;  %2683 = vmatpush.bf16.msra.mxu1 %v3708_v1  ;;  %v2903_v9 = vshll.u32 %v6230_v6, 16  ;;  %v3718_v60 = vld [vmem:[#allocation6 + $0x68] sm:$0xff]  ;;  %v3786_v37 = vld [vmem:[%s6005_s14 + $0x48] sm:$0xe] }
 0x227   : >> { %3252 = vmatpush.bf16.msra.mxu3 %v3687_v36 }
 0x228   : >> { %2083 = vrot.lane.b32.xlu2 %v2018_v62, %s4295_s20  ;;  %v2976_v62 = vrot.slane %v3816_v31, 1  ;;  %v2361_v43 = vshll.u32 %v6182_v3, 16  ;;  %v1907_v31 = vld [vmem:[%s6005_s14 + $0x44] sm:$0x1]  ;;  %v2894_v53 = vor.u32 %v2893_v49, %v2889_v11  ;;  %v2454_v18 = vrot.slane %v6182_v3, 1 }
 0x229   : >> { %v2901_v11 = vshrl.u32 %v6230_v6, 16  ;;  %v3817_v49 = vld [vmem:[%s6005_s14 + $0x60] sm:$0xf0] }
 0x22a   : >> { %v2978_v47 = vsel %vm2119_vm11, %v2976_v62, %v2977_v22  ;;  %v2363_v4 = vrot.slane %v2361_v43, 1  ;;  %v1971_v62 = vunpack.c.l.b16 %v1907_v31  ;;  %v3707_v22 = vld [vmem:[#allocation6 + $0x10] sm:$0xff] }
 0x22b   : >> { %2405 = vrot.lane.b32.xlu0 %v2340_v63, %s4295_s20  ;;  %2148 = vrot.lane.b32.xlu1 %v2128_v17, %s4296_s9  ;;  %v6176_v63 = vld [vmem:[%s6005_s14 + $0x54] sm:$0xf0]  ;;  %v2356_v17 = vshll.u32 %v6150_v35, 16 }
 0x22c   : >> { %2684 = vmatpush.bf16.msra.mxu1 %v3707_v22  ;;  %v1908_v22 = vld [vmem:[%s6005_s14 + $0x50] sm:$0x1] }
 0x22d   : >> { %v2358_v19 = vrot.slane %v2356_v17, 1  ;;  %v3721_v17 = vld [vmem:[#allocation6 + $0x80] sm:$0xff] }
 0x22e   : >> { %3103 = vmatpush.bf16.msra.mxu2 %v3721_v17  ;;  %v6745_v17 = vld [vmem:[#allocation17_spill] sm:$0xff] }
 0x230   : >> { %2469 = vrot.lane.b32.xlu2 %v2449_v42, %s4296_s9  ;;  %v2359_v42 = vor.u32 %v2358_v19, %v2354_v61  ;;  %v3714_v61 = vld [vmem:[#allocation6 + $0x48] sm:$0xff] }
 0x231   : >> { %v3706_v19 = vld [vmem:[#allocation6 + $0x8] sm:$0xff] }
 0x232   : >> { %v2364_v46 = vsel %vm1982_vm3, %v2359_v42, %v2363_v4  ;;  %3104 = vmatpush.bf16.msra.mxu2 %v3720_v55  ;;  %v2044_v42 = vshrl.u32 %v6205_v15, 16  ;;  %v2048_v4 = vrot.slane %v2046_v0, 1  ;;  %2685 = vmatpush.bf16.msra.mxu1 %v3706_v19  ;;  %v6270_v55 = vld [vmem:[%s6005_s14 + $0x6c] sm:$0xff]  }
 0x233   : >> { %2930 = vrot.lane.b32.xlu0 %v2875_v8, %s4295_s20  ;;  %2994 = vrot.lane.b32.xlu1 %v2975_v56, %s4296_s9  ;;  %v1978_v8 = vpack.c.b16 %v1970_v51, %v1970_v51  ;;  %v4066_v56 = vld [vmem:[%s6005_s14 + $0x54] sm:$0xe]  ;;  %v2898_v51 = vrot.slane %v2896_v48, 1  ;;  %v3818_v48 = vld [vmem:[%s6005_s14 + $0x60] sm:$0xe] }
 0x234   : >> { %v3187_v0 = vld [vmem:[%s6258_s27 + $0x8] sm:$0xff] }
 0x235   : >> { %v2039_v28 = vshll.u32 %v1978_v8, 16  ;;  %v2133_v20 = vrot.slane %v1978_v8, 1  ;;  %v2899_v43 = vsel %vm1982_vm3, %v2894_v53, %v2898_v51  ;;  %v1979_v8 = vpack.c.b16 %v1971_v62, %v1971_v62  ;;  %v6746_v53 = vld [vmem:[#allocation18_spill] sm:$0xff] }
 0x236   : >> { %3105 = vmatpush.bf16.msra.mxu2 %v3719_v39  ;;  %v3683_v51 = vor.u32 %v6746_v53, %v6745_v17  ;;  %v3785_v39 = vld [vmem:[%s6005_s14 + $0x48] sm:$0xf0]  ;;  %v3540_v17 = vld [vmem:[%s6005_s14 + $0x68] sm:$0x1]  ;;  %v6306_v53 = vld [vmem:[%s6005_s14 + $0x54] sm:$0xff]  }
 0x237   : >> { %v2041_v54 = vrot.slane %v2039_v28, 1  ;;  %v2134_v59 = vsel %vm2119_vm11, %v2132_v34, %v2133_v20  ;;  %v2455_v28 = vsel %vm2119_vm11, %v2453_v50, %v2454_v18  ;;  %v2051_v57 = vshll.u32 %v1979_v8, 16  ;;  %v6273_v50 = vld [vmem:[%s6005_s14 + $0x6c] sm:$0xf0]  ;;  %v3186_v18 = vld [vmem:[%s6258_s27] sm:$0xff] }
 0x238   : >> { %2085 = vrot.lane.b32.xlu2 %v2030_v16, %s4295_s20  ;;  %3253 = vmatpush.bf16.msra.mxu3 %v3683_v51  ;;  %v4080_v51 = vld [vmem:[%s6005_s14 + $0x54] sm:$0xf0] }
 0x239   : >> { %v2042_v16 = vsel %vm1982_vm3, %v6100_v32, %v2041_v54  ;;  %v3637_v32 = vld [vmem:[%s6005_s14 + $0x68] sm:$0x1]  ;;  %v3705_v54 = vld [vmem:[#allocation6] sm:$0xff] }
 0x23a   : >> { %2686 = vmatpush.bf16.msra.mxu1 %v3705_v54  ;;  %3106 = vmatpush.bf16.msra.mxu2 %v3718_v60 }
 0x23b   : >> { %2407 = vrot.lane.b32.xlu0 %v2352_v24, %s4295_s20  ;;  %2150 = vrot.lane.b32.xlu1 %v2131_v40, %s4296_s9  ;;  %v2294_v24 = vunpack.c.l.b16 %v3538_v10  ;;  %v4067_v40 = vor.u32 %v4066_v56, %v6176_v63  ;;  %v3715_v63 = vld [vmem:[#allocation6 + $0x50] sm:$0xff]  ;;  %v6236_v56 = vld [vmem:[%s6005_s14 + $0x54] sm:$0xf0]  ;;  %v3539_v10 = vld [vmem:[%s6005_s14 + $0x5c] sm:$0x1] }
 0x23c   : >> { %2581 = vmatpush.bf16.msra.mxu0 %v3715_v63  ;;  %v2295_v31 = vunpack.c.l.b16 %v3539_v10 }
 0x23d   : >> { %v6221_v30 = vpack.c.b16 %v2294_v24, %v2294_v24  ;;  %v2979_v27 = vrot.slane %v4067_v40, 1  ;;  %v2049_v24 = vor.u32 %v2048_v4, %v2044_v42  ;;  %v2905_v40 = vrot.slane %v2903_v9, 1  ;;  %v3711_v42 = vld [vmem:[#allocation6 + $0x30] sm:$0xff]  ;;  %v3638_v9 = vld [vmem:[%s6005_s14 + $0x74] sm:$0x1] }
 0x23f   : >> { %v2981_v3 = vsel %vm2119_vm11, %v2979_v27, %v2980_v23  ;;  %v3712_v27 = vld [vmem:[#allocation6 + $0x38] sm:$0xff]  ;;  %v2457_v36 = vrot.slane %v6221_v30, 1 }
 0x240   : >> { %2471 = vrot.lane.b32.xlu2 %v2452_v58, %s4296_s9  ;;  %v4073_v58 = vor.u32 %v4072_v38, %v6208_v29  ;;  %2582 = vmatpush.bf16.msra.mxu0 %v3714_v61  ;;  %v3713_v29 = vld [vmem:[#allocation6 + $0x40] sm:$0xff]  ;;  %v3798_v38 = vld [vmem:[%s6005_s14 + $0x48] sm:$0xf0] }
 0x242   : >> { %v2135_v1 = vrot.slane %v4073_v58, 1 }
 0x243   : >> { %2932 = vrot.lane.b32.xlu0 %v2887_v25, %s4295_s20  ;;  %2996 = vrot.lane.b32.xlu1 %v2978_v47, %s4296_s9  ;;  %v2373_v25 = vshll.u32 %v6221_v30, 16  ;;  %v2818_v47 = vunpack.c.l.b16 %v3637_v32  ;;  %v3819_v32 = vor.u32 %v3818_v48, %v3817_v49  ;;  %v4075_v30 = vld [vmem:[%s6005_s14 + $0x6c] sm:$0xe] }
 0x244   : >> { %2583 = vmatpush.bf16.msra.mxu0 %v3713_v29 }
 0x245   : >> { %v2375_v34 = vrot.slane %v2373_v25, 1  ;;  %v6248_v20 = vpack.c.b16 %v2818_v47, %v2818_v47  ;;  %v6279_v25 = vor.u32 %v2905_v40, %v2901_v11  ;;  %v2380_v47 = vshll.u32 %v6233_v45, 16  ;;  %v4078_v40 = vld [vmem:[%s6005_s14 + $0x54] sm:$0xe] }
 0x246   : >> { %v2982_v4 = vrot.slane %v3819_v32, 1  ;;  %v3787_v11 = vor.u32 %v3786_v37, %v3785_v39 }
 0x247   : >> { %v2376_v62 = vsel %vm1982_vm3, %v6180_v26, %v2375_v34  ;;  %v2908_v63 = vshll.u32 %v6248_v20, 16  ;;  %v2378_v34 = vshrl.u32 %v6233_v45, 16  ;;  %v2382_v10 = vrot.slane %v2380_v47, 1  ;;  %v1909_v47 = vld [vmem:[%s6005_s14 + $0x5c] sm:$0x1] }
 0x248   : >> { %2087 = vrot.lane.b32.xlu2 %v2042_v16, %s4295_s20  ;;  %v3799_v16 = vld [vmem:[%s6005_s14 + $0x48] sm:$0xe]  ;;  %2584 = vmatpush.bf16.msra.mxu0 %v3712_v27  ;;  %v1973_v39 = vunpack.c.l.b16 %v1909_v47 }
 0x249   : >> { %v3800_v19 = vor.u32 %v3799_v16, %v3798_v38  ;;  %v2910_v58 = vrot.slane %v2908_v63, 1  ;;  %v2915_v38 = vshll.u32 %v6270_v55, 16  ;;  %v2138_v16 = vrot.slane %v3787_v11, 1  ;;  %v3188_v63 = vld [vmem:[%s6258_s27 + $0x10] sm:$0xff] }
 0x24b   : >> { %2409 = vrot.lane.b32.xlu0 %v2364_v46, %s4295_s20  ;;  %2152 = vrot.lane.b32.xlu1 %v2134_v59, %s4296_s9  ;;  %v2136_v46 = vrot.slane %v1979_v8, 1  ;;  %v2053_v59 = vrot.slane %v2051_v57, 1  ;;  %v6281_v8 = vpack.c.b16 %v2295_v31, %v2295_v31  ;;  %v2983_v57 = vrot.slane %v6248_v20, 1 }
 0x24c   : >> { %v2456_v2 = vrot.slane %v3800_v19, 1  ;;  %2585 = vmatpush.bf16.msra.mxu0 %v3711_v42  ;;  %v2911_v20 = vsel %vm1982_vm3, %v6279_v25, %v2910_v58  ;;  %v4081_v58 = vld [vmem:[%s6005_s14 + $0x54] sm:$0xe]  ;;  %v4079_v42 = vor.u32 %v4078_v40, %v6236_v56 }
 0x24d   : >> { %v2137_v23 = vsel %vm2119_vm11, %v2135_v1, %v2136_v46  ;;  %v2054_v61 = vsel %vm1982_vm3, %v2049_v24, %v2053_v59  ;;  %v2385_v29 = vshll.u32 %v6281_v8, 16  ;;  %v2819_v1 = vunpack.c.l.b16 %v3638_v9 }
 0x24e   : >> { %v2984_v46 = vsel %vm2119_vm11, %v2982_v4, %v2983_v57  ;;  %v2458_v49 = vsel %vm2119_vm11, %v2456_v2, %v2457_v36  ;;  %v2383_v24 = vor.u32 %v2382_v10, %v2378_v34  ;;  %v2460_v36 = vrot.slane %v6281_v8, 1 }
 0x24f   : >> { %v2387_v59 = vrot.slane %v2385_v29, 1  ;;  %v2827_v31 = vpack.c.b16 %v2819_v1, %v2819_v1  ;;  %v1981_v29 = vpack.c.b16 %v1973_v39, %v1973_v39  ;;  %v3192_v39 = vld [vmem:[%s6258_s27 + $0x30] sm:$0xff] }
 0x250   : >> { %2473 = vrot.lane.b32.xlu2 %v2455_v28, %s4296_s9  ;;  %v1972_v28 = vunpack.c.l.b16 %v1908_v22  ;;  %v3189_v22 = vld [vmem:[%s6258_s27 + $0x18] sm:$0xff] }
 0x251   : >> { %v2388_v27 = vsel %vm1982_vm3, %v2383_v24, %v2387_v59  ;;  %v2986_v2 = vrot.slane %v2827_v31, 1  ;;  %v2142_v24 = vrot.slane %v1981_v29, 1 }
 0x252   : >> { %v1980_v54 = vpack.c.b16 %v1972_v28, %v1972_v28 }
 0x253   : >> { %2934 = vrot.lane.b32.xlu0 %v2899_v43, %s4295_s20  ;;  %2998 = vrot.lane.b32.xlu1 %v2981_v3, %s4296_s9  ;;  %v3202_v43 = vpack.c.bf16 %v3187_v0, %v3186_v18  ;;  %v3717_v3 = vld [vmem:[#allocation6 + $0x60] sm:$0xff]  ;;  %v2917_v18 = vrot.slane %v2915_v38, 1  ;;  %v2920_v0 = vshll.u32 %v2827_v31, 16  ;;  %v3190_v38 = vld [vmem:[%s6258_s27 + $0x20] sm:$0xff] }
 0x254   : >> { %3107 = vmatpush.bf16.msra.mxu2 %v3717_v3  ;;  %v2063_v48 = vshll.u32 %v1980_v54, 16  ;;  %v2139_v60 = vrot.slane %v1980_v54, 1  ;;  %v3203_v3 = vpack.c.bf16 %v3189_v22, %v3188_v63  ;;  %v4082_v54 = vor.u32 %v4081_v58, %v4080_v51  ;;  %v3801_v51 = vld [vmem:[%s6005_s14 + $0x60] sm:$0xf0] }
 0x255   : >> { %3688 = vmatmul.msk.bf16.vlgmr.msra.gmra.mxu3 %vm6747_vm5, %v3202_v43  ;;  %v4076_v43 = vor.u32 %v4075_v30, %v6273_v50  ;;  %v2922_v57 = vrot.slane %v2920_v0, 1  ;;  %v2459_v50 = vrot.slane %v4079_v42, 1  ;;  %v2075_v30 = vshll.u32 %v1981_v29, 16  ;;  %vm6761_vm5 = vmmov %vm6750_vm0 }
 0x256   : >> { %v2140_v19 = vsel %vm2119_vm11, %v2138_v16, %v2139_v60  ;;  %v3191_v16 = vld [vmem:[%s6258_s27 + $0x28] sm:$0xff] }
 0x257   : >> { %v2985_v37 = vrot.slane %v4076_v43, 1  ;;  %v2461_v1 = vsel %vm2119_vm11, %v2459_v50, %v2460_v36  ;;  %v2077_v31 = vrot.slane %v2075_v30, 1 }
 0x258   : >> { %2089 = vrot.lane.b32.xlu2 %v2054_v61, %s4295_s20  ;;  %v2296_v61 = vunpack.c.l.b16 %v3540_v17 }
 0x25a   : >> { %v2304_v9 = vpack.c.b16 %v2296_v61, %v2296_v61 }
 0x25b   : >> { %2411 = vrot.lane.b32.xlu0 %v2376_v62, %s4295_s20  ;;  %2154 = vrot.lane.b32.xlu1 %v2137_v23, %s4296_s9  ;;  %v2065_v62 = vrot.slane %v2063_v48, 1  ;;  %v2913_v23 = vshrl.u32 %v6270_v55, 16  ;;  %v2141_v48 = vrot.slane %v4082_v54, 1 }
 0x25c   : >> { %v2397_v10 = vshll.u32 %v2304_v9, 16  ;;  %v2463_v47 = vrot.slane %v2304_v9, 1 }
 0x25d   : >> { %v2066_v28 = vsel %vm1982_vm3, %v6180_v26, %v2065_v62  ;;  %v2918_v4 = vor.u32 %v2917_v18, %v2913_v23  ;;  %v2070_v26 = vshll.u32 %v6306_v53, 16  ;;  %v3802_v62 = vld [vmem:[%s6005_s14 + $0x60] sm:$0xe]  ;;  %v3204_v23 = vpack.c.bf16 %v3191_v16, %v3190_v38 }
 0x25e   : >> { %v2399_v8 = vrot.slane %v2397_v10, 1  ;;  %v3803_v0 = vor.u32 %v3802_v62, %v3801_v51  ;;  %v3197_v51 = vld [vmem:[%s6258_s27 + $0x58] sm:$0xff] }
 0x25f   : >> { %v2923_v34 = vsel %vm1982_vm3, %v2918_v4, %v2922_v57  ;;  %v2072_v11 = vrot.slane %v2070_v26, 1 }
 0x260   : >> { %2475 = vrot.lane.b32.xlu2 %v2458_v49, %s4296_s9  ;;  %v2400_v22 = vsel %vm1982_vm3, %v6279_v25, %v2399_v8  ;;  %v2462_v43 = vrot.slane %v3803_v0, 1 }
 0x262   : >> { %v2145_v32 = vpop.permute.xlu2 %2144  ;;  %v2464_v42 = vsel %vm2119_vm11, %v2462_v43, %v2463_v47 }
 0x263   : >> { %2936 = vrot.lane.b32.xlu0 %v2911_v20, %s4295_s20  ;;  %3000 = vrot.lane.b32.xlu1 %v2984_v46, %s4296_s9  ;;  %v2987_v20 = vsel %vm2119_vm11, %v2985_v37, %v2986_v2  ;;  %v2068_v46 = vshrl.u32 %v6306_v53, 16  ;;  %v3193_v37 = vld [vmem:[%s6258_s27 + $0x38] sm:$0xff] }
 0x264   : >> { %v3205_v9 = vpack.c.bf16 %v3193_v37, %v3192_v39 }
 0x265   : >> { %3689 = vmatmul.msk.bf16.gmra.mxu3 %vm6748_vm2, %v3203_v3  ;;  %v2073_v40 = vor.u32 %v2072_v11, %v2068_v46  ;;  %vm6762_vm2 = vmmov %vm6750_vm0 }
 0x267   : >> { %v2078_v18 = vsel %vm1982_vm3, %v2073_v40, %v2077_v31  ;;  %vm6759_vm3 = vmmov %vm6750_vm0 }
 0x268   : >> { %2091 = vrot.lane.b32.xlu2 %v2066_v28, %s4295_s20 }
 0x26a   : >> { %v2466_v56 = vpop.permute.xlu2 %2465 }
 0x26b   : >> { %2413 = vrot.lane.b32.xlu0 %v2388_v27, %s4295_s20  ;;  %2156 = vrot.lane.b32.xlu1 %v2140_v19, %s4296_s9  ;;  %v2143_v27 = vsel %vm2119_vm11, %v2141_v48, %v2142_v24  ;;  %vm6760_vm11 = vmmov %vm6750_vm0 }
 0x270   : >> { %2477 = vrot.lane.b32.xlu2 %v2461_v1, %s4296_s9  ;;  %v3194_v1 = vld [vmem:[%s6258_s27 + $0x40] sm:$0xff] }
 0x272   : >> { %v2082_v17 = vpop.permute.xlu2 %2081 }
 0x273   : >> { %2938 = vrot.lane.b32.xlu0 %v2923_v34, %s4295_s20  ;;  %3002 = vrot.lane.b32.xlu1 %v2987_v20, %s4296_s9  ;;  %v2163_v36 = vsel %vm6755_vm10, %v6051_v41, %v2082_v17  ;;  %v3195_v41 = vld [vmem:[%s6258_s27 + $0x48] sm:$0xff]  ;;  %v3196_v17 = vld [vmem:[%s6258_s27 + $0x50] sm:$0xff]  ;;  %vm6768_vm10 = vmmov %vm6750_vm0 }
 0x274   : >> { %v3206_v11 = vpack.c.bf16 %v3195_v41, %v3194_v1 }
 0x275   : >> { %v2925_v49 = vpop.permute.xlu0 %2924  ;;  %v2080_v59 = vpop.permute.xlu1 %2079  ;;  %3690 = vmatmul.msk.bf16.gmra.mxu3 %vm6751_vm13, %v3204_v23  ;;  %vm6764_vm13 = vmmov %vm6750_vm0 }
 0x276   : >> { %v2161_v60 = vsel %vm6749_vm6, %v6010_v14, %v2080_v59  ;;  %v4046_v14 = vld [vmem:[%s6005_s14 + $0x18] sm:$0xff]   ;;  %vm6763_vm6 = vmmov %vm6750_vm0  ;;  %s3343_s14 = sshll.u32 (%p1878_p1), %s3340_s30, 4  ;;  %s3344_s14 = int_to_ptr.hbm [resolvable:$true] %s3343_s14 }
 0x277   : >> { %v2178_v63 = vsel %vm2176_vm12, %v2161_v60, %v2145_v32  ;;  %v3005_v61 = vsel %vm6750_vm0, %v4046_v14, %v2925_v49 }
 0x278   : >> { %3605 = vmatmul.msk.bf16.vlgmr.msra.gmra.mxu1 %vm2561_vm14, %v2178_v63  ;;  %2093 = vrot.lane.b32.xlu2 %v2078_v18, %s4295_s20 }
 0x27a   : >> { %v2468_v58 = vpop.permute.xlu2 %2467 }
 0x27b   : >> { %2415 = vrot.lane.b32.xlu0 %v2400_v22, %s4295_s20  ;;  %2158 = vrot.lane.b32.xlu1 %v2143_v27, %s4296_s9  ;;  %s3329_s20 = scalar_lea.sflag (%p1878_p1), [#allocation5], %s4445_s17 }
 0x27d   : >> { %v2989_v19 = vpop.permute.xlu0 %2988  ;;  %v2402_v25 = vpop.permute.xlu1 %2401 }
 0x27e   : >> { %v3021_v32 = vsel %vm2176_vm12, %v3005_v61, %v2989_v19  ;;  %v2482_v3 = vsel %vm6752_vm1, %v6015_v44, %v2402_v25  ;;  %vm6765_vm1 = vmmov %vm6750_vm0 }
 0x27f   : >> { %3671 = vmatmul.msk.bf16.vlgmr.msra.gmra.mxu2 %vm2561_vm14, %v3021_v32  ;;  %v2498_v28 = vsel %vm2176_vm12, %v2482_v3, %v2466_v56  ;;  %v3199_v32 = vld [vmem:[%s6258_s27 + $0x68] sm:$0xff] }
 0x280   : >> { %3573 = vmatmul.msk.bf16.vlgmr.msra.gmra.mxu0 %vm2561_vm14, %v2498_v28  ;;  %2479 = vrot.lane.b32.xlu2 %v2464_v42, %s4296_s9  ;;  %s4217_s9 = sshra.s32 (%p1878_p1), %s3344_s14, 4  ;;  %s4218_s9 = int_to_ptr.hbm [resolvable:$true] %s4217_s9 }
 0x281   : > { %s4219_s10 = scalar_lea.hbm (%p1878_p1), %s4218_s9, 256  ;;  %p4224_p9 = scmp.lt.s32.totalorder (%p1878_p1), %s4218_s9, %s6555_s6 }
 0x282   : >> { %v2084_v2 = vpop.permute.xlu2 %2083  ;;  %p4220_p4 = scmp.ne.s32.totalorder (%p1878_p1), %s4218_s9, %s4219_s10  ;;  %p4225_p2 = scmp.lt.s32.totalorder (%p1878_p1), %s4223_s25, %s4219_s10 }
 0x283   : >> { %v2165_v49 = vsel %vm6759_vm3, %v4046_v14, %v2084_v2  ;;  %vm6772_vm3 = vmmov %vm6750_vm0 }
 0x284   : > { %p4221_p8 = pnand (%p1878_p1), %p4220_p4, %p4417_p7  ;;  %p4226_p10 = por (%p1878_p1), %p4225_p2, %p4224_p9 }
 0x285   : >> { %v2927_v4 = vpop.permute.xlu0 %2926  ;;  %v2991_v57 = vpop.permute.xlu1 %2990  ;;  %3691 = vmatmul.msk.bf16.gmra.mxu3 %vm6754_vm9, %v3205_v9  ;;  %vm6767_vm9 = vmmov %vm6750_vm0 }
 0x286   : >> { %v3007_v44 = vsel %vm6753_vm7, %v6023_v13, %v2927_v4  ;;  %vm6766_vm7 = vmmov %vm6750_vm0  ;;  %p4222_p11 = pneg (%p1878_p1), %p4221_p8 }
 0x287   : >> { %v3023_v34 = vsel %vm2176_vm12, %v3007_v44, %v2991_v57 }
 0x288   : > { %p4227_p12 = pnand (%p1878_p1), %p4226_p10, %p4222_p11 }
 0x28a   : >> { %v2470_v20 = vpop.permute.xlu2 %2469 }
 0x28d   : >> { %v2404_v50 = vpop.permute.xlu0 %2403  ;;  %v2147_v56 = vpop.permute.xlu1 %2146 }
 0x28e   : >> { %v2484_v26 = vsel %vm6756_vm4, %v4046_v14, %v2404_v50  ;;  %v2180_v10 = vsel %vm2176_vm12, %v2163_v36, %v2147_v56  ;;  %v3201_v50 = vld [vmem:[%s6258_s27 + $0x78] sm:$0xff]  ;;  %vm6769_vm4 = vmmov %vm6750_vm0 }
 0x28f   : >> { %3672 = vmatmul.msk.bf16.gmra.mxu2 %vm2561_vm14, %v3023_v34  ;;  %v2500_v29 = vsel %vm2176_vm12, %v2484_v26, %v2468_v58  ;;  %3606 = vmatmul.msk.bf16.gmra.mxu1 %vm2561_vm14, %v2180_v10 }
 0x290   : >> { %3574 = vmatmul.msk.bf16.gmra.mxu0 %vm2561_vm14, %v2500_v29 }
 0x292   : >> { %v2086_v46 = vpop.permute.xlu2 %2085 }
 0x293   : >> { %v2167_v27 = vsel %vm6763_vm6, %v6125_v5, %v2086_v46  ;;  %v3198_v5 = vld [vmem:[%s6258_s27 + $0x60] sm:$0xff]  ;;  %vm6776_vm6 = vmmov %vm6750_vm0 }
 0x294   : >> { %v3208_v43 = vpack.c.bf16 %v3199_v32, %v3198_v5 }
 0x295   : >> { %v2929_v13 = vpop.permute.xlu0 %2928  ;;  %v2993_v54 = vpop.permute.xlu1 %2992  ;;  %3692 = vmatmul.msk.bf16.gmra.mxu3 %vm6758_vm8, %v3206_v11  ;;  %vm6771_vm8 = vmmov %vm6750_vm0 }
 0x296   : >> { %v3009_v30 = vsel %vm6757_vm15, %v6066_v7, %v2929_v13  ;;  %vm6770_vm15 = vmmov %vm6750_vm0 }
 0x297   : >> { %v3025_v59 = vsel %vm2176_vm12, %v3009_v30, %v2993_v54 }
 0x29a   : >> { %v2472_v38 = vpop.permute.xlu2 %2471 }
 0x29d   : >> { %v2406_v8 = vpop.permute.xlu0 %2405  ;;  %v2149_v24 = vpop.permute.xlu1 %2148 }
 0x29e   : >> { %v2486_v48 = vsel %vm6760_vm11, %v6069_v12, %v2406_v8  ;;  %v2182_v40 = vsel %vm2176_vm12, %v2165_v49, %v2149_v24  ;;  %v3207_v12 = vpack.c.bf16 %v3197_v51, %v3196_v17  ;;  %vm6773_vm11 = vmmov %vm6750_vm0 }
 0x29f   : >> { %3673 = vmatmul.msk.bf16.gmra.mxu2 %vm2561_vm14, %v3025_v59  ;;  %v2502_v31 = vsel %vm2176_vm12, %v2486_v48, %v2470_v20  ;;  %3607 = vmatmul.msk.bf16.gmra.mxu1 %vm2561_vm14, %v2182_v40 }
 0x2a0   : >> { %3575 = vmatmul.msk.bf16.gmra.mxu0 %vm2561_vm14, %v2502_v31 }
 0x2a2   : >> { %v2088_v62 = vpop.permute.xlu2 %2087 }
 0x2a3   : >> { %v2169_v28 = vsel %vm6766_vm7, %v6066_v7, %v2088_v62 }
 0x2a5   : >> { %v2931_v16 = vpop.permute.xlu0 %2930  ;;  %v2995_v60 = vpop.permute.xlu1 %2994  ;;  %3693 = vmatmul.msk.bf16.gmra.mxu3 %vm6762_vm2, %v3207_v12  ;;  %vm6775_vm2 = vmmov %vm6750_vm0 }
 0x2a6   : >> { %v3011_v63 = vsel %vm6761_vm5, %v6095_v33, %v2931_v16  ;;  %vm6774_vm5 = vmmov %vm6750_vm0 }
 0x2a7   : >> { %v3027_v0 = vsel %vm2176_vm12, %v3011_v63, %v2995_v60 }
 0x2aa   : >> { %v2474_v33 = vpop.permute.xlu2 %2473 }
 0x2ad   : >> { %v2408_v22 = vpop.permute.xlu0 %2407  ;;  %v2151_v18 = vpop.permute.xlu1 %2150 }
 0x2ae   : >> { %v2488_v23 = vsel %vm6750_vm0, %v6066_v7, %v2408_v22  ;;  %v2184_v14 = vsel %vm2176_vm12, %v2167_v27, %v2151_v18  ;;  %v3200_v7 = vld [vmem:[%s6258_s27 + $0x70] sm:$0xff] }
 0x2af   : >> { %3674 = vmatmul.msk.bf16.gmra.mxu2 %vm2561_vm14, %v3027_v0  ;;  %v2504_v61 = vsel %vm2176_vm12, %v2488_v23, %v2472_v38  ;;  %3608 = vmatmul.msk.bf16.gmra.mxu1 %vm2561_vm14, %v2184_v14  ;;  %v3209_v36 = vpack.c.bf16 %v3201_v50, %v3200_v7  ;;  %v6777_v23 = vld [vmem:[#allocation16_spill] sm:$0xff] }
 0x2b0   : >> { %3576 = vmatmul.msk.bf16.gmra.mxu0 %vm2561_vm14, %v2504_v61  ;;  %v6457_v18 = vperm.slane %v6777_v23, 0 }
 0x2b2   : >> { %v2090_v47 = vpop.permute.xlu2 %2089 }
 0x2b3   : >> { %v2171_v56 = vsel %vm6770_vm15, %v6205_v15, %v2090_v47 }
 0x2b5   : >> { %v2933_v19 = vpop.permute.xlu0 %2932  ;;  %v2997_v25 = vpop.permute.xlu1 %2996  ;;  %3694 = vmatmul.msk.bf16.gmra.mxu3 %vm6765_vm1, %v3208_v43 }
 0x2b6   : >> { %v3013_v3 = vsel %vm6764_vm13, %v6147_v21, %v2933_v19 }
 0x2b7   : >> { %v3029_v57 = vsel %vm2176_vm12, %v3013_v3, %v2997_v25 }
 0x2ba   : >> { %v2476_v2 = vpop.permute.xlu2 %2475 }
 0x2bd   : >> { %v2410_v58 = vpop.permute.xlu0 %2409  ;;  %v2153_v4 = vpop.permute.xlu1 %2152 }
 0x2be   : >> { %v2490_v42 = vsel %vm6767_vm9, %v6150_v35, %v2410_v58  ;;  %v2186_v39 = vsel %vm2176_vm12, %v2169_v28, %v2153_v4 }
 0x2bf   : >> { %3675 = vmatmul.msk.bf16.gmra.mxu2 %vm2561_vm14, %v3029_v57  ;;  %v2506_v37 = vsel %vm2176_vm12, %v2490_v42, %v2474_v33  ;;  %3609 = vmatmul.msk.bf16.gmra.mxu1 %vm2561_vm14, %v2186_v39 }
 0x2c0   : >> { %3577 = vmatmul.msk.bf16.gmra.mxu0 %vm2561_vm14, %v2506_v37 }
 0x2c2   : >> { %v2092_v20 = vpop.permute.xlu2 %2091 }
 0x2c3   : >> { %v2173_v11 = vsel %vm6773_vm11, %v6147_v21, %v2092_v20 }
 0x2c5   : >> { %v2935_v9 = vpop.permute.xlu0 %2934  ;;  %v2999_v44 = vpop.permute.xlu1 %2998  ;;  %3695 = vmatmul.msk.bf16.gmra.mxu3 %vm6769_vm4, %v3209_v36 }
 0x2c6   : >> { %v3015_v35 = vsel %vm6768_vm10, %v6173_v52, %v2935_v9 }
 0x2c7   : >> { %v3031_v29 = vsel %vm2176_vm12, %v3015_v35, %v2999_v44 }
 0x2ca   : >> { %v2478_v15 = vpop.permute.xlu2 %2477 }
 0x2cd   : >> { %v2412_v26 = vpop.permute.xlu0 %2411  ;;  %v2155_v10 = vpop.permute.xlu1 %2154 }
 0x2ce   : >> { %v2492_v34 = vsel %vm6771_vm8, %v6147_v21, %v2412_v26  ;;  %v2188_v13 = vsel %vm2176_vm12, %v2171_v56, %v2155_v10 }
 0x2cf   : >> { %3676 = vmatmul.msk.bf16.gmra.mxu2 %vm2561_vm14, %v3031_v29  ;;  %v2508_v54 = vsel %vm2176_vm12, %v2492_v34, %v2476_v2  ;;  %3610 = vmatmul.msk.bf16.gmra.mxu1 %vm2561_vm14, %v2188_v13 }
 0x2d0   : >> { %3578 = vmatmul.msk.bf16.gmra.mxu0 %vm2561_vm14, %v2508_v54 }
 0x2d2   : >> { %v2094_v59 = vpop.permute.xlu2 %2093 }
 0x2d3   : >> { %v2175_v60 = vsel %vm6776_vm6, %v6306_v53, %v2094_v59 }
 0x2d5   : >> { %v2937_v52 = vpop.permute.xlu0 %2936  ;;  %v3001_v1 = vpop.permute.xlu1 %3000 }
 0x2d6   : >> { %v3017_v41 = vsel %vm6772_vm3, %v6230_v6, %v2937_v52 }
 0x2d7   : >> { %v3033_v49 = vsel %vm2176_vm12, %v3017_v41, %v3001_v1 }
 0x2d8   : >> { %v3255_v21 = vpop.f32.mrf.mxu3 }
 0x2da   : >> { %v2480_v38 = vpop.permute.xlu2 %2479 }
 0x2dd   : >> { %v2414_v46 = vpop.permute.xlu0 %2413  ;;  %v2157_v8 = vpop.permute.xlu1 %2156 }
 0x2de   : >> { %v2494_v30 = vsel %vm6774_vm5, %v6233_v45, %v2414_v46  ;;  %v2190_v48 = vsel %vm2176_vm12, %v2173_v11, %v2157_v8 }
 0x2df   : >> { %3677 = vmatmul.msk.bf16.gmra.mxu2 %vm2561_vm14, %v3033_v49  ;;  %v2510_v24 = vsel %vm2176_vm12, %v2494_v30, %v2478_v15  ;;  %3611 = vmatmul.msk.bf16.gmra.mxu1 %vm2561_vm14, %v2190_v48 }
 0x2e0   : >> { %3579 = vmatmul.msk.bf16.gmra.mxu0 %vm2561_vm14, %v2510_v24 }
 0x2e5   : >> { %v2939_v40 = vpop.permute.xlu0 %2938  ;;  %v3003_v31 = vpop.permute.xlu1 %3002 }
 0x2e6   : >> { %v3019_v45 = vsel %vm6775_vm2, %v6270_v55, %v2939_v40  ;;  %v3257_v55 = vpop.f32.mrf.mxu3 }
 0x2e7   : >> { %v3035_v62 = vsel %vm2176_vm12, %v3019_v45, %v3003_v31 }
 0x2ed   : >> { %v2416_v16 = vpop.permute.xlu0 %2415  ;;  %v2159_v51 = vpop.permute.xlu1 %2158 }
 0x2ee   : >> { %v2496_v17 = vsel %vm6750_vm0, %v6230_v6, %v2416_v16  ;;  %v2192_v12 = vsel %vm2176_vm12, %v2175_v60, %v2159_v51  ;;  %v3260_v22 = vpop.f32.mrf.mxu3 }
 0x2ef   : >> { %3678 = vmatmul.msk.bf16.gmra.mxu2 %vm2561_vm14, %v3035_v62  ;;  %v2512_v63 = vsel %vm2176_vm12, %v2496_v17, %v2480_v38  ;;  %3612 = vmatmul.msk.bf16.gmra.mxu1 %vm2561_vm14, %v2192_v12 }
 0x2f0   : >> { %3580 = vmatmul.msk.bf16.gmra.mxu0 %vm2561_vm14, %v2512_v63 }
 0x2f5   : >> { %v2688_v53 = vpop.f32.mrf.mxu1 }
 0x2f6   : >> { %v3262_v25 = vpop.f32.mrf.mxu3 }
 0x2fd   : >> { %v2587_v27 = vpop.f32.mrf.mxu0  ;;  %v2690_v61 = vpop.f32.mrf.mxu1 }
 0x2fe   : >> { %v2689_v6 = vadd.f32 %v2688_v53, %v2587_v27  ;;  %v3265_v4 = vpop.f32.mrf.mxu3 }
 0x302   : >> { %v3109_v0 = vpop.f32.mrf.mxu2 }
 0x303   : >> { %v3149_v14 = vadd.f32 %v3109_v0, %v2689_v6 }
 0x305   : >> { %v3168_v33 = vadd.f32 %v6457_v18, %v3149_v14  ;;  %v2589_v19 = vpop.f32.mrf.mxu0 }
 0x306   : >> { %v2691_v32 = vadd.f32 %v2690_v61, %v2589_v19  ;;  %v3267_v35 = vpop.f32.mrf.mxu3 }
 0x307   : >> { %v3295_v5 = vadd.f32 %v3255_v21, %v3168_v33 }
 0x309   : >> { %3312 = vst.msk [vmem:[%s6463_s8] sm:$0xff] %vm2176_vm12, %v3295_v5 }
 0x30a   : >> { %v3111_v43 = vpop.f32.mrf.mxu2 }
 0x30b   : >> { %v3150_v47 = vadd.f32 %v3111_v43, %v2691_v32 }
 0x30c   : >> { %v2693_v58 = vpop.f32.mrf.mxu1 }
 0x30d   : >> { %v3169_v3 = vadd.f32 %v6457_v18, %v3150_v47  ;;  %v2592_v28 = vpop.f32.mrf.mxu0 }
 0x30e   : >> { %v2694_v57 = vadd.f32 %v2693_v58, %v2592_v28  ;;  %v3270_v52 = vpop.f32.mrf.mxu3 }
 0x30f   : >> { %v3296_v42 = vadd.f32 %v3257_v55, %v3169_v3 }
 0x311   : >> { %3313 = vst.msk [vmem:[%s6463_s8 + $0x8] sm:$0xff] %vm2176_vm12, %v3296_v42 }
 0x312   : >> { %v3114_v39 = vpop.f32.mrf.mxu2 }
 0x313   : >> { %v3151_v37 = vadd.f32 %v3114_v39, %v2694_v57 }
 0x314   : >> { %v2695_v9 = vpop.f32.mrf.mxu1 }
 0x315   : >> { %v3170_v2 = vadd.f32 %v6457_v18, %v3151_v37  ;;  %v2594_v44 = vpop.f32.mrf.mxu0 }
 0x316   : >> { %v2696_v50 = vadd.f32 %v2695_v9, %v2594_v44  ;;  %v3272_v59 = vpop.f32.mrf.mxu3 }
 0x317   : >> { %v3297_v7 = vadd.f32 %v3260_v22, %v3170_v2 }
 0x319   : >> { %3314 = vst.msk [vmem:[%s6463_s8 + $0x10] sm:$0xff] %vm2176_vm12, %v3297_v7 }
 0x31a   : >> { %v3116_v36 = vpop.f32.mrf.mxu2 }
 0x31b   : >> { %v3152_v26 = vadd.f32 %v3116_v36, %v2696_v50 }
 0x31c   : >> { %v2698_v34 = vpop.f32.mrf.mxu1 }
 0x31d   : >> { %v3171_v56 = vadd.f32 %v6457_v18, %v3152_v26  ;;  %v2597_v10 = vpop.f32.mrf.mxu0 }
 0x31e   : >> { %v2699_v20 = vadd.f32 %v2698_v34, %v2597_v10  ;;  %v3275_v51 = vpop.f32.mrf.mxu3 }
 0x31f   : >> { %v3298_v29 = vadd.f32 %v3262_v25, %v3171_v56 }
 0x321   : >> { %3315 = vst.msk [vmem:[%s6463_s8 + $0x18] sm:$0xff] %vm2176_vm12, %v3298_v29 }
 0x322   : >> { %v3119_v13 = vpop.f32.mrf.mxu2 }
 0x323   : >> { %v3153_v54 = vadd.f32 %v3119_v13, %v2699_v20 }
 0x324   : >> { %v2700_v15 = vpop.f32.mrf.mxu1 }
 0x325   : >> { %v3172_v1 = vadd.f32 %v6457_v18, %v3153_v54  ;;  %v2599_v41 = vpop.f32.mrf.mxu0 }
 0x326   : >> { %v2701_v11 = vadd.f32 %v2700_v15, %v2599_v41  ;;  %v3277_v0 = vpop.f32.mrf.mxu3 }
 0x327   : >> { %v3299_v46 = vadd.f32 %v3265_v4, %v3172_v1 }
 0x329   : >> { %3316 = vst.msk [vmem:[%s6463_s8 + $0x20] sm:$0xff] %vm2176_vm12, %v3299_v46 }
 0x32a   : >> { %v3121_v30 = vpop.f32.mrf.mxu2 }
 0x32b   : >> { %v3154_v8 = vadd.f32 %v3121_v30, %v2701_v11 }
 0x32c   : >> { %v2703_v48 = vpop.f32.mrf.mxu1 }
 0x32d   : >> { %v3173_v49 = vadd.f32 %v6457_v18, %v3154_v8  ;;  %v2602_v24 = vpop.f32.mrf.mxu0 }
 0x32e   : >> { %v2704_v31 = vadd.f32 %v2703_v48, %v2602_v24  ;;  %v3280_v47 = vpop.f32.mrf.mxu3 }
 0x32f   : >> { %v3300_v40 = vadd.f32 %v3267_v35, %v3173_v49 }
 0x331   : >> { %3317 = vst.msk [vmem:[%s6463_s8 + $0x28] sm:$0xff] %vm2176_vm12, %v3300_v40 }
 0x332   : >> { %v3124_v21 = vpop.f32.mrf.mxu2 }
 0x333   : >> { %v3155_v45 = vadd.f32 %v3124_v21, %v2704_v31 }
 0x334   : >> { %v2705_v16 = vpop.f32.mrf.mxu1 }
 0x335   : >> { %v3174_v38 = vadd.f32 %v6457_v18, %v3155_v45  ;;  %v2604_v60 = vpop.f32.mrf.mxu0 }
 0x336   : >> { %v2706_v62 = vadd.f32 %v2705_v16, %v2604_v60  ;;  %v3282_v44 = vpop.f32.mrf.mxu3 }
 0x337   : >> { %v3301_v17 = vadd.f32 %v3270_v52, %v3174_v38 }
 0x339   : >> { %3318 = vst.msk [vmem:[%s6463_s8 + $0x30] sm:$0xff] %vm2176_vm12, %v3301_v17 }
 0x33a   : >> { %v3126_v12 = vpop.f32.mrf.mxu2 }
 0x33b   : >> { %v3156_v63 = vadd.f32 %v3126_v12, %v2706_v62 }
 0x33c   : >> { %v2708_v53 = vpop.f32.mrf.mxu1 }
 0x33d   : >> { %v3175_v55 = vadd.f32 %v6457_v18, %v3156_v63  ;;  %v2607_v22 = vpop.f32.mrf.mxu0 }
 0x33e   : >> { %v2709_v6 = vadd.f32 %v2708_v53, %v2607_v22  ;;  %v3285_v29 = vpop.f32.mrf.mxu3 }
 0x33f   : >> { %v3302_v27 = vadd.f32 %v3272_v59, %v3175_v55 }
 0x341   : >> { %3319 = vst.msk [vmem:[%s6463_s8 + $0x38] sm:$0xff] %vm2176_vm12, %v3302_v27 }
 0x342   : >> { %v3129_v23 = vpop.f32.mrf.mxu2 }
 0x343   : >> { %v3157_v14 = vadd.f32 %v3129_v23, %v2709_v6 }
 0x344   : >> { %v2710_v33 = vpop.f32.mrf.mxu1 }
 0x345   : >> { %v3176_v61 = vadd.f32 %v6457_v18, %v3157_v14  ;;  %v2609_v19 = vpop.f32.mrf.mxu0 }
 0x346   : >> { %v2711_v5 = vadd.f32 %v2710_v33, %v2609_v19  ;;  %v3287_v11 = vpop.f32.mrf.mxu3 }
 0x347   : >> { %v3303_v25 = vadd.f32 %v3275_v51, %v3176_v61 }
 0x349   : >> { %3320 = vst.msk [vmem:[%s6463_s8 + $0x40] sm:$0xff] %vm2176_vm12, %v3303_v25 }
 0x34a   : >> { %v3131_v32 = vpop.f32.mrf.mxu2 }
 0x34b   : >> { %v3158_v43 = vadd.f32 %v3131_v32, %v2711_v5 }
 0x34c   : >> { %v2713_v58 = vpop.f32.mrf.mxu1 }
 0x34d   : >> { %v3177_v3 = vadd.f32 %v6457_v18, %v3158_v43  ;;  %v2612_v28 = vpop.f32.mrf.mxu0 }
 0x34e   : >> { %v2714_v4 = vadd.f32 %v2713_v58, %v2612_v28  ;;  %v3290_v45 = vpop.f32.mrf.mxu3 }
 0x34f   : >> { %v3304_v42 = vadd.f32 %v3277_v0, %v3177_v3 }
 0x351   : >> { %3321 = vst.msk [vmem:[%s6463_s8 + $0x48] sm:$0xff] %vm2176_vm12, %v3304_v42 }
 0x352   : >> { %v3134_v57 = vpop.f32.mrf.mxu2 }
 0x353   : >> { %v3159_v39 = vadd.f32 %v3134_v57, %v2714_v4 }
 0x354   : >> { %v2715_v2 = vpop.f32.mrf.mxu1 }
 0x355   : >> { %v3178_v37 = vadd.f32 %v6457_v18, %v3159_v39  ;;  %v2614_v9 = vpop.f32.mrf.mxu0 }
 0x356   : >> { %v2716_v50 = vadd.f32 %v2715_v2, %v2614_v9  ;;  %v3292_v55 = vpop.f32.mrf.mxu3 }
 0x357   : >> { %v3305_v7 = vadd.f32 %v3280_v47, %v3178_v37 }
 0x359   : >> { %3322 = vst.msk [vmem:[%s6463_s8 + $0x50] sm:$0xff] %vm2176_vm12, %v3305_v7 }
 0x35a   : >> { %v3136_v36 = vpop.f32.mrf.mxu2 }
 0x35b   : >> { %v3160_v35 = vadd.f32 %v3136_v36, %v2716_v50 }
 0x35c   : >> { %v2718_v56 = vpop.f32.mrf.mxu1 }
 0x35d   : >> { %v3179_v26 = vadd.f32 %v6457_v18, %v3160_v35  ;;  %v2617_v34 = vpop.f32.mrf.mxu0 }
 0x35e   : >> { %v2719_v20 = vadd.f32 %v2718_v56, %v2617_v34 }
 0x35f   : >> { %v3306_v10 = vadd.f32 %v3282_v44, %v3179_v26 }
 0x361   : >> { %3323 = vst.msk [vmem:[%s6463_s8 + $0x58] sm:$0xff] %vm2176_vm12, %v3306_v10 }
 0x362   : >> { %v3139_v13 = vpop.f32.mrf.mxu2 }
 0x363   : >> { %v3161_v54 = vadd.f32 %v3139_v13, %v2719_v20 }
 0x364   : >> { %v2720_v1 = vpop.f32.mrf.mxu1 }
 0x365   : >> { %v3180_v52 = vadd.f32 %v6457_v18, %v3161_v54  ;;  %v2619_v15 = vpop.f32.mrf.mxu0 }
 0x366   : >> { %v2721_v46 = vadd.f32 %v2720_v1, %v2619_v15 }
 0x367   : >> { %v3307_v41 = vadd.f32 %v3285_v29, %v3180_v52 }
 0x369   : >> { %3324 = vst.msk [vmem:[%s6463_s8 + $0x60] sm:$0xff] %vm2176_vm12, %v3307_v41 }
 0x36a   : >> { %v3141_v30 = vpop.f32.mrf.mxu2 }
 0x36b   : >> { %v3162_v8 = vadd.f32 %v3141_v30, %v2721_v46 }
 0x36c   : >> { %v2723_v48 = vpop.f32.mrf.mxu1 }
 0x36d   : >> { %v3181_v49 = vadd.f32 %v6457_v18, %v3162_v8  ;;  %v2622_v24 = vpop.f32.mrf.mxu0 }
 0x36e   : >> { %v2724_v40 = vadd.f32 %v2723_v48, %v2622_v24 }
 0x36f   : >> { %v3308_v59 = vadd.f32 %v3287_v11, %v3181_v49 }
 0x371   : >> { %3325 = vst.msk [vmem:[%s6463_s8 + $0x68] sm:$0xff] %vm2176_vm12, %v3308_v59 }
 0x372   : >> { %v3144_v31 = vpop.f32.mrf.mxu2 }
 0x373   : >> { %v3163_v21 = vadd.f32 %v3144_v31, %v2724_v40 }
 0x374   : >> { %v2725_v16 = vpop.f32.mrf.mxu1 }
 0x375   : >> { %v3182_v38 = vadd.f32 %v6457_v18, %v3163_v21  ;;  %v2624_v60 = vpop.f32.mrf.mxu0 }
 0x376   : >> { %v2726_v51 = vadd.f32 %v2725_v16, %v2624_v60 }
 0x377   : >> { %v3309_v17 = vadd.f32 %v3290_v45, %v3182_v38 }
 0x379   : >> { %3326 = vst.msk [vmem:[%s6463_s8 + $0x70] sm:$0xff] %vm2176_vm12, %v3309_v17 }
 0x37a   : >> { %v3146_v62 = vpop.f32.mrf.mxu2 }
 0x37b   : >> { %v3164_v12 = vadd.f32 %v3146_v62, %v2726_v51 }
 0x37d   : >> { %v3183_v63 = vadd.f32 %v6457_v18, %v3164_v12  ;;  %1880 = sbr.rel (!%p1878_p1) target bundleno = 499 (0x1f3), region = 115 }
 0x37f   : >> { %v3310_v53 = vadd.f32 %v3292_v55, %v3183_v63 }
 0x381   : >> { %3327 = vst.msk [vmem:[%s6463_s8 + $0x78] sm:$0xff] %vm2176_vm12, %v3310_v53 }
 0x382   : > { %4230 = shalt.err (!%p4227_p12)
}
 0x383   : > { %s4297_s17 = smov 128   ;;  %s4298_s18 = smov 8  }
 0x384   : > { %3834 = dma.vmem_to_hbm [thread:$0]  (%p4417_p7), %s3342_s16, 4096, %s3344_s14, %s3329_s20, %s4297_s17, %s4297_s17, %s4298_s18  }
 0x385 PF: > { %s3358_s19 = sand.u32 1, %s4269_s21   ;;  %p6778_p13 = scmp.ge.s32.totalorder %s4281_s24, 2 }
 0x386   : > { %s3359_s26 = scalar_lea.sflag [#allocation5], %s3358_s19 }
 0x387   : > { %p3851_p0 = pnand %p6778_p13, %p4369_p6 }
 0x389   : > { %p3852_p3 = pneg %p3851_p0 }
 0x38b   : > { %4264 = dma.done.wait (%p3852_p3), %s3359_s26, 4096  }
 0x38c   : > { %4266 = vsyncadd (%p3852_p3), %s3359_s26, 4294963200  ;;  %p21_p5 = scmp.ge.s32.totalorder %s4401_s7, 4   ;;  %s6779_s21 = smov %s4273_s22 }
 0x38d   : > { %s6780_s22 = smov %s4277_s23  ;;  %s6781_s23 = smov %s4413_s12 }
 0x38e   : > { %s6782_s24 = smov %s4401_s7  ;;  %23 = sbr.rel (!%p21_p5) target bundleno = 7 (0x7), region = 126 }
 0x393   :  { %3365 = vsyncpa [#allocation4], 1 }
 0x394   :  { %3367 = vsyncpa [#allocation4 + $0x1], 1 }
 0x395   :  { %3368 = vsyncpa [#allocation7], 1 }
 0x396   :  { %3369 = vsyncpa [#allocation10], 1 }
 0x397   :  { %3370 = vsyncpa [#allocation5], 1 }
 0x398   :  { %3372 = vsyncpa [#allocation5 + $0x1], 1 }

</bundles_post_ra>
